<compile_context>
chip_gen: v6e
topology: v6e:2x2x1
jax: 0.10.0
libtpu: 0.0.40
codegen_flags: <defaults>
</compile_context>

<pallas_src>
import numpy as np
import jax
import jax.numpy as jnp
from jax.experimental import pallas as pl
from jax.experimental.pallas import tpu as pltpu


# ---------------------------------------------------------------------------
# Fully fused Encoder kernel (conv+GN stack, BiLSTM stack, select+repeat)
# ---------------------------------------------------------------------------
def _make_encoder_kernel(B, T, H, freq, conv_meta, n_lstm, eps=1e-5):
    """conv_meta: list of (kernel_size, num_groups) per conv layer."""
    n_conv = len(conv_meta)
    n_sel = T // freq

    def kernel(*refs):
        f32 = jnp.float32
        x_ref, sel_ref = refs[0], refs[1]
        conv_refs = refs[2:2 + 4 * n_conv]
        lstm_refs = refs[2 + 4 * n_conv:2 + 4 * n_conv + 3 * n_lstm]
        o_ref, hf_ref, hb_ref = refs[-3], refs[-2], refs[-1]

        sel = sel_ref[...]      # (B, T*B)  sample-membership (row % B == b)
        a = x_ref[...]          # (T*B, Cin) time-major activation

        # ---------------- Conv1d("same") + GroupNorm stack -----------------
        for li, (K, groups) in enumerate(conv_meta):
            w_ref, b_ref, gb_ref, gm_ref = conv_refs[4 * li:4 * li + 4]
            Cin_l = a.shape[-1]
            pad = (K - 1) // 2
            if pad > 0:
                z = jnp.zeros((pad * B, Cin_l), f32)
                ap = jnp.concatenate([z, a, z], axis=0)
            else:
                ap = a
            # im2col: K shifted slices along lanes -> ONE MXU matmul.
            im = jnp.concatenate(
                [ap[k * B:k * B + T * B, :] for k in range(K)], axis=-1)
            y = jnp.dot(im, w_ref[...], preferred_element_type=f32) + b_ref[...]
            Cout_l = y.shape[-1]
            # GroupNorm stats: one sel @ [y, y*y] matmul, then one scaled
            # block-diagonal group matmul (sum over group channels / (Cg*T)).
            yy = jnp.concatenate([y, y * y], axis=-1)              # (T*B, 2C)
            s = jnp.dot(sel, yy, preferred_element_type=f32)       # (B, 2C)
            sg = jnp.dot(s, gm_ref[...], preferred_element_type=f32)
            mean = sg[:, :Cout_l]
            var = jnp.maximum(sg[:, Cout_l:] - mean * mean, 0.0)
            inv_std = jax.lax.rsqrt(var + eps)
            gb = gb_ref[...]                                       # (1, 2C)
            scale = inv_std * gb[:, :Cout_l]                       # gamma folded
            shift = gb[:, Cout_l:] - mean * scale                  # beta folded
            stats = jnp.concatenate([scale, shift], axis=-1)       # (B, 2C)
            # Broadcast back over time: pure VPU sublane tile (row period B);
            # keeps the MXU off the stats->normalize dependency chain.
            bc = jnp.concatenate([stats] * T, axis=0)              # (T*B, 2C)
            a = y * bc[:, :Cout_l] + bc[:, Cout_l:]

        # ----------------------- BiLSTM stack ------------------------------
        # Gate columns pre-permuted to (i, f, o, g): one sigmoid slab + tanh.
        # Both directions advance with ONE recurrent matmul per timestep:
        #   [[h_f, 0], [0, h_b]] @ [[Whh_f], [Whh_b]] -> (2B, 4H) gates.
        ri = jax.lax.broadcasted_iota(jnp.int32, (2 * B, 2 * H), 0)
        ci = jax.lax.broadcasted_iota(jnp.int32, (2 * B, 2 * H), 1)
        zmask = ((ri < B) == (ci < H)).astype(f32)    # block-diagonal mask

        x_all = a
        for ll in range(n_lstm):
            wih_ref, bias_ref, whh_ref = lstm_refs[3 * ll:3 * ll + 3]
            if ll > 0:
                x_all = jnp.concatenate([hf_ref[...], hb_ref[...]], axis=-1)
            # Hoisted input projection for BOTH directions: one matmul,
            # off the recurrence critical path.
            xw = jnp.dot(x_all, wih_ref[...],
                         preferred_element_type=f32) + bias_ref[...]  # (T*B, 8H)
            xwf = xw[:, :4 * H]
            xwb = xw[:, 4 * H:]
            whh = whh_ref[...]                                     # (2H, 4H)
            h = jnp.zeros((2 * B, H), f32)                         # [h_f ; h_b]
            c = jnp.zeros((2 * B, H), f32)
            for s in range(T):                                     # fused fwd/bwd
                tb = T - 1 - s                                     # backward time
                zin = jnp.concatenate([h, h], axis=-1) * zmask     # (2B, 2H)
                rec = jnp.dot(zin, whh, preferred_element_type=f32)
                gates = rec + jnp.concatenate(
                    [xwf[s * B:(s + 1) * B, :],
                     xwb[tb * B:(tb + 1) * B, :]], axis=0)         # (2B, 4H)
                sig = jax.nn.sigmoid(gates[:, :3 * H])
                g = jnp.tanh(gates[:, 3 * H:])
                c = sig[:, H:2 * H] * c + sig[:, :H] * g
                h = sig[:, 2 * H:3 * H] * jnp.tanh(c)
                # Per-step states go straight to VMEM scratch (bounded liveness).
                hf_ref[s * B:(s + 1) * B, :] = h[:B, :]
                hb_ref[tb * B:(tb + 1) * B, :] = h[B:, :]

        # ---- strided selection + repeat_interleave: one lane-dense store ---
        hf = hf_ref[...]
        hb = hb_ref[...]
        rows = []
        for j in range(n_sel):
            rf = ((j + 1) * freq - 1) * B          # fwd pick: time (j+1)*freq-1
            rb = (j * freq) * B                    # bwd pick: time j*freq
            pieces = []
            for b in range(B):
                pieces.append(hf[rf + b:rf + b + 1, :])
                pieces.append(hb[rb + b:rb + b + 1, :])
            rows.append(jnp.concatenate(pieces, axis=-1))          # (1, B*2H)
        blocks = jnp.concatenate(rows, axis=0)                     # (T/f, B*2H)
        # repeat_interleave along time == lane-tile of the flattened block.
        o_ref[...] = jnp.concatenate([blocks] * freq, axis=-1)     # (T/f, f*B*2H)

    return kernel


def _full_spec(a):
    return pl.BlockSpec(a.shape, lambda i, _n=a.ndim: (0,) * _n)


# ---------------------------------------------------------------------------
# Encoder forward (wrapper: param packing + single pallas_call)
# ---------------------------------------------------------------------------
def encoder_forward(x_bct, params, frequency):
    B, Cin, T = x_bct.shape
    H = params['lstm'][-1]['whh_f'].shape[0]
    assert T % frequency == 0, "T must be divisible by frequency"

    # Conv weights -> im2col layout (K*Cin, Cout); gamma/beta packed; scaled
    # block-diagonal group matrix so GroupNorm stats are two small matmuls.
    conv_meta, conv_args = [], []
    for cp in params['convs']:
        w = cp['w']                                   # (Cout, Cin, K) PyTorch
        Cout, Cin_l, K = w.shape
        assert K % 2 == 1, "padding=(K-1)//2 only matches PyTorch for odd K"
        w2 = jnp.transpose(w, (2, 1, 0)).reshape(K * Cin_l, Cout)
        cg = Cout // cp['groups']
        gid = np.arange(Cout) // cg
        gmat = (gid[:, None] == gid[None, :]).astype(np.float32) / float(cg * T)
        gmat2 = np.zeros((2 * Cout, 2 * Cout), np.float32)
        gmat2[:Cout, :Cout] = gmat
        gmat2[Cout:, Cout:] = gmat
        gb = jnp.concatenate([cp['gamma'].reshape(1, Cout),
                              cp['beta'].reshape(1, Cout)], axis=-1)
        conv_args += [w2, cp['b'].reshape(1, Cout), gb, jnp.asarray(gmat2)]
        conv_meta.append((K, cp['groups']))

    # LSTM weights: permute gate columns (i,f,g,o)->(i,f,o,g); lane-concat the
    # two directions' input projections (one hoisted matmul per layer);
    # row-stack the recurrent weights for the block-diagonal fused cell.
    perm = np.concatenate([np.arange(0, 2 * H),
                           np.arange(3 * H, 4 * H),
                           np.arange(2 * H, 3 * H)])
    lstm_args = []
    for lp in params['lstm']:
        wih = jnp.concatenate([lp['wih_f'][:, perm], lp['wih_b'][:, perm]],
                              axis=-1)                     # (D, 8H)
        bias = jnp.concatenate([lp['b_f'][:, perm], lp['b_b'][:, perm]],
                               axis=-1)                    # (1, 8H)
        whh = jnp.concatenate([lp['whh_f'][:, perm], lp['whh_b'][:, perm]],
                              axis=0)                      # (2H, 4H)
        lstm_args += [wih, bias, whh]

    # Sample-membership matrix for GroupNorm stats in time-major layout.
    r = np.arange(T * B)
    sel = jnp.asarray((r[None, :] % B == np.arange(B)[:, None])
                      .astype(np.float32))                 # (B, T*B)

    # Input to time-major 2D: row = t*B + b.
    x2 = jnp.transpose(x_bct, (2, 0, 1)).reshape(T * B, Cin)

    args = [x2, sel] + conv_args + lstm_args
    kernel = _make_encoder_kernel(B, T, H, frequency, conv_meta,
                                  len(params['lstm']))
    n_sel = T // frequency
    out_w = frequency * B * 2 * H                          # lane-dense output
    out2d = pl.pallas_call(
        kernel,
        grid=(1,),
        out_shape=jax.ShapeDtypeStruct((n_sel, out_w), jnp.float32),
        in_specs=[_full_spec(a) for a in args],
        out_specs=pl.BlockSpec((n_sel, out_w), lambda i: (0, 0)),
        scratch_shapes=[pltpu.VMEM((T * B, H), jnp.float32),
                        pltpu.VMEM((T * B, H), jnp.float32)],
        compiler_params=pltpu.CompilerParams(
            dimension_semantics=("arbitrary",)),
    )(*args)
    # (T/freq, freq*B*2H) row-major flattens as (t, b, c): reshape + transpose.
    return jnp.transpose(out2d.reshape(T, B, 2 * H), (1, 2, 0))   # (B, 2H, T)


# ---------------------------------------------------------------------------
# Deterministic parameter initialization (same shapes as the PyTorch module)
# ---------------------------------------------------------------------------
def init_params(key, input_channels, conv_channels, conv_kernel_sizes,
                norm_groups, lstm_stacks, lstm_size):
    params = {'convs': [], 'lstm': []}
    prev = input_channels
    for ch, k in zip(conv_channels, conv_kernel_sizes):
        key, k1, k2, k3, k4 = jax.random.split(key, 5)
        params['convs'].append(dict(
            w=0.1 * jax.random.normal(k1, (ch, prev, k), jnp.float32),
            b=0.1 * jax.random.normal(k2, (ch,), jnp.float32),
            gamma=1.0 + 0.1 * jax.random.normal(k3, (ch,), jnp.float32),
            beta=0.1 * jax.random.normal(k4, (ch,), jnp.float32),
            groups=norm_groups))
        prev = ch
    d_in = prev
    H = lstm_size
    for _ in range(lstm_stacks):
        key, *ks = jax.random.split(key, 9)
        mk = lambda kk, shp: 0.1 * jax.random.normal(kk, shp, jnp.float32)
        # PyTorch stores W_ih as (4H, D); we keep the transpose (D, 4H).
        # Combined bias b = b_ih + b_hh (mathematically identical).
        # Canonical gate order here is PyTorch's (i, f, g, o).
        params['lstm'].append(dict(
            wih_f=mk(ks[0], (d_in, 4 * H)), whh_f=mk(ks[1], (H, 4 * H)),
            b_f=mk(ks[2], (1, 4 * H)) + mk(ks[3], (1, 4 * H)),
            wih_b=mk(ks[4], (d_in, 4 * H)), whh_b=mk(ks[5], (H, 4 * H)),
            b_b=mk(ks[6], (1, 4 * H)) + mk(ks[7], (1, 4 * H))))
        d_in = 2 * H
    return params


# ---------------------------------------------------------------------------
# Pure-JAX reference (mirrors PyTorch semantics) for a correctness check
# ---------------------------------------------------------------------------
def ref_forward(x_bct, params, frequency):
    x = x_bct
    for cp in params['convs']:
        w, b = cp['w'], cp['b']
        Cout, Cin, K = w.shape
        pad = (K - 1) // 2
        T = x.shape[2]
        xp = jnp.pad(x, ((0, 0), (0, 0), (pad, pad)))
        y = jnp.zeros((x.shape[0], Cout, T), jnp.float32) + b[None, :, None]
        for k in range(K):
            y = y + jnp.einsum('bct,oc->bot', xp[:, :, k:k + T], w[:, :, k])
        B, G = y.shape[0], cp['groups']
        Cg = Cout // G
        yr = y.reshape(B, G, Cg, T)
        mean = yr.mean(axis=(2, 3), keepdims=True)
        var = yr.var(axis=(2, 3), keepdims=True)
        yn = ((yr - mean) / jnp.sqrt(var + 1e-5)).reshape(B, Cout, T)
        x = yn * cp['gamma'][None, :, None] + cp['beta'][None, :, None]
    h = jnp.transpose(x, (2, 0, 1))                        # (T, B, C)
    for lp in params['lstm']:
        Hn = lp['whh_f'].shape[0]

        def run(xseq, wih, whh, b):
            B = xseq.shape[1]
            hh = jnp.zeros((B, Hn), jnp.float32)
            cc = jnp.zeros((B, Hn), jnp.float32)
            outs = []
            for t in range(xseq.shape[0]):
                g = xseq[t] @ wih + hh @ whh + b
                i = jax.nn.sigmoid(g[:, :Hn])
                f = jax.nn.sigmoid(g[:, Hn:2 * Hn])
                gg = jnp.tanh(g[:, 2 * Hn:3 * Hn])
                o = jax.nn.sigmoid(g[:, 3 * Hn:])
                cc = f * cc + i * gg
                hh = o * jnp.tanh(cc)
                outs.append(hh)
            return jnp.stack(outs, 0)

        of = run(h, lp['wih_f'], lp['whh_f'], lp['b_f'])
        ob = run(h[::-1], lp['wih_b'], lp['whh_b'], lp['b_b'])[::-1]
        h = jnp.concatenate([of, ob], axis=-1)
    H = params['lstm'][-1]['whh_f'].shape[0]
    y = jnp.transpose(h, (1, 2, 0))
    sel = jnp.concatenate([y[:, :H, frequency - 1::frequency],
                           y[:, H:, ::frequency]], axis=1)
    return jnp.repeat(sel, frequency, axis=2)


if __name__ == "__main__":
    B, Cin, T = 2, 4, 16
    conv_channels = [8, 8]
    conv_kernel_sizes = [5, 3]
    norm_groups = 2
    lstm_stacks = 2
    lstm_size = 8
    frequency = 4

    key = jax.random.PRNGKey(0)
    key, xk = jax.random.split(key)
    x = jax.random.normal(xk, (B, Cin, T), jnp.float32)    # PyTorch NCW input
    params = init_params(key, Cin, conv_channels, conv_kernel_sizes,
                         norm_groups, lstm_stacks, lstm_size)

    out = jax.block_until_ready(encoder_forward(x, params, frequency))
    assert out.shape == (B, 2 * lstm_size, T), out.shape

    ref = jax.block_until_ready(ref_forward(x, params, frequency))
    np.testing.assert_allclose(np.asarray(out), np.asarray(ref),
                               rtol=5e-3, atol=5e-3)
    print("KERNEL_OK")
</pallas_src>

<mosaic_0001>
module attributes {stable_mosaic.version = 11 : i64} {
  func.func @kernel(%arg0: i32, %arg1: memref<32x4xf32, #tpu.memory_space<vmem>>, %arg2: memref<2x32xf32, #tpu.memory_space<vmem>>, %arg3: memref<20x8xf32, #tpu.memory_space<vmem>>, %arg4: memref<1x8xf32, #tpu.memory_space<vmem>>, %arg5: memref<1x16xf32, #tpu.memory_space<vmem>>, %arg6: memref<16x16xf32, #tpu.memory_space<vmem>>, %arg7: memref<24x8xf32, #tpu.memory_space<vmem>>, %arg8: memref<1x8xf32, #tpu.memory_space<vmem>>, %arg9: memref<1x16xf32, #tpu.memory_space<vmem>>, %arg10: memref<16x16xf32, #tpu.memory_space<vmem>>, %arg11: memref<8x64xf32, #tpu.memory_space<vmem>>, %arg12: memref<1x64xf32, #tpu.memory_space<vmem>>, %arg13: memref<16x32xf32, #tpu.memory_space<vmem>>, %arg14: memref<16x64xf32, #tpu.memory_space<vmem>>, %arg15: memref<1x64xf32, #tpu.memory_space<vmem>>, %arg16: memref<16x32xf32, #tpu.memory_space<vmem>>, %arg17: memref<4x128xf32, #tpu.memory_space<vmem>>, %arg18: memref<32x8xf32, #tpu.memory_space<vmem>>, %arg19: memref<32x8xf32, #tpu.memory_space<vmem>>) attributes {dimension_semantics = [#tpu.dimension_semantics<arbitrary>], iteration_bounds = array<i64: 1>, scalar_prefetch = 0 : i64, scratch_operands = 2 : i64, tpu.core_type = #tpu.core_type<tc>, window_params = [{pipeline_mode = #tpu.pipeline_mode<synchronous>, transform_indices = @transform_0, window_bounds = array<i64: 32, 4>}, {pipeline_mode = #tpu.pipeline_mode<synchronous>, transform_indices = @transform_1, window_bounds = array<i64: 2, 32>}, {pipeline_mode = #tpu.pipeline_mode<synchronous>, transform_indices = @transform_2, window_bounds = array<i64: 20, 8>}, {pipeline_mode = #tpu.pipeline_mode<synchronous>, transform_indices = @transform_3, window_bounds = array<i64: 1, 8>}, {pipeline_mode = #tpu.pipeline_mode<synchronous>, transform_indices = @transform_4, window_bounds = array<i64: 1, 16>}, {pipeline_mode = #tpu.pipeline_mode<synchronous>, transform_indices = @transform_5, window_bounds = array<i64: 16, 16>}, {pipeline_mode = #tpu.pipeline_mode<synchronous>, transform_indices = @transform_6, window_bounds = array<i64: 24, 8>}, {pipeline_mode = #tpu.pipeline_mode<synchronous>, transform_indices = @transform_7, window_bounds = array<i64: 1, 8>}, {pipeline_mode = #tpu.pipeline_mode<synchronous>, transform_indices = @transform_8, window_bounds = array<i64: 1, 16>}, {pipeline_mode = #tpu.pipeline_mode<synchronous>, transform_indices = @transform_9, window_bounds = array<i64: 16, 16>}, {pipeline_mode = #tpu.pipeline_mode<synchronous>, transform_indices = @transform_10, window_bounds = array<i64: 8, 64>}, {pipeline_mode = #tpu.pipeline_mode<synchronous>, transform_indices = @transform_11, window_bounds = array<i64: 1, 64>}, {pipeline_mode = #tpu.pipeline_mode<synchronous>, transform_indices = @transform_12, window_bounds = array<i64: 16, 32>}, {pipeline_mode = #tpu.pipeline_mode<synchronous>, transform_indices = @transform_13, window_bounds = array<i64: 16, 64>}, {pipeline_mode = #tpu.pipeline_mode<synchronous>, transform_indices = @transform_14, window_bounds = array<i64: 1, 64>}, {pipeline_mode = #tpu.pipeline_mode<synchronous>, transform_indices = @transform_15, window_bounds = array<i64: 16, 32>}, {pipeline_mode = #tpu.pipeline_mode<synchronous>, transform_indices = @transform_16, window_bounds = array<i64: 4, 128>}]} {
    %c0 = arith.constant 0 : index
    %c0_0 = arith.constant 0 : index
    %0 = vector.load %arg2[%c0, %c0_0] : memref<2x32xf32, #tpu.memory_space<vmem>>, vector<2x32xf32>
    %c0_1 = arith.constant 0 : index
    %c0_2 = arith.constant 0 : index
    %1 = vector.load %arg1[%c0_1, %c0_2] : memref<32x4xf32, #tpu.memory_space<vmem>>, vector<32x4xf32>
    %cst = arith.constant 0.000000e+00 : f32
    %2 = vector.broadcast %cst : f32 to vector<4x4xf32>
    %3 = tpu.concatenate %2, %1, %2 in 0 : vector<4x4xf32>, vector<32x4xf32>, vector<4x4xf32> -> vector<40x4xf32>
    %4 = vector.extract_strided_slice %3 {offsets = [0, 0], sizes = [32, 4], strides = [1, 1]} : vector<40x4xf32> to vector<32x4xf32>
    %5 = vector.extract_strided_slice %3 {offsets = [2, 0], sizes = [32, 4], strides = [1, 1]} : vector<40x4xf32> to vector<32x4xf32>
    %6 = vector.extract_strided_slice %3 {offsets = [4, 0], sizes = [32, 4], strides = [1, 1]} : vector<40x4xf32> to vector<32x4xf32>
    %7 = vector.extract_strided_slice %3 {offsets = [6, 0], sizes = [32, 4], strides = [1, 1]} : vector<40x4xf32> to vector<32x4xf32>
    %8 = vector.extract_strided_slice %3 {offsets = [8, 0], sizes = [32, 4], strides = [1, 1]} : vector<40x4xf32> to vector<32x4xf32>
    %9 = tpu.concatenate %4, %5, %6, %7, %8 in 1 : vector<32x4xf32>, vector<32x4xf32>, vector<32x4xf32>, vector<32x4xf32>, vector<32x4xf32> -> vector<32x20xf32>
    %c0_3 = arith.constant 0 : index
    %c0_4 = arith.constant 0 : index
    %10 = vector.load %arg3[%c0_3, %c0_4] : memref<20x8xf32, #tpu.memory_space<vmem>>, vector<20x8xf32>
    %cst_5 = arith.constant dense<0.000000e+00> : vector<32x8xf32>
    %11 = tpu.matmul %9, %10, %cst_5 {dimension_numbers = #tpu.dot_dimension_numbers<[1], [0], [0], [1], [0, 0, 1, 1], [], []>} : vector<32x20xf32>, vector<20x8xf32>, vector<32x8xf32> -> vector<32x8xf32>
    %c0_6 = arith.constant 0 : index
    %c0_7 = arith.constant 0 : index
    %12 = vector.load %arg4[%c0_6, %c0_7] : memref<1x8xf32, #tpu.memory_space<vmem>>, vector<1x8xf32>
    %13 = vector.broadcast %12 : vector<1x8xf32> to vector<32x8xf32>
    %14 = arith.addf %11, %13 : vector<32x8xf32>
    %15 = arith.mulf %14, %14 : vector<32x8xf32>
    %16 = tpu.concatenate %14, %15 in 1 : vector<32x8xf32>, vector<32x8xf32> -> vector<32x16xf32>
    %cst_8 = arith.constant dense<0.000000e+00> : vector<2x16xf32>
    %17 = tpu.matmul %0, %16, %cst_8 {dimension_numbers = #tpu.dot_dimension_numbers<[1], [0], [0], [1], [0, 0, 1, 1], [], []>} : vector<2x32xf32>, vector<32x16xf32>, vector<2x16xf32> -> vector<2x16xf32>
    %c0_9 = arith.constant 0 : index
    %c0_10 = arith.constant 0 : index
    %18 = vector.load %arg6[%c0_9, %c0_10] : memref<16x16xf32, #tpu.memory_space<vmem>>, vector<16x16xf32>
    %cst_11 = arith.constant dense<0.000000e+00> : vector<2x16xf32>
    %19 = tpu.matmul %17, %18, %cst_11 {dimension_numbers = #tpu.dot_dimension_numbers<[1], [0], [0], [1], [0, 0, 1, 1], [], []>} : vector<2x16xf32>, vector<16x16xf32>, vector<2x16xf32> -> vector<2x16xf32>
    %20 = vector.extract_strided_slice %19 {offsets = [0, 0], sizes = [2, 8], strides = [1, 1]} : vector<2x16xf32> to vector<2x8xf32>
    %21 = vector.extract_strided_slice %19 {offsets = [0, 8], sizes = [2, 8], strides = [1, 1]} : vector<2x16xf32> to vector<2x8xf32>
    %22 = arith.mulf %20, %20 : vector<2x8xf32>
    %23 = arith.subf %21, %22 : vector<2x8xf32>
    %cst_12 = arith.constant 0.000000e+00 : f32
    %24 = vector.broadcast %cst_12 : f32 to vector<2x8xf32>
    %25 = arith.maximumf %23, %24 : vector<2x8xf32>
    %cst_13 = arith.constant 9.99999974E-6 : f32
    %26 = vector.broadcast %cst_13 : f32 to vector<2x8xf32>
    %27 = arith.addf %25, %26 : vector<2x8xf32>
    %28 = math.rsqrt %27 : vector<2x8xf32>
    %c0_14 = arith.constant 0 : index
    %c0_15 = arith.constant 0 : index
    %29 = vector.load %arg5[%c0_14, %c0_15] : memref<1x16xf32, #tpu.memory_space<vmem>>, vector<1x16xf32>
    %30 = vector.extract_strided_slice %29 {offsets = [0, 0], sizes = [1, 8], strides = [1, 1]} : vector<1x16xf32> to vector<1x8xf32>
    %31 = vector.broadcast %30 : vector<1x8xf32> to vector<2x8xf32>
    %32 = arith.mulf %28, %31 : vector<2x8xf32>
    %33 = vector.extract_strided_slice %29 {offsets = [0, 8], sizes = [1, 8], strides = [1, 1]} : vector<1x16xf32> to vector<1x8xf32>
    %34 = arith.mulf %20, %32 : vector<2x8xf32>
    %35 = vector.broadcast %33 : vector<1x8xf32> to vector<2x8xf32>
    %36 = arith.subf %35, %34 : vector<2x8xf32>
    %37 = tpu.concatenate %32, %36 in 1 : vector<2x8xf32>, vector<2x8xf32> -> vector<2x16xf32>
    %38 = tpu.concatenate %37, %37, %37, %37, %37, %37, %37, %37, %37, %37, %37, %37, %37, %37, %37, %37 in 0 : vector<2x16xf32>, vector<2x16xf32>, vector<2x16xf32>, vector<2x16xf32>, vector<2x16xf32>, vector<2x16xf32>, vector<2x16xf32>, vector<2x16xf32>, vector<2x16xf32>, vector<2x16xf32>, vector<2x16xf32>, vector<2x16xf32>, vector<2x16xf32>, vector<2x16xf32>, vector<2x16xf32>, vector<2x16xf32> -> vector<32x16xf32>
    %39 = vector.extract_strided_slice %38 {offsets = [0, 0], sizes = [32, 8], strides = [1, 1]} : vector<32x16xf32> to vector<32x8xf32>
    %40 = arith.mulf %14, %39 : vector<32x8xf32>
    %41 = vector.extract_strided_slice %38 {offsets = [0, 8], sizes = [32, 8], strides = [1, 1]} : vector<32x16xf32> to vector<32x8xf32>
    %42 = arith.addf %40, %41 : vector<32x8xf32>
    %cst_16 = arith.constant 0.000000e+00 : f32
    %43 = vector.broadcast %cst_16 : f32 to vector<2x8xf32>
    %44 = tpu.concatenate %43, %42, %43 in 0 : vector<2x8xf32>, vector<32x8xf32>, vector<2x8xf32> -> vector<36x8xf32>
    %45 = vector.extract_strided_slice %44 {offsets = [0, 0], sizes = [32, 8], strides = [1, 1]} : vector<36x8xf32> to vector<32x8xf32>
    %46 = vector.extract_strided_slice %44 {offsets = [2, 0], sizes = [32, 8], strides = [1, 1]} : vector<36x8xf32> to vector<32x8xf32>
    %47 = vector.extract_strided_slice %44 {offsets = [4, 0], sizes = [32, 8], strides = [1, 1]} : vector<36x8xf32> to vector<32x8xf32>
    %48 = tpu.concatenate %45, %46, %47 in 1 : vector<32x8xf32>, vector<32x8xf32>, vector<32x8xf32> -> vector<32x24xf32>
    %c0_17 = arith.constant 0 : index
    %c0_18 = arith.constant 0 : index
    %49 = vector.load %arg7[%c0_17, %c0_18] : memref<24x8xf32, #tpu.memory_space<vmem>>, vector<24x8xf32>
    %cst_19 = arith.constant dense<0.000000e+00> : vector<32x8xf32>
    %50 = tpu.matmul %48, %49, %cst_19 {dimension_numbers = #tpu.dot_dimension_numbers<[1], [0], [0], [1], [0, 0, 1, 1], [], []>} : vector<32x24xf32>, vector<24x8xf32>, vector<32x8xf32> -> vector<32x8xf32>
    %c0_20 = arith.constant 0 : index
    %c0_21 = arith.constant 0 : index
    %51 = vector.load %arg8[%c0_20, %c0_21] : memref<1x8xf32, #tpu.memory_space<vmem>>, vector<1x8xf32>
    %52 = vector.broadcast %51 : vector<1x8xf32> to vector<32x8xf32>
    %53 = arith.addf %50, %52 : vector<32x8xf32>
    %54 = arith.mulf %53, %53 : vector<32x8xf32>
    %55 = tpu.concatenate %53, %54 in 1 : vector<32x8xf32>, vector<32x8xf32> -> vector<32x16xf32>
    %cst_22 = arith.constant dense<0.000000e+00> : vector<2x16xf32>
    %56 = tpu.matmul %0, %55, %cst_22 {dimension_numbers = #tpu.dot_dimension_numbers<[1], [0], [0], [1], [0, 0, 1, 1], [], []>} : vector<2x32xf32>, vector<32x16xf32>, vector<2x16xf32> -> vector<2x16xf32>
    %c0_23 = arith.constant 0 : index
    %c0_24 = arith.constant 0 : index
    %57 = vector.load %arg10[%c0_23, %c0_24] : memref<16x16xf32, #tpu.memory_space<vmem>>, vector<16x16xf32>
    %cst_25 = arith.constant dense<0.000000e+00> : vector<2x16xf32>
    %58 = tpu.matmul %56, %57, %cst_25 {dimension_numbers = #tpu.dot_dimension_numbers<[1], [0], [0], [1], [0, 0, 1, 1], [], []>} : vector<2x16xf32>, vector<16x16xf32>, vector<2x16xf32> -> vector<2x16xf32>
    %59 = vector.extract_strided_slice %58 {offsets = [0, 0], sizes = [2, 8], strides = [1, 1]} : vector<2x16xf32> to vector<2x8xf32>
    %60 = vector.extract_strided_slice %58 {offsets = [0, 8], sizes = [2, 8], strides = [1, 1]} : vector<2x16xf32> to vector<2x8xf32>
    %61 = arith.mulf %59, %59 : vector<2x8xf32>
    %62 = arith.subf %60, %61 : vector<2x8xf32>
    %cst_26 = arith.constant 0.000000e+00 : f32
    %63 = vector.broadcast %cst_26 : f32 to vector<2x8xf32>
    %64 = arith.maximumf %62, %63 : vector<2x8xf32>
    %cst_27 = arith.constant 9.99999974E-6 : f32
    %65 = vector.broadcast %cst_27 : f32 to vector<2x8xf32>
    %66 = arith.addf %64, %65 : vector<2x8xf32>
    %67 = math.rsqrt %66 : vector<2x8xf32>
    %c0_28 = arith.constant 0 : index
    %c0_29 = arith.constant 0 : index
    %68 = vector.load %arg9[%c0_28, %c0_29] : memref<1x16xf32, #tpu.memory_space<vmem>>, vector<1x16xf32>
    %69 = vector.extract_strided_slice %68 {offsets = [0, 0], sizes = [1, 8], strides = [1, 1]} : vector<1x16xf32> to vector<1x8xf32>
    %70 = vector.broadcast %69 : vector<1x8xf32> to vector<2x8xf32>
    %71 = arith.mulf %67, %70 : vector<2x8xf32>
    %72 = vector.extract_strided_slice %68 {offsets = [0, 8], sizes = [1, 8], strides = [1, 1]} : vector<1x16xf32> to vector<1x8xf32>
    %73 = arith.mulf %59, %71 : vector<2x8xf32>
    %74 = vector.broadcast %72 : vector<1x8xf32> to vector<2x8xf32>
    %75 = arith.subf %74, %73 : vector<2x8xf32>
    %76 = tpu.concatenate %71, %75 in 1 : vector<2x8xf32>, vector<2x8xf32> -> vector<2x16xf32>
    %77 = tpu.concatenate %76, %76, %76, %76, %76, %76, %76, %76, %76, %76, %76, %76, %76, %76, %76, %76 in 0 : vector<2x16xf32>, vector<2x16xf32>, vector<2x16xf32>, vector<2x16xf32>, vector<2x16xf32>, vector<2x16xf32>, vector<2x16xf32>, vector<2x16xf32>, vector<2x16xf32>, vector<2x16xf32>, vector<2x16xf32>, vector<2x16xf32>, vector<2x16xf32>, vector<2x16xf32>, vector<2x16xf32>, vector<2x16xf32> -> vector<32x16xf32>
    %78 = vector.extract_strided_slice %77 {offsets = [0, 0], sizes = [32, 8], strides = [1, 1]} : vector<32x16xf32> to vector<32x8xf32>
    %79 = arith.mulf %53, %78 : vector<32x8xf32>
    %80 = vector.extract_strided_slice %77 {offsets = [0, 8], sizes = [32, 8], strides = [1, 1]} : vector<32x16xf32> to vector<32x8xf32>
    %81 = arith.addf %79, %80 : vector<32x8xf32>
    %82 = tpu.iota {dimensions = array<i32: 0>} : vector<4x16xi32>
    %83 = tpu.iota {dimensions = array<i32: 1>} : vector<4x16xi32>
    %c2_i32 = arith.constant 2 : i32
    %84 = vector.broadcast %c2_i32 : i32 to vector<4x16xi32>
    %85 = arith.cmpi slt, %82, %84 : vector<4x16xi32>
    %c8_i32 = arith.constant 8 : i32
    %86 = vector.broadcast %c8_i32 : i32 to vector<4x16xi32>
    %87 = arith.cmpi slt, %83, %86 : vector<4x16xi32>
    %88 = arith.xori %85, %87 : vector<4x16xi1>
    %cst_30 = arith.constant dense<true> : vector<4x16xi1>
    %89 = arith.xori %88, %cst_30 : vector<4x16xi1>
    %90 = arith.extui %89 : vector<4x16xi1> to vector<4x16xi32>
    %91 = arith.sitofp %90 : vector<4x16xi32> to vector<4x16xf32>
    %c0_31 = arith.constant 0 : index
    %c0_32 = arith.constant 0 : index
    %92 = vector.load %arg11[%c0_31, %c0_32] : memref<8x64xf32, #tpu.memory_space<vmem>>, vector<8x64xf32>
    %cst_33 = arith.constant dense<0.000000e+00> : vector<32x64xf32>
    %93 = tpu.matmul %81, %92, %cst_33 {dimension_numbers = #tpu.dot_dimension_numbers<[1], [0], [0], [1], [0, 0, 1, 1], [], []>} : vector<32x8xf32>, vector<8x64xf32>, vector<32x64xf32> -> vector<32x64xf32>
    %c0_34 = arith.constant 0 : index
    %c0_35 = arith.constant 0 : index
    %94 = vector.load %arg12[%c0_34, %c0_35] : memref<1x64xf32, #tpu.memory_space<vmem>>, vector<1x64xf32>
    %95 = vector.broadcast %94 : vector<1x64xf32> to vector<32x64xf32>
    %96 = arith.addf %93, %95 : vector<32x64xf32>
    %97 = vector.extract_strided_slice %96 {offsets = [0, 0], sizes = [32, 32], strides = [1, 1]} : vector<32x64xf32> to vector<32x32xf32>
    %98 = vector.extract_strided_slice %96 {offsets = [0, 32], sizes = [32, 32], strides = [1, 1]} : vector<32x64xf32> to vector<32x32xf32>
    %c0_36 = arith.constant 0 : index
    %c0_37 = arith.constant 0 : index
    %99 = vector.load %arg13[%c0_36, %c0_37] : memref<16x32xf32, #tpu.memory_space<vmem>>, vector<16x32xf32>
    %cst_38 = arith.constant 0.000000e+00 : f32
    %100 = vector.broadcast %cst_38 : f32 to vector<4x8xf32>
    %cst_39 = arith.constant 0.000000e+00 : f32
    %101 = vector.broadcast %cst_39 : f32 to vector<4x8xf32>
    %102 = tpu.concatenate %100, %100 in 1 : vector<4x8xf32>, vector<4x8xf32> -> vector<4x16xf32>
    %103 = arith.mulf %102, %91 : vector<4x16xf32>
    %cst_40 = arith.constant dense<0.000000e+00> : vector<4x32xf32>
    %104 = tpu.matmul %103, %99, %cst_40 {dimension_numbers = #tpu.dot_dimension_numbers<[1], [0], [0], [1], [0, 0, 1, 1], [], []>} : vector<4x16xf32>, vector<16x32xf32>, vector<4x32xf32> -> vector<4x32xf32>
    %105 = vector.extract_strided_slice %97 {offsets = [0, 0], sizes = [2, 32], strides = [1, 1]} : vector<32x32xf32> to vector<2x32xf32>
    %106 = vector.extract_strided_slice %98 {offsets = [30, 0], sizes = [2, 32], strides = [1, 1]} : vector<32x32xf32> to vector<2x32xf32>
    %107 = tpu.concatenate %105, %106 in 0 : vector<2x32xf32>, vector<2x32xf32> -> vector<4x32xf32>
    %108 = arith.addf %104, %107 : vector<4x32xf32>
    %109 = vector.extract_strided_slice %108 {offsets = [0, 0], sizes = [4, 24], strides = [1, 1]} : vector<4x32xf32> to vector<4x24xf32>
    %110 = arith.negf %109 : vector<4x24xf32>
    %111 = math.exp %110 : vector<4x24xf32>
    %cst_41 = arith.constant 1.000000e+00 : f32
    %112 = vector.broadcast %cst_41 : f32 to vector<4x24xf32>
    %113 = arith.addf %112, %111 : vector<4x24xf32>
    %114 = arith.divf %112, %113 : vector<4x24xf32>
    %115 = vector.extract_strided_slice %108 {offsets = [0, 24], sizes = [4, 8], strides = [1, 1]} : vector<4x32xf32> to vector<4x8xf32>
    %116 = math.tanh %115 : vector<4x8xf32>
    %117 = vector.extract_strided_slice %114 {offsets = [0, 8], sizes = [4, 8], strides = [1, 1]} : vector<4x24xf32> to vector<4x8xf32>
    %118 = arith.mulf %117, %101 : vector<4x8xf32>
    %119 = vector.extract_strided_slice %114 {offsets = [0, 0], sizes = [4, 8], strides = [1, 1]} : vector<4x24xf32> to vector<4x8xf32>
    %120 = arith.mulf %119, %116 : vector<4x8xf32>
    %121 = arith.addf %118, %120 : vector<4x8xf32>
    %122 = vector.extract_strided_slice %114 {offsets = [0, 16], sizes = [4, 8], strides = [1, 1]} : vector<4x24xf32> to vector<4x8xf32>
    %123 = math.tanh %121 : vector<4x8xf32>
    %124 = arith.mulf %122, %123 : vector<4x8xf32>
    %125 = vector.extract_strided_slice %124 {offsets = [0, 0], sizes = [2, 8], strides = [1, 1]} : vector<4x8xf32> to vector<2x8xf32>
    %c0_42 = arith.constant 0 : index
    %c0_43 = arith.constant 0 : index
    %126 = vector.load %arg18[%c0_42, %c0_43] : memref<32x8xf32, #tpu.memory_space<vmem>>, vector<2x8xf32>
    tpu.vector_store %arg18[%c0_42, %c0_43], %125 {strides = array<i32>} : memref<32x8xf32, #tpu.memory_space<vmem>>, vector<2x8xf32>,
    %127 = vector.extract_strided_slice %124 {offsets = [2, 0], sizes = [2, 8], strides = [1, 1]} : vector<4x8xf32> to vector<2x8xf32>
    %c30 = arith.constant 30 : index
    %c0_44 = arith.constant 0 : index
    %128 = vector.load %arg19[%c30, %c0_44] : memref<32x8xf32, #tpu.memory_space<vmem>>, vector<2x8xf32>
    tpu.vector_store %arg19[%c30, %c0_44], %127 {strides = array<i32>} : memref<32x8xf32, #tpu.memory_space<vmem>>, vector<2x8xf32>,
    %129 = tpu.concatenate %124, %124 in 1 : vector<4x8xf32>, vector<4x8xf32> -> vector<4x16xf32>
    %130 = arith.mulf %129, %91 : vector<4x16xf32>
    %cst_45 = arith.constant dense<0.000000e+00> : vector<4x32xf32>
    %131 = tpu.matmul %130, %99, %cst_45 {dimension_numbers = #tpu.dot_dimension_numbers<[1], [0], [0], [1], [0, 0, 1, 1], [], []>} : vector<4x16xf32>, vector<16x32xf32>, vector<4x32xf32> -> vector<4x32xf32>
    %132 = vector.extract_strided_slice %97 {offsets = [2, 0], sizes = [2, 32], strides = [1, 1]} : vector<32x32xf32> to vector<2x32xf32>
    %133 = vector.extract_strided_slice %98 {offsets = [28, 0], sizes = [2, 32], strides = [1, 1]} : vector<32x32xf32> to vector<2x32xf32>
    %134 = tpu.concatenate %132, %133 in 0 : vector<2x32xf32>, vector<2x32xf32> -> vector<4x32xf32>
    %135 = arith.addf %131, %134 : vector<4x32xf32>
    %136 = vector.extract_strided_slice %135 {offsets = [0, 0], sizes = [4, 24], strides = [1, 1]} : vector<4x32xf32> to vector<4x24xf32>
    %137 = arith.negf %136 : vector<4x24xf32>
    %138 = math.exp %137 : vector<4x24xf32>
    %cst_46 = arith.constant 1.000000e+00 : f32
    %139 = vector.broadcast %cst_46 : f32 to vector<4x24xf32>
    %140 = arith.addf %139, %138 : vector<4x24xf32>
    %141 = arith.divf %139, %140 : vector<4x24xf32>
    %142 = vector.extract_strided_slice %135 {offsets = [0, 24], sizes = [4, 8], strides = [1, 1]} : vector<4x32xf32> to vector<4x8xf32>
    %143 = math.tanh %142 : vector<4x8xf32>
    %144 = vector.extract_strided_slice %141 {offsets = [0, 8], sizes = [4, 8], strides = [1, 1]} : vector<4x24xf32> to vector<4x8xf32>
    %145 = arith.mulf %144, %121 : vector<4x8xf32>
    %146 = vector.extract_strided_slice %141 {offsets = [0, 0], sizes = [4, 8], strides = [1, 1]} : vector<4x24xf32> to vector<4x8xf32>
    %147 = arith.mulf %146, %143 : vector<4x8xf32>
    %148 = arith.addf %145, %147 : vector<4x8xf32>
    %149 = vector.extract_strided_slice %141 {offsets = [0, 16], sizes = [4, 8], strides = [1, 1]} : vector<4x24xf32> to vector<4x8xf32>
    %150 = math.tanh %148 : vector<4x8xf32>
    %151 = arith.mulf %149, %150 : vector<4x8xf32>
    %152 = vector.extract_strided_slice %151 {offsets = [0, 0], sizes = [2, 8], strides = [1, 1]} : vector<4x8xf32> to vector<2x8xf32>
    %c2 = arith.constant 2 : index
    %c0_47 = arith.constant 0 : index
    %153 = vector.load %arg18[%c2, %c0_47] : memref<32x8xf32, #tpu.memory_space<vmem>>, vector<2x8xf32>
    tpu.vector_store %arg18[%c2, %c0_47], %152 {strides = array<i32>} : memref<32x8xf32, #tpu.memory_space<vmem>>, vector<2x8xf32>,
    %154 = vector.extract_strided_slice %151 {offsets = [2, 0], sizes = [2, 8], strides = [1, 1]} : vector<4x8xf32> to vector<2x8xf32>
    %c28 = arith.constant 28 : index
    %c0_48 = arith.constant 0 : index
    %155 = vector.load %arg19[%c28, %c0_48] : memref<32x8xf32, #tpu.memory_space<vmem>>, vector<2x8xf32>
    tpu.vector_store %arg19[%c28, %c0_48], %154 {strides = array<i32>} : memref<32x8xf32, #tpu.memory_space<vmem>>, vector<2x8xf32>,
    %156 = tpu.concatenate %151, %151 in 1 : vector<4x8xf32>, vector<4x8xf32> -> vector<4x16xf32>
    %157 = arith.mulf %156, %91 : vector<4x16xf32>
    %cst_49 = arith.constant dense<0.000000e+00> : vector<4x32xf32>
    %158 = tpu.matmul %157, %99, %cst_49 {dimension_numbers = #tpu.dot_dimension_numbers<[1], [0], [0], [1], [0, 0, 1, 1], [], []>} : vector<4x16xf32>, vector<16x32xf32>, vector<4x32xf32> -> vector<4x32xf32>
    %159 = vector.extract_strided_slice %97 {offsets = [4, 0], sizes = [2, 32], strides = [1, 1]} : vector<32x32xf32> to vector<2x32xf32>
    %160 = vector.extract_strided_slice %98 {offsets = [26, 0], sizes = [2, 32], strides = [1, 1]} : vector<32x32xf32> to vector<2x32xf32>
    %161 = tpu.concatenate %159, %160 in 0 : vector<2x32xf32>, vector<2x32xf32> -> vector<4x32xf32>
    %162 = arith.addf %158, %161 : vector<4x32xf32>
    %163 = vector.extract_strided_slice %162 {offsets = [0, 0], sizes = [4, 24], strides = [1, 1]} : vector<4x32xf32> to vector<4x24xf32>
    %164 = arith.negf %163 : vector<4x24xf32>
    %165 = math.exp %164 : vector<4x24xf32>
    %cst_50 = arith.constant 1.000000e+00 : f32
    %166 = vector.broadcast %cst_50 : f32 to vector<4x24xf32>
    %167 = arith.addf %166, %165 : vector<4x24xf32>
    %168 = arith.divf %166, %167 : vector<4x24xf32>
    %169 = vector.extract_strided_slice %162 {offsets = [0, 24], sizes = [4, 8], strides = [1, 1]} : vector<4x32xf32> to vector<4x8xf32>
    %170 = math.tanh %169 : vector<4x8xf32>
    %171 = vector.extract_strided_slice %168 {offsets = [0, 8], sizes = [4, 8], strides = [1, 1]} : vector<4x24xf32> to vector<4x8xf32>
    %172 = arith.mulf %171, %148 : vector<4x8xf32>
    %173 = vector.extract_strided_slice %168 {offsets = [0, 0], sizes = [4, 8], strides = [1, 1]} : vector<4x24xf32> to vector<4x8xf32>
    %174 = arith.mulf %173, %170 : vector<4x8xf32>
    %175 = arith.addf %172, %174 : vector<4x8xf32>
    %176 = vector.extract_strided_slice %168 {offsets = [0, 16], sizes = [4, 8], strides = [1, 1]} : vector<4x24xf32> to vector<4x8xf32>
    %177 = math.tanh %175 : vector<4x8xf32>
    %178 = arith.mulf %176, %177 : vector<4x8xf32>
    %179 = vector.extract_strided_slice %178 {offsets = [0, 0], sizes = [2, 8], strides = [1, 1]} : vector<4x8xf32> to vector<2x8xf32>
    %c4 = arith.constant 4 : index
    %c0_51 = arith.constant 0 : index
    %180 = vector.load %arg18[%c4, %c0_51] : memref<32x8xf32, #tpu.memory_space<vmem>>, vector<2x8xf32>
    tpu.vector_store %arg18[%c4, %c0_51], %179 {strides = array<i32>} : memref<32x8xf32, #tpu.memory_space<vmem>>, vector<2x8xf32>,
    %181 = vector.extract_strided_slice %178 {offsets = [2, 0], sizes = [2, 8], strides = [1, 1]} : vector<4x8xf32> to vector<2x8xf32>
    %c26 = arith.constant 26 : index
    %c0_52 = arith.constant 0 : index
    %182 = vector.load %arg19[%c26, %c0_52] : memref<32x8xf32, #tpu.memory_space<vmem>>, vector<2x8xf32>
    tpu.vector_store %arg19[%c26, %c0_52], %181 {strides = array<i32>} : memref<32x8xf32, #tpu.memory_space<vmem>>, vector<2x8xf32>,
    %183 = tpu.concatenate %178, %178 in 1 : vector<4x8xf32>, vector<4x8xf32> -> vector<4x16xf32>
    %184 = arith.mulf %183, %91 : vector<4x16xf32>
    %cst_53 = arith.constant dense<0.000000e+00> : vector<4x32xf32>
    %185 = tpu.matmul %184, %99, %cst_53 {dimension_numbers = #tpu.dot_dimension_numbers<[1], [0], [0], [1], [0, 0, 1, 1], [], []>} : vector<4x16xf32>, vector<16x32xf32>, vector<4x32xf32> -> vector<4x32xf32>
    %186 = vector.extract_strided_slice %97 {offsets = [6, 0], sizes = [2, 32], strides = [1, 1]} : vector<32x32xf32> to vector<2x32xf32>
    %187 = vector.extract_strided_slice %98 {offsets = [24, 0], sizes = [2, 32], strides = [1, 1]} : vector<32x32xf32> to vector<2x32xf32>
    %188 = tpu.concatenate %186, %187 in 0 : vector<2x32xf32>, vector<2x32xf32> -> vector<4x32xf32>
    %189 = arith.addf %185, %188 : vector<4x32xf32>
    %190 = vector.extract_strided_slice %189 {offsets = [0, 0], sizes = [4, 24], strides = [1, 1]} : vector<4x32xf32> to vector<4x24xf32>
    %191 = arith.negf %190 : vector<4x24xf32>
    %192 = math.exp %191 : vector<4x24xf32>
    %cst_54 = arith.constant 1.000000e+00 : f32
    %193 = vector.broadcast %cst_54 : f32 to vector<4x24xf32>
    %194 = arith.addf %193, %192 : vector<4x24xf32>
    %195 = arith.divf %193, %194 : vector<4x24xf32>
    %196 = vector.extract_strided_slice %189 {offsets = [0, 24], sizes = [4, 8], strides = [1, 1]} : vector<4x32xf32> to vector<4x8xf32>
    %197 = math.tanh %196 : vector<4x8xf32>
    %198 = vector.extract_strided_slice %195 {offsets = [0, 8], sizes = [4, 8], strides = [1, 1]} : vector<4x24xf32> to vector<4x8xf32>
    %199 = arith.mulf %198, %175 : vector<4x8xf32>
    %200 = vector.extract_strided_slice %195 {offsets = [0, 0], sizes = [4, 8], strides = [1, 1]} : vector<4x24xf32> to vector<4x8xf32>
    %201 = arith.mulf %200, %197 : vector<4x8xf32>
    %202 = arith.addf %199, %201 : vector<4x8xf32>
    %203 = vector.extract_strided_slice %195 {offsets = [0, 16], sizes = [4, 8], strides = [1, 1]} : vector<4x24xf32> to vector<4x8xf32>
    %204 = math.tanh %202 : vector<4x8xf32>
    %205 = arith.mulf %203, %204 : vector<4x8xf32>
    %206 = vector.extract_strided_slice %205 {offsets = [0, 0], sizes = [2, 8], strides = [1, 1]} : vector<4x8xf32> to vector<2x8xf32>
    %c6 = arith.constant 6 : index
    %c0_55 = arith.constant 0 : index
    %207 = vector.load %arg18[%c6, %c0_55] : memref<32x8xf32, #tpu.memory_space<vmem>>, vector<2x8xf32>
    tpu.vector_store %arg18[%c6, %c0_55], %206 {strides = array<i32>} : memref<32x8xf32, #tpu.memory_space<vmem>>, vector<2x8xf32>,
    %208 = vector.extract_strided_slice %205 {offsets = [2, 0], sizes = [2, 8], strides = [1, 1]} : vector<4x8xf32> to vector<2x8xf32>
    %c24 = arith.constant 24 : index
    %c0_56 = arith.constant 0 : index
    %209 = vector.load %arg19[%c24, %c0_56] : memref<32x8xf32, #tpu.memory_space<vmem>>, vector<2x8xf32>
    tpu.vector_store %arg19[%c24, %c0_56], %208 {strides = array<i32>} : memref<32x8xf32, #tpu.memory_space<vmem>>, vector<2x8xf32>,
    %210 = tpu.concatenate %205, %205 in 1 : vector<4x8xf32>, vector<4x8xf32> -> vector<4x16xf32>
    %211 = arith.mulf %210, %91 : vector<4x16xf32>
    %cst_57 = arith.constant dense<0.000000e+00> : vector<4x32xf32>
    %212 = tpu.matmul %211, %99, %cst_57 {dimension_numbers = #tpu.dot_dimension_numbers<[1], [0], [0], [1], [0, 0, 1, 1], [], []>} : vector<4x16xf32>, vector<16x32xf32>, vector<4x32xf32> -> vector<4x32xf32>
    %213 = vector.extract_strided_slice %97 {offsets = [8, 0], sizes = [2, 32], strides = [1, 1]} : vector<32x32xf32> to vector<2x32xf32>
    %214 = vector.extract_strided_slice %98 {offsets = [22, 0], sizes = [2, 32], strides = [1, 1]} : vector<32x32xf32> to vector<2x32xf32>
    %215 = tpu.concatenate %213, %214 in 0 : vector<2x32xf32>, vector<2x32xf32> -> vector<4x32xf32>
    %216 = arith.addf %212, %215 : vector<4x32xf32>
    %217 = vector.extract_strided_slice %216 {offsets = [0, 0], sizes = [4, 24], strides = [1, 1]} : vector<4x32xf32> to vector<4x24xf32>
    %218 = arith.negf %217 : vector<4x24xf32>
    %219 = math.exp %218 : vector<4x24xf32>
    %cst_58 = arith.constant 1.000000e+00 : f32
    %220 = vector.broadcast %cst_58 : f32 to vector<4x24xf32>
    %221 = arith.addf %220, %219 : vector<4x24xf32>
    %222 = arith.divf %220, %221 : vector<4x24xf32>
    %223 = vector.extract_strided_slice %216 {offsets = [0, 24], sizes = [4, 8], strides = [1, 1]} : vector<4x32xf32> to vector<4x8xf32>
    %224 = math.tanh %223 : vector<4x8xf32>
    %225 = vector.extract_strided_slice %222 {offsets = [0, 8], sizes = [4, 8], strides = [1, 1]} : vector<4x24xf32> to vector<4x8xf32>
    %226 = arith.mulf %225, %202 : vector<4x8xf32>
    %227 = vector.extract_strided_slice %222 {offsets = [0, 0], sizes = [4, 8], strides = [1, 1]} : vector<4x24xf32> to vector<4x8xf32>
    %228 = arith.mulf %227, %224 : vector<4x8xf32>
    %229 = arith.addf %226, %228 : vector<4x8xf32>
    %230 = vector.extract_strided_slice %222 {offsets = [0, 16], sizes = [4, 8], strides = [1, 1]} : vector<4x24xf32> to vector<4x8xf32>
    %231 = math.tanh %229 : vector<4x8xf32>
    %232 = arith.mulf %230, %231 : vector<4x8xf32>
    %233 = vector.extract_strided_slice %232 {offsets = [0, 0], sizes = [2, 8], strides = [1, 1]} : vector<4x8xf32> to vector<2x8xf32>
    %c8 = arith.constant 8 : index
    %c0_59 = arith.constant 0 : index
    %234 = vector.load %arg18[%c8, %c0_59] : memref<32x8xf32, #tpu.memory_space<vmem>>, vector<2x8xf32>
    tpu.vector_store %arg18[%c8, %c0_59], %233 {strides = array<i32>} : memref<32x8xf32, #tpu.memory_space<vmem>>, vector<2x8xf32>,
    %235 = vector.extract_strided_slice %232 {offsets = [2, 0], sizes = [2, 8], strides = [1, 1]} : vector<4x8xf32> to vector<2x8xf32>
    %c22 = arith.constant 22 : index
    %c0_60 = arith.constant 0 : index
    %236 = vector.load %arg19[%c22, %c0_60] : memref<32x8xf32, #tpu.memory_space<vmem>>, vector<2x8xf32>
    tpu.vector_store %arg19[%c22, %c0_60], %235 {strides = array<i32>} : memref<32x8xf32, #tpu.memory_space<vmem>>, vector<2x8xf32>,
    %237 = tpu.concatenate %232, %232 in 1 : vector<4x8xf32>, vector<4x8xf32> -> vector<4x16xf32>
    %238 = arith.mulf %237, %91 : vector<4x16xf32>
    %cst_61 = arith.constant dense<0.000000e+00> : vector<4x32xf32>
    %239 = tpu.matmul %238, %99, %cst_61 {dimension_numbers = #tpu.dot_dimension_numbers<[1], [0], [0], [1], [0, 0, 1, 1], [], []>} : vector<4x16xf32>, vector<16x32xf32>, vector<4x32xf32> -> vector<4x32xf32>
    %240 = vector.extract_strided_slice %97 {offsets = [10, 0], sizes = [2, 32], strides = [1, 1]} : vector<32x32xf32> to vector<2x32xf32>
    %241 = vector.extract_strided_slice %98 {offsets = [20, 0], sizes = [2, 32], strides = [1, 1]} : vector<32x32xf32> to vector<2x32xf32>
    %242 = tpu.concatenate %240, %241 in 0 : vector<2x32xf32>, vector<2x32xf32> -> vector<4x32xf32>
    %243 = arith.addf %239, %242 : vector<4x32xf32>
    %244 = vector.extract_strided_slice %243 {offsets = [0, 0], sizes = [4, 24], strides = [1, 1]} : vector<4x32xf32> to vector<4x24xf32>
    %245 = arith.negf %244 : vector<4x24xf32>
    %246 = math.exp %245 : vector<4x24xf32>
    %cst_62 = arith.constant 1.000000e+00 : f32
    %247 = vector.broadcast %cst_62 : f32 to vector<4x24xf32>
    %248 = arith.addf %247, %246 : vector<4x24xf32>
    %249 = arith.divf %247, %248 : vector<4x24xf32>
    %250 = vector.extract_strided_slice %243 {offsets = [0, 24], sizes = [4, 8], strides = [1, 1]} : vector<4x32xf32> to vector<4x8xf32>
    %251 = math.tanh %250 : vector<4x8xf32>
    %252 = vector.extract_strided_slice %249 {offsets = [0, 8], sizes = [4, 8], strides = [1, 1]} : vector<4x24xf32> to vector<4x8xf32>
    %253 = arith.mulf %252, %229 : vector<4x8xf32>
    %254 = vector.extract_strided_slice %249 {offsets = [0, 0], sizes = [4, 8], strides = [1, 1]} : vector<4x24xf32> to vector<4x8xf32>
    %255 = arith.mulf %254, %251 : vector<4x8xf32>
    %256 = arith.addf %253, %255 : vector<4x8xf32>
    %257 = vector.extract_strided_slice %249 {offsets = [0, 16], sizes = [4, 8], strides = [1, 1]} : vector<4x24xf32> to vector<4x8xf32>
    %258 = math.tanh %256 : vector<4x8xf32>
    %259 = arith.mulf %257, %258 : vector<4x8xf32>
    %260 = vector.extract_strided_slice %259 {offsets = [0, 0], sizes = [2, 8], strides = [1, 1]} : vector<4x8xf32> to vector<2x8xf32>
    %c10 = arith.constant 10 : index
    %c0_63 = arith.constant 0 : index
    %261 = vector.load %arg18[%c10, %c0_63] : memref<32x8xf32, #tpu.memory_space<vmem>>, vector<2x8xf32>
    tpu.vector_store %arg18[%c10, %c0_63], %260 {strides = array<i32>} : memref<32x8xf32, #tpu.memory_space<vmem>>, vector<2x8xf32>,
    %262 = vector.extract_strided_slice %259 {offsets = [2, 0], sizes = [2, 8], strides = [1, 1]} : vector<4x8xf32> to vector<2x8xf32>
    %c20 = arith.constant 20 : index
    %c0_64 = arith.constant 0 : index
    %263 = vector.load %arg19[%c20, %c0_64] : memref<32x8xf32, #tpu.memory_space<vmem>>, vector<2x8xf32>
    tpu.vector_store %arg19[%c20, %c0_64], %262 {strides = array<i32>} : memref<32x8xf32, #tpu.memory_space<vmem>>, vector<2x8xf32>,
    %264 = tpu.concatenate %259, %259 in 1 : vector<4x8xf32>, vector<4x8xf32> -> vector<4x16xf32>
    %265 = arith.mulf %264, %91 : vector<4x16xf32>
    %cst_65 = arith.constant dense<0.000000e+00> : vector<4x32xf32>
    %266 = tpu.matmul %265, %99, %cst_65 {dimension_numbers = #tpu.dot_dimension_numbers<[1], [0], [0], [1], [0, 0, 1, 1], [], []>} : vector<4x16xf32>, vector<16x32xf32>, vector<4x32xf32> -> vector<4x32xf32>
    %267 = vector.extract_strided_slice %97 {offsets = [12, 0], sizes = [2, 32], strides = [1, 1]} : vector<32x32xf32> to vector<2x32xf32>
    %268 = vector.extract_strided_slice %98 {offsets = [18, 0], sizes = [2, 32], strides = [1, 1]} : vector<32x32xf32> to vector<2x32xf32>
    %269 = tpu.concatenate %267, %268 in 0 : vector<2x32xf32>, vector<2x32xf32> -> vector<4x32xf32>
    %270 = arith.addf %266, %269 : vector<4x32xf32>
    %271 = vector.extract_strided_slice %270 {offsets = [0, 0], sizes = [4, 24], strides = [1, 1]} : vector<4x32xf32> to vector<4x24xf32>
    %272 = arith.negf %271 : vector<4x24xf32>
    %273 = math.exp %272 : vector<4x24xf32>
    %cst_66 = arith.constant 1.000000e+00 : f32
    %274 = vector.broadcast %cst_66 : f32 to vector<4x24xf32>
    %275 = arith.addf %274, %273 : vector<4x24xf32>
    %276 = arith.divf %274, %275 : vector<4x24xf32>
    %277 = vector.extract_strided_slice %270 {offsets = [0, 24], sizes = [4, 8], strides = [1, 1]} : vector<4x32xf32> to vector<4x8xf32>
    %278 = math.tanh %277 : vector<4x8xf32>
    %279 = vector.extract_strided_slice %276 {offsets = [0, 8], sizes = [4, 8], strides = [1, 1]} : vector<4x24xf32> to vector<4x8xf32>
    %280 = arith.mulf %279, %256 : vector<4x8xf32>
    %281 = vector.extract_strided_slice %276 {offsets = [0, 0], sizes = [4, 8], strides = [1, 1]} : vector<4x24xf32> to vector<4x8xf32>
    %282 = arith.mulf %281, %278 : vector<4x8xf32>
    %283 = arith.addf %280, %282 : vector<4x8xf32>
    %284 = vector.extract_strided_slice %276 {offsets = [0, 16], sizes = [4, 8], strides = [1, 1]} : vector<4x24xf32> to vector<4x8xf32>
    %285 = math.tanh %283 : vector<4x8xf32>
    %286 = arith.mulf %284, %285 : vector<4x8xf32>
    %287 = vector.extract_strided_slice %286 {offsets = [0, 0], sizes = [2, 8], strides = [1, 1]} : vector<4x8xf32> to vector<2x8xf32>
    %c12 = arith.constant 12 : index
    %c0_67 = arith.constant 0 : index
    %288 = vector.load %arg18[%c12, %c0_67] : memref<32x8xf32, #tpu.memory_space<vmem>>, vector<2x8xf32>
    tpu.vector_store %arg18[%c12, %c0_67], %287 {strides = array<i32>} : memref<32x8xf32, #tpu.memory_space<vmem>>, vector<2x8xf32>,
    %289 = vector.extract_strided_slice %286 {offsets = [2, 0], sizes = [2, 8], strides = [1, 1]} : vector<4x8xf32> to vector<2x8xf32>
    %c18 = arith.constant 18 : index
    %c0_68 = arith.constant 0 : index
    %290 = vector.load %arg19[%c18, %c0_68] : memref<32x8xf32, #tpu.memory_space<vmem>>, vector<2x8xf32>
    tpu.vector_store %arg19[%c18, %c0_68], %289 {strides = array<i32>} : memref<32x8xf32, #tpu.memory_space<vmem>>, vector<2x8xf32>,
    %291 = tpu.concatenate %286, %286 in 1 : vector<4x8xf32>, vector<4x8xf32> -> vector<4x16xf32>
    %292 = arith.mulf %291, %91 : vector<4x16xf32>
    %cst_69 = arith.constant dense<0.000000e+00> : vector<4x32xf32>
    %293 = tpu.matmul %292, %99, %cst_69 {dimension_numbers = #tpu.dot_dimension_numbers<[1], [0], [0], [1], [0, 0, 1, 1], [], []>} : vector<4x16xf32>, vector<16x32xf32>, vector<4x32xf32> -> vector<4x32xf32>
    %294 = vector.extract_strided_slice %97 {offsets = [14, 0], sizes = [2, 32], strides = [1, 1]} : vector<32x32xf32> to vector<2x32xf32>
    %295 = vector.extract_strided_slice %98 {offsets = [16, 0], sizes = [2, 32], strides = [1, 1]} : vector<32x32xf32> to vector<2x32xf32>
    %296 = tpu.concatenate %294, %295 in 0 : vector<2x32xf32>, vector<2x32xf32> -> vector<4x32xf32>
    %297 = arith.addf %293, %296 : vector<4x32xf32>
    %298 = vector.extract_strided_slice %297 {offsets = [0, 0], sizes = [4, 24], strides = [1, 1]} : vector<4x32xf32> to vector<4x24xf32>
    %299 = arith.negf %298 : vector<4x24xf32>
    %300 = math.exp %299 : vector<4x24xf32>
    %cst_70 = arith.constant 1.000000e+00 : f32
    %301 = vector.broadcast %cst_70 : f32 to vector<4x24xf32>
    %302 = arith.addf %301, %300 : vector<4x24xf32>
    %303 = arith.divf %301, %302 : vector<4x24xf32>
    %304 = vector.extract_strided_slice %297 {offsets = [0, 24], sizes = [4, 8], strides = [1, 1]} : vector<4x32xf32> to vector<4x8xf32>
    %305 = math.tanh %304 : vector<4x8xf32>
    %306 = vector.extract_strided_slice %303 {offsets = [0, 8], sizes = [4, 8], strides = [1, 1]} : vector<4x24xf32> to vector<4x8xf32>
    %307 = arith.mulf %306, %283 : vector<4x8xf32>
    %308 = vector.extract_strided_slice %303 {offsets = [0, 0], sizes = [4, 8], strides = [1, 1]} : vector<4x24xf32> to vector<4x8xf32>
    %309 = arith.mulf %308, %305 : vector<4x8xf32>
    %310 = arith.addf %307, %309 : vector<4x8xf32>
    %311 = vector.extract_strided_slice %303 {offsets = [0, 16], sizes = [4, 8], strides = [1, 1]} : vector<4x24xf32> to vector<4x8xf32>
    %312 = math.tanh %310 : vector<4x8xf32>
    %313 = arith.mulf %311, %312 : vector<4x8xf32>
    %314 = vector.extract_strided_slice %313 {offsets = [0, 0], sizes = [2, 8], strides = [1, 1]} : vector<4x8xf32> to vector<2x8xf32>
    %c14 = arith.constant 14 : index
    %c0_71 = arith.constant 0 : index
    %315 = vector.load %arg18[%c14, %c0_71] : memref<32x8xf32, #tpu.memory_space<vmem>>, vector<2x8xf32>
    tpu.vector_store %arg18[%c14, %c0_71], %314 {strides = array<i32>} : memref<32x8xf32, #tpu.memory_space<vmem>>, vector<2x8xf32>,
    %316 = vector.extract_strided_slice %313 {offsets = [2, 0], sizes = [2, 8], strides = [1, 1]} : vector<4x8xf32> to vector<2x8xf32>
    %c16 = arith.constant 16 : index
    %c0_72 = arith.constant 0 : index
    %317 = vector.load %arg19[%c16, %c0_72] : memref<32x8xf32, #tpu.memory_space<vmem>>, vector<2x8xf32>
    tpu.vector_store %arg19[%c16, %c0_72], %316 {strides = array<i32>} : memref<32x8xf32, #tpu.memory_space<vmem>>, vector<2x8xf32>,
    %318 = tpu.concatenate %313, %313 in 1 : vector<4x8xf32>, vector<4x8xf32> -> vector<4x16xf32>
    %319 = arith.mulf %318, %91 : vector<4x16xf32>
    %cst_73 = arith.constant dense<0.000000e+00> : vector<4x32xf32>
    %320 = tpu.matmul %319, %99, %cst_73 {dimension_numbers = #tpu.dot_dimension_numbers<[1], [0], [0], [1], [0, 0, 1, 1], [], []>} : vector<4x16xf32>, vector<16x32xf32>, vector<4x32xf32> -> vector<4x32xf32>
    %321 = vector.extract_strided_slice %97 {offsets = [16, 0], sizes = [2, 32], strides = [1, 1]} : vector<32x32xf32> to vector<2x32xf32>
    %322 = vector.extract_strided_slice %98 {offsets = [14, 0], sizes = [2, 32], strides = [1, 1]} : vector<32x32xf32> to vector<2x32xf32>
    %323 = tpu.concatenate %321, %322 in 0 : vector<2x32xf32>, vector<2x32xf32> -> vector<4x32xf32>
    %324 = arith.addf %320, %323 : vector<4x32xf32>
    %325 = vector.extract_strided_slice %324 {offsets = [0, 0], sizes = [4, 24], strides = [1, 1]} : vector<4x32xf32> to vector<4x24xf32>
    %326 = arith.negf %325 : vector<4x24xf32>
    %327 = math.exp %326 : vector<4x24xf32>
    %cst_74 = arith.constant 1.000000e+00 : f32
    %328 = vector.broadcast %cst_74 : f32 to vector<4x24xf32>
    %329 = arith.addf %328, %327 : vector<4x24xf32>
    %330 = arith.divf %328, %329 : vector<4x24xf32>
    %331 = vector.extract_strided_slice %324 {offsets = [0, 24], sizes = [4, 8], strides = [1, 1]} : vector<4x32xf32> to vector<4x8xf32>
    %332 = math.tanh %331 : vector<4x8xf32>
    %333 = vector.extract_strided_slice %330 {offsets = [0, 8], sizes = [4, 8], strides = [1, 1]} : vector<4x24xf32> to vector<4x8xf32>
    %334 = arith.mulf %333, %310 : vector<4x8xf32>
    %335 = vector.extract_strided_slice %330 {offsets = [0, 0], sizes = [4, 8], strides = [1, 1]} : vector<4x24xf32> to vector<4x8xf32>
    %336 = arith.mulf %335, %332 : vector<4x8xf32>
    %337 = arith.addf %334, %336 : vector<4x8xf32>
    %338 = vector.extract_strided_slice %330 {offsets = [0, 16], sizes = [4, 8], strides = [1, 1]} : vector<4x24xf32> to vector<4x8xf32>
    %339 = math.tanh %337 : vector<4x8xf32>
    %340 = arith.mulf %338, %339 : vector<4x8xf32>
    %341 = vector.extract_strided_slice %340 {offsets = [0, 0], sizes = [2, 8], strides = [1, 1]} : vector<4x8xf32> to vector<2x8xf32>
    %c16_75 = arith.constant 16 : index
    %c0_76 = arith.constant 0 : index
    %342 = vector.load %arg18[%c16_75, %c0_76] : memref<32x8xf32, #tpu.memory_space<vmem>>, vector<2x8xf32>
    tpu.vector_store %arg18[%c16_75, %c0_76], %341 {strides = array<i32>} : memref<32x8xf32, #tpu.memory_space<vmem>>, vector<2x8xf32>,
    %343 = vector.extract_strided_slice %340 {offsets = [2, 0], sizes = [2, 8], strides = [1, 1]} : vector<4x8xf32> to vector<2x8xf32>
    %c14_77 = arith.constant 14 : index
    %c0_78 = arith.constant 0 : index
    %344 = vector.load %arg19[%c14_77, %c0_78] : memref<32x8xf32, #tpu.memory_space<vmem>>, vector<2x8xf32>
    tpu.vector_store %arg19[%c14_77, %c0_78], %343 {strides = array<i32>} : memref<32x8xf32, #tpu.memory_space<vmem>>, vector<2x8xf32>,
    %345 = tpu.concatenate %340, %340 in 1 : vector<4x8xf32>, vector<4x8xf32> -> vector<4x16xf32>
    %346 = arith.mulf %345, %91 : vector<4x16xf32>
    %cst_79 = arith.constant dense<0.000000e+00> : vector<4x32xf32>
    %347 = tpu.matmul %346, %99, %cst_79 {dimension_numbers = #tpu.dot_dimension_numbers<[1], [0], [0], [1], [0, 0, 1, 1], [], []>} : vector<4x16xf32>, vector<16x32xf32>, vector<4x32xf32> -> vector<4x32xf32>
    %348 = vector.extract_strided_slice %97 {offsets = [18, 0], sizes = [2, 32], strides = [1, 1]} : vector<32x32xf32> to vector<2x32xf32>
    %349 = vector.extract_strided_slice %98 {offsets = [12, 0], sizes = [2, 32], strides = [1, 1]} : vector<32x32xf32> to vector<2x32xf32>
    %350 = tpu.concatenate %348, %349 in 0 : vector<2x32xf32>, vector<2x32xf32> -> vector<4x32xf32>
    %351 = arith.addf %347, %350 : vector<4x32xf32>
    %352 = vector.extract_strided_slice %351 {offsets = [0, 0], sizes = [4, 24], strides = [1, 1]} : vector<4x32xf32> to vector<4x24xf32>
    %353 = arith.negf %352 : vector<4x24xf32>
    %354 = math.exp %353 : vector<4x24xf32>
    %cst_80 = arith.constant 1.000000e+00 : f32
    %355 = vector.broadcast %cst_80 : f32 to vector<4x24xf32>
    %356 = arith.addf %355, %354 : vector<4x24xf32>
    %357 = arith.divf %355, %356 : vector<4x24xf32>
    %358 = vector.extract_strided_slice %351 {offsets = [0, 24], sizes = [4, 8], strides = [1, 1]} : vector<4x32xf32> to vector<4x8xf32>
    %359 = math.tanh %358 : vector<4x8xf32>
    %360 = vector.extract_strided_slice %357 {offsets = [0, 8], sizes = [4, 8], strides = [1, 1]} : vector<4x24xf32> to vector<4x8xf32>
    %361 = arith.mulf %360, %337 : vector<4x8xf32>
    %362 = vector.extract_strided_slice %357 {offsets = [0, 0], sizes = [4, 8], strides = [1, 1]} : vector<4x24xf32> to vector<4x8xf32>
    %363 = arith.mulf %362, %359 : vector<4x8xf32>
    %364 = arith.addf %361, %363 : vector<4x8xf32>
    %365 = vector.extract_strided_slice %357 {offsets = [0, 16], sizes = [4, 8], strides = [1, 1]} : vector<4x24xf32> to vector<4x8xf32>
    %366 = math.tanh %364 : vector<4x8xf32>
    %367 = arith.mulf %365, %366 : vector<4x8xf32>
    %368 = vector.extract_strided_slice %367 {offsets = [0, 0], sizes = [2, 8], strides = [1, 1]} : vector<4x8xf32> to vector<2x8xf32>
    %c18_81 = arith.constant 18 : index
    %c0_82 = arith.constant 0 : index
    %369 = vector.load %arg18[%c18_81, %c0_82] : memref<32x8xf32, #tpu.memory_space<vmem>>, vector<2x8xf32>
    tpu.vector_store %arg18[%c18_81, %c0_82], %368 {strides = array<i32>} : memref<32x8xf32, #tpu.memory_space<vmem>>, vector<2x8xf32>,
    %370 = vector.extract_strided_slice %367 {offsets = [2, 0], sizes = [2, 8], strides = [1, 1]} : vector<4x8xf32> to vector<2x8xf32>
    %c12_83 = arith.constant 12 : index
    %c0_84 = arith.constant 0 : index
    %371 = vector.load %arg19[%c12_83, %c0_84] : memref<32x8xf32, #tpu.memory_space<vmem>>, vector<2x8xf32>
    tpu.vector_store %arg19[%c12_83, %c0_84], %370 {strides = array<i32>} : memref<32x8xf32, #tpu.memory_space<vmem>>, vector<2x8xf32>,
    %372 = tpu.concatenate %367, %367 in 1 : vector<4x8xf32>, vector<4x8xf32> -> vector<4x16xf32>
    %373 = arith.mulf %372, %91 : vector<4x16xf32>
    %cst_85 = arith.constant dense<0.000000e+00> : vector<4x32xf32>
    %374 = tpu.matmul %373, %99, %cst_85 {dimension_numbers = #tpu.dot_dimension_numbers<[1], [0], [0], [1], [0, 0, 1, 1], [], []>} : vector<4x16xf32>, vector<16x32xf32>, vector<4x32xf32> -> vector<4x32xf32>
    %375 = vector.extract_strided_slice %97 {offsets = [20, 0], sizes = [2, 32], strides = [1, 1]} : vector<32x32xf32> to vector<2x32xf32>
    %376 = vector.extract_strided_slice %98 {offsets = [10, 0], sizes = [2, 32], strides = [1, 1]} : vector<32x32xf32> to vector<2x32xf32>
    %377 = tpu.concatenate %375, %376 in 0 : vector<2x32xf32>, vector<2x32xf32> -> vector<4x32xf32>
    %378 = arith.addf %374, %377 : vector<4x32xf32>
    %379 = vector.extract_strided_slice %378 {offsets = [0, 0], sizes = [4, 24], strides = [1, 1]} : vector<4x32xf32> to vector<4x24xf32>
    %380 = arith.negf %379 : vector<4x24xf32>
    %381 = math.exp %380 : vector<4x24xf32>
    %cst_86 = arith.constant 1.000000e+00 : f32
    %382 = vector.broadcast %cst_86 : f32 to vector<4x24xf32>
    %383 = arith.addf %382, %381 : vector<4x24xf32>
    %384 = arith.divf %382, %383 : vector<4x24xf32>
    %385 = vector.extract_strided_slice %378 {offsets = [0, 24], sizes = [4, 8], strides = [1, 1]} : vector<4x32xf32> to vector<4x8xf32>
    %386 = math.tanh %385 : vector<4x8xf32>
    %387 = vector.extract_strided_slice %384 {offsets = [0, 8], sizes = [4, 8], strides = [1, 1]} : vector<4x24xf32> to vector<4x8xf32>
    %388 = arith.mulf %387, %364 : vector<4x8xf32>
    %389 = vector.extract_strided_slice %384 {offsets = [0, 0], sizes = [4, 8], strides = [1, 1]} : vector<4x24xf32> to vector<4x8xf32>
    %390 = arith.mulf %389, %386 : vector<4x8xf32>
    %391 = arith.addf %388, %390 : vector<4x8xf32>
    %392 = vector.extract_strided_slice %384 {offsets = [0, 16], sizes = [4, 8], strides = [1, 1]} : vector<4x24xf32> to vector<4x8xf32>
    %393 = math.tanh %391 : vector<4x8xf32>
    %394 = arith.mulf %392, %393 : vector<4x8xf32>
    %395 = vector.extract_strided_slice %394 {offsets = [0, 0], sizes = [2, 8], strides = [1, 1]} : vector<4x8xf32> to vector<2x8xf32>
    %c20_87 = arith.constant 20 : index
    %c0_88 = arith.constant 0 : index
    %396 = vector.load %arg18[%c20_87, %c0_88] : memref<32x8xf32, #tpu.memory_space<vmem>>, vector<2x8xf32>
    tpu.vector_store %arg18[%c20_87, %c0_88], %395 {strides = array<i32>} : memref<32x8xf32, #tpu.memory_space<vmem>>, vector<2x8xf32>,
    %397 = vector.extract_strided_slice %394 {offsets = [2, 0], sizes = [2, 8], strides = [1, 1]} : vector<4x8xf32> to vector<2x8xf32>
    %c10_89 = arith.constant 10 : index
    %c0_90 = arith.constant 0 : index
    %398 = vector.load %arg19[%c10_89, %c0_90] : memref<32x8xf32, #tpu.memory_space<vmem>>, vector<2x8xf32>
    tpu.vector_store %arg19[%c10_89, %c0_90], %397 {strides = array<i32>} : memref<32x8xf32, #tpu.memory_space<vmem>>, vector<2x8xf32>,
    %399 = tpu.concatenate %394, %394 in 1 : vector<4x8xf32>, vector<4x8xf32> -> vector<4x16xf32>
    %400 = arith.mulf %399, %91 : vector<4x16xf32>
    %cst_91 = arith.constant dense<0.000000e+00> : vector<4x32xf32>
    %401 = tpu.matmul %400, %99, %cst_91 {dimension_numbers = #tpu.dot_dimension_numbers<[1], [0], [0], [1], [0, 0, 1, 1], [], []>} : vector<4x16xf32>, vector<16x32xf32>, vector<4x32xf32> -> vector<4x32xf32>
    %402 = vector.extract_strided_slice %97 {offsets = [22, 0], sizes = [2, 32], strides = [1, 1]} : vector<32x32xf32> to vector<2x32xf32>
    %403 = vector.extract_strided_slice %98 {offsets = [8, 0], sizes = [2, 32], strides = [1, 1]} : vector<32x32xf32> to vector<2x32xf32>
    %404 = tpu.concatenate %402, %403 in 0 : vector<2x32xf32>, vector<2x32xf32> -> vector<4x32xf32>
    %405 = arith.addf %401, %404 : vector<4x32xf32>
    %406 = vector.extract_strided_slice %405 {offsets = [0, 0], sizes = [4, 24], strides = [1, 1]} : vector<4x32xf32> to vector<4x24xf32>
    %407 = arith.negf %406 : vector<4x24xf32>
    %408 = math.exp %407 : vector<4x24xf32>
    %cst_92 = arith.constant 1.000000e+00 : f32
    %409 = vector.broadcast %cst_92 : f32 to vector<4x24xf32>
    %410 = arith.addf %409, %408 : vector<4x24xf32>
    %411 = arith.divf %409, %410 : vector<4x24xf32>
    %412 = vector.extract_strided_slice %405 {offsets = [0, 24], sizes = [4, 8], strides = [1, 1]} : vector<4x32xf32> to vector<4x8xf32>
    %413 = math.tanh %412 : vector<4x8xf32>
    %414 = vector.extract_strided_slice %411 {offsets = [0, 8], sizes = [4, 8], strides = [1, 1]} : vector<4x24xf32> to vector<4x8xf32>
    %415 = arith.mulf %414, %391 : vector<4x8xf32>
    %416 = vector.extract_strided_slice %411 {offsets = [0, 0], sizes = [4, 8], strides = [1, 1]} : vector<4x24xf32> to vector<4x8xf32>
    %417 = arith.mulf %416, %413 : vector<4x8xf32>
    %418 = arith.addf %415, %417 : vector<4x8xf32>
    %419 = vector.extract_strided_slice %411 {offsets = [0, 16], sizes = [4, 8], strides = [1, 1]} : vector<4x24xf32> to vector<4x8xf32>
    %420 = math.tanh %418 : vector<4x8xf32>
    %421 = arith.mulf %419, %420 : vector<4x8xf32>
    %422 = vector.extract_strided_slice %421 {offsets = [0, 0], sizes = [2, 8], strides = [1, 1]} : vector<4x8xf32> to vector<2x8xf32>
    %c22_93 = arith.constant 22 : index
    %c0_94 = arith.constant 0 : index
    %423 = vector.load %arg18[%c22_93, %c0_94] : memref<32x8xf32, #tpu.memory_space<vmem>>, vector<2x8xf32>
    tpu.vector_store %arg18[%c22_93, %c0_94], %422 {strides = array<i32>} : memref<32x8xf32, #tpu.memory_space<vmem>>, vector<2x8xf32>,
    %424 = vector.extract_strided_slice %421 {offsets = [2, 0], sizes = [2, 8], strides = [1, 1]} : vector<4x8xf32> to vector<2x8xf32>
    %c8_95 = arith.constant 8 : index
    %c0_96 = arith.constant 0 : index
    %425 = vector.load %arg19[%c8_95, %c0_96] : memref<32x8xf32, #tpu.memory_space<vmem>>, vector<2x8xf32>
    tpu.vector_store %arg19[%c8_95, %c0_96], %424 {strides = array<i32>} : memref<32x8xf32, #tpu.memory_space<vmem>>, vector<2x8xf32>,
    %426 = tpu.concatenate %421, %421 in 1 : vector<4x8xf32>, vector<4x8xf32> -> vector<4x16xf32>
    %427 = arith.mulf %426, %91 : vector<4x16xf32>
    %cst_97 = arith.constant dense<0.000000e+00> : vector<4x32xf32>
    %428 = tpu.matmul %427, %99, %cst_97 {dimension_numbers = #tpu.dot_dimension_numbers<[1], [0], [0], [1], [0, 0, 1, 1], [], []>} : vector<4x16xf32>, vector<16x32xf32>, vector<4x32xf32> -> vector<4x32xf32>
    %429 = vector.extract_strided_slice %97 {offsets = [24, 0], sizes = [2, 32], strides = [1, 1]} : vector<32x32xf32> to vector<2x32xf32>
    %430 = vector.extract_strided_slice %98 {offsets = [6, 0], sizes = [2, 32], strides = [1, 1]} : vector<32x32xf32> to vector<2x32xf32>
    %431 = tpu.concatenate %429, %430 in 0 : vector<2x32xf32>, vector<2x32xf32> -> vector<4x32xf32>
    %432 = arith.addf %428, %431 : vector<4x32xf32>
    %433 = vector.extract_strided_slice %432 {offsets = [0, 0], sizes = [4, 24], strides = [1, 1]} : vector<4x32xf32> to vector<4x24xf32>
    %434 = arith.negf %433 : vector<4x24xf32>
    %435 = math.exp %434 : vector<4x24xf32>
    %cst_98 = arith.constant 1.000000e+00 : f32
    %436 = vector.broadcast %cst_98 : f32 to vector<4x24xf32>
    %437 = arith.addf %436, %435 : vector<4x24xf32>
    %438 = arith.divf %436, %437 : vector<4x24xf32>
    %439 = vector.extract_strided_slice %432 {offsets = [0, 24], sizes = [4, 8], strides = [1, 1]} : vector<4x32xf32> to vector<4x8xf32>
    %440 = math.tanh %439 : vector<4x8xf32>
    %441 = vector.extract_strided_slice %438 {offsets = [0, 8], sizes = [4, 8], strides = [1, 1]} : vector<4x24xf32> to vector<4x8xf32>
    %442 = arith.mulf %441, %418 : vector<4x8xf32>
    %443 = vector.extract_strided_slice %438 {offsets = [0, 0], sizes = [4, 8], strides = [1, 1]} : vector<4x24xf32> to vector<4x8xf32>
    %444 = arith.mulf %443, %440 : vector<4x8xf32>
    %445 = arith.addf %442, %444 : vector<4x8xf32>
    %446 = vector.extract_strided_slice %438 {offsets = [0, 16], sizes = [4, 8], strides = [1, 1]} : vector<4x24xf32> to vector<4x8xf32>
    %447 = math.tanh %445 : vector<4x8xf32>
    %448 = arith.mulf %446, %447 : vector<4x8xf32>
    %449 = vector.extract_strided_slice %448 {offsets = [0, 0], sizes = [2, 8], strides = [1, 1]} : vector<4x8xf32> to vector<2x8xf32>
    %c24_99 = arith.constant 24 : index
    %c0_100 = arith.constant 0 : index
    %450 = vector.load %arg18[%c24_99, %c0_100] : memref<32x8xf32, #tpu.memory_space<vmem>>, vector<2x8xf32>
    tpu.vector_store %arg18[%c24_99, %c0_100], %449 {strides = array<i32>} : memref<32x8xf32, #tpu.memory_space<vmem>>, vector<2x8xf32>,
    %451 = vector.extract_strided_slice %448 {offsets = [2, 0], sizes = [2, 8], strides = [1, 1]} : vector<4x8xf32> to vector<2x8xf32>
    %c6_101 = arith.constant 6 : index
    %c0_102 = arith.constant 0 : index
    %452 = vector.load %arg19[%c6_101, %c0_102] : memref<32x8xf32, #tpu.memory_space<vmem>>, vector<2x8xf32>
    tpu.vector_store %arg19[%c6_101, %c0_102], %451 {strides = array<i32>} : memref<32x8xf32, #tpu.memory_space<vmem>>, vector<2x8xf32>,
    %453 = tpu.concatenate %448, %448 in 1 : vector<4x8xf32>, vector<4x8xf32> -> vector<4x16xf32>
    %454 = arith.mulf %453, %91 : vector<4x16xf32>
    %cst_103 = arith.constant dense<0.000000e+00> : vector<4x32xf32>
    %455 = tpu.matmul %454, %99, %cst_103 {dimension_numbers = #tpu.dot_dimension_numbers<[1], [0], [0], [1], [0, 0, 1, 1], [], []>} : vector<4x16xf32>, vector<16x32xf32>, vector<4x32xf32> -> vector<4x32xf32>
    %456 = vector.extract_strided_slice %97 {offsets = [26, 0], sizes = [2, 32], strides = [1, 1]} : vector<32x32xf32> to vector<2x32xf32>
    %457 = vector.extract_strided_slice %98 {offsets = [4, 0], sizes = [2, 32], strides = [1, 1]} : vector<32x32xf32> to vector<2x32xf32>
    %458 = tpu.concatenate %456, %457 in 0 : vector<2x32xf32>, vector<2x32xf32> -> vector<4x32xf32>
    %459 = arith.addf %455, %458 : vector<4x32xf32>
    %460 = vector.extract_strided_slice %459 {offsets = [0, 0], sizes = [4, 24], strides = [1, 1]} : vector<4x32xf32> to vector<4x24xf32>
    %461 = arith.negf %460 : vector<4x24xf32>
    %462 = math.exp %461 : vector<4x24xf32>
    %cst_104 = arith.constant 1.000000e+00 : f32
    %463 = vector.broadcast %cst_104 : f32 to vector<4x24xf32>
    %464 = arith.addf %463, %462 : vector<4x24xf32>
    %465 = arith.divf %463, %464 : vector<4x24xf32>
    %466 = vector.extract_strided_slice %459 {offsets = [0, 24], sizes = [4, 8], strides = [1, 1]} : vector<4x32xf32> to vector<4x8xf32>
    %467 = math.tanh %466 : vector<4x8xf32>
    %468 = vector.extract_strided_slice %465 {offsets = [0, 8], sizes = [4, 8], strides = [1, 1]} : vector<4x24xf32> to vector<4x8xf32>
    %469 = arith.mulf %468, %445 : vector<4x8xf32>
    %470 = vector.extract_strided_slice %465 {offsets = [0, 0], sizes = [4, 8], strides = [1, 1]} : vector<4x24xf32> to vector<4x8xf32>
    %471 = arith.mulf %470, %467 : vector<4x8xf32>
    %472 = arith.addf %469, %471 : vector<4x8xf32>
    %473 = vector.extract_strided_slice %465 {offsets = [0, 16], sizes = [4, 8], strides = [1, 1]} : vector<4x24xf32> to vector<4x8xf32>
    %474 = math.tanh %472 : vector<4x8xf32>
    %475 = arith.mulf %473, %474 : vector<4x8xf32>
    %476 = vector.extract_strided_slice %475 {offsets = [0, 0], sizes = [2, 8], strides = [1, 1]} : vector<4x8xf32> to vector<2x8xf32>
    %c26_105 = arith.constant 26 : index
    %c0_106 = arith.constant 0 : index
    %477 = vector.load %arg18[%c26_105, %c0_106] : memref<32x8xf32, #tpu.memory_space<vmem>>, vector<2x8xf32>
    tpu.vector_store %arg18[%c26_105, %c0_106], %476 {strides = array<i32>} : memref<32x8xf32, #tpu.memory_space<vmem>>, vector<2x8xf32>,
    %478 = vector.extract_strided_slice %475 {offsets = [2, 0], sizes = [2, 8], strides = [1, 1]} : vector<4x8xf32> to vector<2x8xf32>
    %c4_107 = arith.constant 4 : index
    %c0_108 = arith.constant 0 : index
    %479 = vector.load %arg19[%c4_107, %c0_108] : memref<32x8xf32, #tpu.memory_space<vmem>>, vector<2x8xf32>
    tpu.vector_store %arg19[%c4_107, %c0_108], %478 {strides = array<i32>} : memref<32x8xf32, #tpu.memory_space<vmem>>, vector<2x8xf32>,
    %480 = tpu.concatenate %475, %475 in 1 : vector<4x8xf32>, vector<4x8xf32> -> vector<4x16xf32>
    %481 = arith.mulf %480, %91 : vector<4x16xf32>
    %cst_109 = arith.constant dense<0.000000e+00> : vector<4x32xf32>
    %482 = tpu.matmul %481, %99, %cst_109 {dimension_numbers = #tpu.dot_dimension_numbers<[1], [0], [0], [1], [0, 0, 1, 1], [], []>} : vector<4x16xf32>, vector<16x32xf32>, vector<4x32xf32> -> vector<4x32xf32>
    %483 = vector.extract_strided_slice %97 {offsets = [28, 0], sizes = [2, 32], strides = [1, 1]} : vector<32x32xf32> to vector<2x32xf32>
    %484 = vector.extract_strided_slice %98 {offsets = [2, 0], sizes = [2, 32], strides = [1, 1]} : vector<32x32xf32> to vector<2x32xf32>
    %485 = tpu.concatenate %483, %484 in 0 : vector<2x32xf32>, vector<2x32xf32> -> vector<4x32xf32>
    %486 = arith.addf %482, %485 : vector<4x32xf32>
    %487 = vector.extract_strided_slice %486 {offsets = [0, 0], sizes = [4, 24], strides = [1, 1]} : vector<4x32xf32> to vector<4x24xf32>
    %488 = arith.negf %487 : vector<4x24xf32>
    %489 = math.exp %488 : vector<4x24xf32>
    %cst_110 = arith.constant 1.000000e+00 : f32
    %490 = vector.broadcast %cst_110 : f32 to vector<4x24xf32>
    %491 = arith.addf %490, %489 : vector<4x24xf32>
    %492 = arith.divf %490, %491 : vector<4x24xf32>
    %493 = vector.extract_strided_slice %486 {offsets = [0, 24], sizes = [4, 8], strides = [1, 1]} : vector<4x32xf32> to vector<4x8xf32>
    %494 = math.tanh %493 : vector<4x8xf32>
    %495 = vector.extract_strided_slice %492 {offsets = [0, 8], sizes = [4, 8], strides = [1, 1]} : vector<4x24xf32> to vector<4x8xf32>
    %496 = arith.mulf %495, %472 : vector<4x8xf32>
    %497 = vector.extract_strided_slice %492 {offsets = [0, 0], sizes = [4, 8], strides = [1, 1]} : vector<4x24xf32> to vector<4x8xf32>
    %498 = arith.mulf %497, %494 : vector<4x8xf32>
    %499 = arith.addf %496, %498 : vector<4x8xf32>
    %500 = vector.extract_strided_slice %492 {offsets = [0, 16], sizes = [4, 8], strides = [1, 1]} : vector<4x24xf32> to vector<4x8xf32>
    %501 = math.tanh %499 : vector<4x8xf32>
    %502 = arith.mulf %500, %501 : vector<4x8xf32>
    %503 = vector.extract_strided_slice %502 {offsets = [0, 0], sizes = [2, 8], strides = [1, 1]} : vector<4x8xf32> to vector<2x8xf32>
    %c28_111 = arith.constant 28 : index
    %c0_112 = arith.constant 0 : index
    %504 = vector.load %arg18[%c28_111, %c0_112] : memref<32x8xf32, #tpu.memory_space<vmem>>, vector<2x8xf32>
    tpu.vector_store %arg18[%c28_111, %c0_112], %503 {strides = array<i32>} : memref<32x8xf32, #tpu.memory_space<vmem>>, vector<2x8xf32>,
    %505 = vector.extract_strided_slice %502 {offsets = [2, 0], sizes = [2, 8], strides = [1, 1]} : vector<4x8xf32> to vector<2x8xf32>
    %c2_113 = arith.constant 2 : index
    %c0_114 = arith.constant 0 : index
    %506 = vector.load %arg19[%c2_113, %c0_114] : memref<32x8xf32, #tpu.memory_space<vmem>>, vector<2x8xf32>
    tpu.vector_store %arg19[%c2_113, %c0_114], %505 {strides = array<i32>} : memref<32x8xf32, #tpu.memory_space<vmem>>, vector<2x8xf32>,
    %507 = tpu.concatenate %502, %502 in 1 : vector<4x8xf32>, vector<4x8xf32> -> vector<4x16xf32>
    %508 = arith.mulf %507, %91 : vector<4x16xf32>
    %cst_115 = arith.constant dense<0.000000e+00> : vector<4x32xf32>
    %509 = tpu.matmul %508, %99, %cst_115 {dimension_numbers = #tpu.dot_dimension_numbers<[1], [0], [0], [1], [0, 0, 1, 1], [], []>} : vector<4x16xf32>, vector<16x32xf32>, vector<4x32xf32> -> vector<4x32xf32>
    %510 = vector.extract_strided_slice %97 {offsets = [30, 0], sizes = [2, 32], strides = [1, 1]} : vector<32x32xf32> to vector<2x32xf32>
    %511 = vector.extract_strided_slice %98 {offsets = [0, 0], sizes = [2, 32], strides = [1, 1]} : vector<32x32xf32> to vector<2x32xf32>
    %512 = tpu.concatenate %510, %511 in 0 : vector<2x32xf32>, vector<2x32xf32> -> vector<4x32xf32>
    %513 = arith.addf %509, %512 : vector<4x32xf32>
    %514 = vector.extract_strided_slice %513 {offsets = [0, 0], sizes = [4, 24], strides = [1, 1]} : vector<4x32xf32> to vector<4x24xf32>
    %515 = arith.negf %514 : vector<4x24xf32>
    %516 = math.exp %515 : vector<4x24xf32>
    %cst_116 = arith.constant 1.000000e+00 : f32
    %517 = vector.broadcast %cst_116 : f32 to vector<4x24xf32>
    %518 = arith.addf %517, %516 : vector<4x24xf32>
    %519 = arith.divf %517, %518 : vector<4x24xf32>
    %520 = vector.extract_strided_slice %513 {offsets = [0, 24], sizes = [4, 8], strides = [1, 1]} : vector<4x32xf32> to vector<4x8xf32>
    %521 = math.tanh %520 : vector<4x8xf32>
    %522 = vector.extract_strided_slice %519 {offsets = [0, 8], sizes = [4, 8], strides = [1, 1]} : vector<4x24xf32> to vector<4x8xf32>
    %523 = arith.mulf %522, %499 : vector<4x8xf32>
    %524 = vector.extract_strided_slice %519 {offsets = [0, 0], sizes = [4, 8], strides = [1, 1]} : vector<4x24xf32> to vector<4x8xf32>
    %525 = arith.mulf %524, %521 : vector<4x8xf32>
    %526 = arith.addf %523, %525 : vector<4x8xf32>
    %527 = vector.extract_strided_slice %519 {offsets = [0, 16], sizes = [4, 8], strides = [1, 1]} : vector<4x24xf32> to vector<4x8xf32>
    %528 = math.tanh %526 : vector<4x8xf32>
    %529 = arith.mulf %527, %528 : vector<4x8xf32>
    %530 = vector.extract_strided_slice %529 {offsets = [0, 0], sizes = [2, 8], strides = [1, 1]} : vector<4x8xf32> to vector<2x8xf32>
    %c30_117 = arith.constant 30 : index
    %c0_118 = arith.constant 0 : index
    %531 = vector.load %arg18[%c30_117, %c0_118] : memref<32x8xf32, #tpu.memory_space<vmem>>, vector<2x8xf32>
    tpu.vector_store %arg18[%c30_117, %c0_118], %530 {strides = array<i32>} : memref<32x8xf32, #tpu.memory_space<vmem>>, vector<2x8xf32>,
    %532 = vector.extract_strided_slice %529 {offsets = [2, 0], sizes = [2, 8], strides = [1, 1]} : vector<4x8xf32> to vector<2x8xf32>
    %c0_119 = arith.constant 0 : index
    %c0_120 = arith.constant 0 : index
    %533 = vector.load %arg19[%c0_119, %c0_120] : memref<32x8xf32, #tpu.memory_space<vmem>>, vector<2x8xf32>
    tpu.vector_store %arg19[%c0_119, %c0_120], %532 {strides = array<i32>} : memref<32x8xf32, #tpu.memory_space<vmem>>, vector<2x8xf32>,
    %c0_121 = arith.constant 0 : index
    %c0_122 = arith.constant 0 : index
    %534 = vector.load %arg18[%c0_121, %c0_122] : memref<32x8xf32, #tpu.memory_space<vmem>>, vector<32x8xf32>
    %c0_123 = arith.constant 0 : index
    %c0_124 = arith.constant 0 : index
    %535 = vector.load %arg19[%c0_123, %c0_124] : memref<32x8xf32, #tpu.memory_space<vmem>>, vector<32x8xf32>
    %536 = tpu.concatenate %534, %535 in 1 : vector<32x8xf32>, vector<32x8xf32> -> vector<32x16xf32>
    %c0_125 = arith.constant 0 : index
    %c0_126 = arith.constant 0 : index
    %537 = vector.load %arg14[%c0_125, %c0_126] : memref<16x64xf32, #tpu.memory_space<vmem>>, vector<16x64xf32>
    %cst_127 = arith.constant dense<0.000000e+00> : vector<32x64xf32>
    %538 = tpu.matmul %536, %537, %cst_127 {dimension_numbers = #tpu.dot_dimension_numbers<[1], [0], [0], [1], [0, 0, 1, 1], [], []>} : vector<32x16xf32>, vector<16x64xf32>, vector<32x64xf32> -> vector<32x64xf32>
    %c0_128 = arith.constant 0 : index
    %c0_129 = arith.constant 0 : index
    %539 = vector.load %arg15[%c0_128, %c0_129] : memref<1x64xf32, #tpu.memory_space<vmem>>, vector<1x64xf32>
    %540 = vector.broadcast %539 : vector<1x64xf32> to vector<32x64xf32>
    %541 = arith.addf %538, %540 : vector<32x64xf32>
    %542 = vector.extract_strided_slice %541 {offsets = [0, 0], sizes = [32, 32], strides = [1, 1]} : vector<32x64xf32> to vector<32x32xf32>
    %543 = vector.extract_strided_slice %541 {offsets = [0, 32], sizes = [32, 32], strides = [1, 1]} : vector<32x64xf32> to vector<32x32xf32>
    %c0_130 = arith.constant 0 : index
    %c0_131 = arith.constant 0 : index
    %544 = vector.load %arg16[%c0_130, %c0_131] : memref<16x32xf32, #tpu.memory_space<vmem>>, vector<16x32xf32>
    %cst_132 = arith.constant 0.000000e+00 : f32
    %545 = vector.broadcast %cst_132 : f32 to vector<4x8xf32>
    %cst_133 = arith.constant 0.000000e+00 : f32
    %546 = vector.broadcast %cst_133 : f32 to vector<4x8xf32>
    %547 = tpu.concatenate %545, %545 in 1 : vector<4x8xf32>, vector<4x8xf32> -> vector<4x16xf32>
    %548 = arith.mulf %547, %91 : vector<4x16xf32>
    %cst_134 = arith.constant dense<0.000000e+00> : vector<4x32xf32>
    %549 = tpu.matmul %548, %544, %cst_134 {dimension_numbers = #tpu.dot_dimension_numbers<[1], [0], [0], [1], [0, 0, 1, 1], [], []>} : vector<4x16xf32>, vector<16x32xf32>, vector<4x32xf32> -> vector<4x32xf32>
    %550 = vector.extract_strided_slice %542 {offsets = [0, 0], sizes = [2, 32], strides = [1, 1]} : vector<32x32xf32> to vector<2x32xf32>
    %551 = vector.extract_strided_slice %543 {offsets = [30, 0], sizes = [2, 32], strides = [1, 1]} : vector<32x32xf32> to vector<2x32xf32>
    %552 = tpu.concatenate %550, %551 in 0 : vector<2x32xf32>, vector<2x32xf32> -> vector<4x32xf32>
    %553 = arith.addf %549, %552 : vector<4x32xf32>
    %554 = vector.extract_strided_slice %553 {offsets = [0, 0], sizes = [4, 24], strides = [1, 1]} : vector<4x32xf32> to vector<4x24xf32>
    %555 = arith.negf %554 : vector<4x24xf32>
    %556 = math.exp %555 : vector<4x24xf32>
    %cst_135 = arith.constant 1.000000e+00 : f32
    %557 = vector.broadcast %cst_135 : f32 to vector<4x24xf32>
    %558 = arith.addf %557, %556 : vector<4x24xf32>
    %559 = arith.divf %557, %558 : vector<4x24xf32>
    %560 = vector.extract_strided_slice %553 {offsets = [0, 24], sizes = [4, 8], strides = [1, 1]} : vector<4x32xf32> to vector<4x8xf32>
    %561 = math.tanh %560 : vector<4x8xf32>
    %562 = vector.extract_strided_slice %559 {offsets = [0, 8], sizes = [4, 8], strides = [1, 1]} : vector<4x24xf32> to vector<4x8xf32>
    %563 = arith.mulf %562, %546 : vector<4x8xf32>
    %564 = vector.extract_strided_slice %559 {offsets = [0, 0], sizes = [4, 8], strides = [1, 1]} : vector<4x24xf32> to vector<4x8xf32>
    %565 = arith.mulf %564, %561 : vector<4x8xf32>
    %566 = arith.addf %563, %565 : vector<4x8xf32>
    %567 = vector.extract_strided_slice %559 {offsets = [0, 16], sizes = [4, 8], strides = [1, 1]} : vector<4x24xf32> to vector<4x8xf32>
    %568 = math.tanh %566 : vector<4x8xf32>
    %569 = arith.mulf %567, %568 : vector<4x8xf32>
    %570 = vector.extract_strided_slice %569 {offsets = [0, 0], sizes = [2, 8], strides = [1, 1]} : vector<4x8xf32> to vector<2x8xf32>
    %c0_136 = arith.constant 0 : index
    %c0_137 = arith.constant 0 : index
    %571 = vector.load %arg18[%c0_136, %c0_137] : memref<32x8xf32, #tpu.memory_space<vmem>>, vector<2x8xf32>
    tpu.vector_store %arg18[%c0_136, %c0_137], %570 {strides = array<i32>} : memref<32x8xf32, #tpu.memory_space<vmem>>, vector<2x8xf32>,
    %572 = vector.extract_strided_slice %569 {offsets = [2, 0], sizes = [2, 8], strides = [1, 1]} : vector<4x8xf32> to vector<2x8xf32>
    %c30_138 = arith.constant 30 : index
    %c0_139 = arith.constant 0 : index
    %573 = vector.load %arg19[%c30_138, %c0_139] : memref<32x8xf32, #tpu.memory_space<vmem>>, vector<2x8xf32>
    tpu.vector_store %arg19[%c30_138, %c0_139], %572 {strides = array<i32>} : memref<32x8xf32, #tpu.memory_space<vmem>>, vector<2x8xf32>,
    %574 = tpu.concatenate %569, %569 in 1 : vector<4x8xf32>, vector<4x8xf32> -> vector<4x16xf32>
    %575 = arith.mulf %574, %91 : vector<4x16xf32>
    %cst_140 = arith.constant dense<0.000000e+00> : vector<4x32xf32>
    %576 = tpu.matmul %575, %544, %cst_140 {dimension_numbers = #tpu.dot_dimension_numbers<[1], [0], [0], [1], [0, 0, 1, 1], [], []>} : vector<4x16xf32>, vector<16x32xf32>, vector<4x32xf32> -> vector<4x32xf32>
    %577 = vector.extract_strided_slice %542 {offsets = [2, 0], sizes = [2, 32], strides = [1, 1]} : vector<32x32xf32> to vector<2x32xf32>
    %578 = vector.extract_strided_slice %543 {offsets = [28, 0], sizes = [2, 32], strides = [1, 1]} : vector<32x32xf32> to vector<2x32xf32>
    %579 = tpu.concatenate %577, %578 in 0 : vector<2x32xf32>, vector<2x32xf32> -> vector<4x32xf32>
    %580 = arith.addf %576, %579 : vector<4x32xf32>
    %581 = vector.extract_strided_slice %580 {offsets = [0, 0], sizes = [4, 24], strides = [1, 1]} : vector<4x32xf32> to vector<4x24xf32>
    %582 = arith.negf %581 : vector<4x24xf32>
    %583 = math.exp %582 : vector<4x24xf32>
    %cst_141 = arith.constant 1.000000e+00 : f32
    %584 = vector.broadcast %cst_141 : f32 to vector<4x24xf32>
    %585 = arith.addf %584, %583 : vector<4x24xf32>
    %586 = arith.divf %584, %585 : vector<4x24xf32>
    %587 = vector.extract_strided_slice %580 {offsets = [0, 24], sizes = [4, 8], strides = [1, 1]} : vector<4x32xf32> to vector<4x8xf32>
    %588 = math.tanh %587 : vector<4x8xf32>
    %589 = vector.extract_strided_slice %586 {offsets = [0, 8], sizes = [4, 8], strides = [1, 1]} : vector<4x24xf32> to vector<4x8xf32>
    %590 = arith.mulf %589, %566 : vector<4x8xf32>
    %591 = vector.extract_strided_slice %586 {offsets = [0, 0], sizes = [4, 8], strides = [1, 1]} : vector<4x24xf32> to vector<4x8xf32>
    %592 = arith.mulf %591, %588 : vector<4x8xf32>
    %593 = arith.addf %590, %592 : vector<4x8xf32>
    %594 = vector.extract_strided_slice %586 {offsets = [0, 16], sizes = [4, 8], strides = [1, 1]} : vector<4x24xf32> to vector<4x8xf32>
    %595 = math.tanh %593 : vector<4x8xf32>
    %596 = arith.mulf %594, %595 : vector<4x8xf32>
    %597 = vector.extract_strided_slice %596 {offsets = [0, 0], sizes = [2, 8], strides = [1, 1]} : vector<4x8xf32> to vector<2x8xf32>
    %c2_142 = arith.constant 2 : index
    %c0_143 = arith.constant 0 : index
    %598 = vector.load %arg18[%c2_142, %c0_143] : memref<32x8xf32, #tpu.memory_space<vmem>>, vector<2x8xf32>
    tpu.vector_store %arg18[%c2_142, %c0_143], %597 {strides = array<i32>} : memref<32x8xf32, #tpu.memory_space<vmem>>, vector<2x8xf32>,
    %599 = vector.extract_strided_slice %596 {offsets = [2, 0], sizes = [2, 8], strides = [1, 1]} : vector<4x8xf32> to vector<2x8xf32>
    %c28_144 = arith.constant 28 : index
    %c0_145 = arith.constant 0 : index
    %600 = vector.load %arg19[%c28_144, %c0_145] : memref<32x8xf32, #tpu.memory_space<vmem>>, vector<2x8xf32>
    tpu.vector_store %arg19[%c28_144, %c0_145], %599 {strides = array<i32>} : memref<32x8xf32, #tpu.memory_space<vmem>>, vector<2x8xf32>,
    %601 = tpu.concatenate %596, %596 in 1 : vector<4x8xf32>, vector<4x8xf32> -> vector<4x16xf32>
    %602 = arith.mulf %601, %91 : vector<4x16xf32>
    %cst_146 = arith.constant dense<0.000000e+00> : vector<4x32xf32>
    %603 = tpu.matmul %602, %544, %cst_146 {dimension_numbers = #tpu.dot_dimension_numbers<[1], [0], [0], [1], [0, 0, 1, 1], [], []>} : vector<4x16xf32>, vector<16x32xf32>, vector<4x32xf32> -> vector<4x32xf32>
    %604 = vector.extract_strided_slice %542 {offsets = [4, 0], sizes = [2, 32], strides = [1, 1]} : vector<32x32xf32> to vector<2x32xf32>
    %605 = vector.extract_strided_slice %543 {offsets = [26, 0], sizes = [2, 32], strides = [1, 1]} : vector<32x32xf32> to vector<2x32xf32>
    %606 = tpu.concatenate %604, %605 in 0 : vector<2x32xf32>, vector<2x32xf32> -> vector<4x32xf32>
    %607 = arith.addf %603, %606 : vector<4x32xf32>
    %608 = vector.extract_strided_slice %607 {offsets = [0, 0], sizes = [4, 24], strides = [1, 1]} : vector<4x32xf32> to vector<4x24xf32>
    %609 = arith.negf %608 : vector<4x24xf32>
    %610 = math.exp %609 : vector<4x24xf32>
    %cst_147 = arith.constant 1.000000e+00 : f32
    %611 = vector.broadcast %cst_147 : f32 to vector<4x24xf32>
    %612 = arith.addf %611, %610 : vector<4x24xf32>
    %613 = arith.divf %611, %612 : vector<4x24xf32>
    %614 = vector.extract_strided_slice %607 {offsets = [0, 24], sizes = [4, 8], strides = [1, 1]} : vector<4x32xf32> to vector<4x8xf32>
    %615 = math.tanh %614 : vector<4x8xf32>
    %616 = vector.extract_strided_slice %613 {offsets = [0, 8], sizes = [4, 8], strides = [1, 1]} : vector<4x24xf32> to vector<4x8xf32>
    %617 = arith.mulf %616, %593 : vector<4x8xf32>
    %618 = vector.extract_strided_slice %613 {offsets = [0, 0], sizes = [4, 8], strides = [1, 1]} : vector<4x24xf32> to vector<4x8xf32>
    %619 = arith.mulf %618, %615 : vector<4x8xf32>
    %620 = arith.addf %617, %619 : vector<4x8xf32>
    %621 = vector.extract_strided_slice %613 {offsets = [0, 16], sizes = [4, 8], strides = [1, 1]} : vector<4x24xf32> to vector<4x8xf32>
    %622 = math.tanh %620 : vector<4x8xf32>
    %623 = arith.mulf %621, %622 : vector<4x8xf32>
    %624 = vector.extract_strided_slice %623 {offsets = [0, 0], sizes = [2, 8], strides = [1, 1]} : vector<4x8xf32> to vector<2x8xf32>
    %c4_148 = arith.constant 4 : index
    %c0_149 = arith.constant 0 : index
    %625 = vector.load %arg18[%c4_148, %c0_149] : memref<32x8xf32, #tpu.memory_space<vmem>>, vector<2x8xf32>
    tpu.vector_store %arg18[%c4_148, %c0_149], %624 {strides = array<i32>} : memref<32x8xf32, #tpu.memory_space<vmem>>, vector<2x8xf32>,
    %626 = vector.extract_strided_slice %623 {offsets = [2, 0], sizes = [2, 8], strides = [1, 1]} : vector<4x8xf32> to vector<2x8xf32>
    %c26_150 = arith.constant 26 : index
    %c0_151 = arith.constant 0 : index
    %627 = vector.load %arg19[%c26_150, %c0_151] : memref<32x8xf32, #tpu.memory_space<vmem>>, vector<2x8xf32>
    tpu.vector_store %arg19[%c26_150, %c0_151], %626 {strides = array<i32>} : memref<32x8xf32, #tpu.memory_space<vmem>>, vector<2x8xf32>,
    %628 = tpu.concatenate %623, %623 in 1 : vector<4x8xf32>, vector<4x8xf32> -> vector<4x16xf32>
    %629 = arith.mulf %628, %91 : vector<4x16xf32>
    %cst_152 = arith.constant dense<0.000000e+00> : vector<4x32xf32>
    %630 = tpu.matmul %629, %544, %cst_152 {dimension_numbers = #tpu.dot_dimension_numbers<[1], [0], [0], [1], [0, 0, 1, 1], [], []>} : vector<4x16xf32>, vector<16x32xf32>, vector<4x32xf32> -> vector<4x32xf32>
    %631 = vector.extract_strided_slice %542 {offsets = [6, 0], sizes = [2, 32], strides = [1, 1]} : vector<32x32xf32> to vector<2x32xf32>
    %632 = vector.extract_strided_slice %543 {offsets = [24, 0], sizes = [2, 32], strides = [1, 1]} : vector<32x32xf32> to vector<2x32xf32>
    %633 = tpu.concatenate %631, %632 in 0 : vector<2x32xf32>, vector<2x32xf32> -> vector<4x32xf32>
    %634 = arith.addf %630, %633 : vector<4x32xf32>
    %635 = vector.extract_strided_slice %634 {offsets = [0, 0], sizes = [4, 24], strides = [1, 1]} : vector<4x32xf32> to vector<4x24xf32>
    %636 = arith.negf %635 : vector<4x24xf32>
    %637 = math.exp %636 : vector<4x24xf32>
    %cst_153 = arith.constant 1.000000e+00 : f32
    %638 = vector.broadcast %cst_153 : f32 to vector<4x24xf32>
    %639 = arith.addf %638, %637 : vector<4x24xf32>
    %640 = arith.divf %638, %639 : vector<4x24xf32>
    %641 = vector.extract_strided_slice %634 {offsets = [0, 24], sizes = [4, 8], strides = [1, 1]} : vector<4x32xf32> to vector<4x8xf32>
    %642 = math.tanh %641 : vector<4x8xf32>
    %643 = vector.extract_strided_slice %640 {offsets = [0, 8], sizes = [4, 8], strides = [1, 1]} : vector<4x24xf32> to vector<4x8xf32>
    %644 = arith.mulf %643, %620 : vector<4x8xf32>
    %645 = vector.extract_strided_slice %640 {offsets = [0, 0], sizes = [4, 8], strides = [1, 1]} : vector<4x24xf32> to vector<4x8xf32>
    %646 = arith.mulf %645, %642 : vector<4x8xf32>
    %647 = arith.addf %644, %646 : vector<4x8xf32>
    %648 = vector.extract_strided_slice %640 {offsets = [0, 16], sizes = [4, 8], strides = [1, 1]} : vector<4x24xf32> to vector<4x8xf32>
    %649 = math.tanh %647 : vector<4x8xf32>
    %650 = arith.mulf %648, %649 : vector<4x8xf32>
    %651 = vector.extract_strided_slice %650 {offsets = [0, 0], sizes = [2, 8], strides = [1, 1]} : vector<4x8xf32> to vector<2x8xf32>
    %c6_154 = arith.constant 6 : index
    %c0_155 = arith.constant 0 : index
    %652 = vector.load %arg18[%c6_154, %c0_155] : memref<32x8xf32, #tpu.memory_space<vmem>>, vector<2x8xf32>
    tpu.vector_store %arg18[%c6_154, %c0_155], %651 {strides = array<i32>} : memref<32x8xf32, #tpu.memory_space<vmem>>, vector<2x8xf32>,
    %653 = vector.extract_strided_slice %650 {offsets = [2, 0], sizes = [2, 8], strides = [1, 1]} : vector<4x8xf32> to vector<2x8xf32>
    %c24_156 = arith.constant 24 : index
    %c0_157 = arith.constant 0 : index
    %654 = vector.load %arg19[%c24_156, %c0_157] : memref<32x8xf32, #tpu.memory_space<vmem>>, vector<2x8xf32>
    tpu.vector_store %arg19[%c24_156, %c0_157], %653 {strides = array<i32>} : memref<32x8xf32, #tpu.memory_space<vmem>>, vector<2x8xf32>,
    %655 = tpu.concatenate %650, %650 in 1 : vector<4x8xf32>, vector<4x8xf32> -> vector<4x16xf32>
    %656 = arith.mulf %655, %91 : vector<4x16xf32>
    %cst_158 = arith.constant dense<0.000000e+00> : vector<4x32xf32>
    %657 = tpu.matmul %656, %544, %cst_158 {dimension_numbers = #tpu.dot_dimension_numbers<[1], [0], [0], [1], [0, 0, 1, 1], [], []>} : vector<4x16xf32>, vector<16x32xf32>, vector<4x32xf32> -> vector<4x32xf32>
    %658 = vector.extract_strided_slice %542 {offsets = [8, 0], sizes = [2, 32], strides = [1, 1]} : vector<32x32xf32> to vector<2x32xf32>
    %659 = vector.extract_strided_slice %543 {offsets = [22, 0], sizes = [2, 32], strides = [1, 1]} : vector<32x32xf32> to vector<2x32xf32>
    %660 = tpu.concatenate %658, %659 in 0 : vector<2x32xf32>, vector<2x32xf32> -> vector<4x32xf32>
    %661 = arith.addf %657, %660 : vector<4x32xf32>
    %662 = vector.extract_strided_slice %661 {offsets = [0, 0], sizes = [4, 24], strides = [1, 1]} : vector<4x32xf32> to vector<4x24xf32>
    %663 = arith.negf %662 : vector<4x24xf32>
    %664 = math.exp %663 : vector<4x24xf32>
    %cst_159 = arith.constant 1.000000e+00 : f32
    %665 = vector.broadcast %cst_159 : f32 to vector<4x24xf32>
    %666 = arith.addf %665, %664 : vector<4x24xf32>
    %667 = arith.divf %665, %666 : vector<4x24xf32>
    %668 = vector.extract_strided_slice %661 {offsets = [0, 24], sizes = [4, 8], strides = [1, 1]} : vector<4x32xf32> to vector<4x8xf32>
    %669 = math.tanh %668 : vector<4x8xf32>
    %670 = vector.extract_strided_slice %667 {offsets = [0, 8], sizes = [4, 8], strides = [1, 1]} : vector<4x24xf32> to vector<4x8xf32>
    %671 = arith.mulf %670, %647 : vector<4x8xf32>
    %672 = vector.extract_strided_slice %667 {offsets = [0, 0], sizes = [4, 8], strides = [1, 1]} : vector<4x24xf32> to vector<4x8xf32>
    %673 = arith.mulf %672, %669 : vector<4x8xf32>
    %674 = arith.addf %671, %673 : vector<4x8xf32>
    %675 = vector.extract_strided_slice %667 {offsets = [0, 16], sizes = [4, 8], strides = [1, 1]} : vector<4x24xf32> to vector<4x8xf32>
    %676 = math.tanh %674 : vector<4x8xf32>
    %677 = arith.mulf %675, %676 : vector<4x8xf32>
    %678 = vector.extract_strided_slice %677 {offsets = [0, 0], sizes = [2, 8], strides = [1, 1]} : vector<4x8xf32> to vector<2x8xf32>
    %c8_160 = arith.constant 8 : index
    %c0_161 = arith.constant 0 : index
    %679 = vector.load %arg18[%c8_160, %c0_161] : memref<32x8xf32, #tpu.memory_space<vmem>>, vector<2x8xf32>
    tpu.vector_store %arg18[%c8_160, %c0_161], %678 {strides = array<i32>} : memref<32x8xf32, #tpu.memory_space<vmem>>, vector<2x8xf32>,
    %680 = vector.extract_strided_slice %677 {offsets = [2, 0], sizes = [2, 8], strides = [1, 1]} : vector<4x8xf32> to vector<2x8xf32>
    %c22_162 = arith.constant 22 : index
    %c0_163 = arith.constant 0 : index
    %681 = vector.load %arg19[%c22_162, %c0_163] : memref<32x8xf32, #tpu.memory_space<vmem>>, vector<2x8xf32>
    tpu.vector_store %arg19[%c22_162, %c0_163], %680 {strides = array<i32>} : memref<32x8xf32, #tpu.memory_space<vmem>>, vector<2x8xf32>,
    %682 = tpu.concatenate %677, %677 in 1 : vector<4x8xf32>, vector<4x8xf32> -> vector<4x16xf32>
    %683 = arith.mulf %682, %91 : vector<4x16xf32>
    %cst_164 = arith.constant dense<0.000000e+00> : vector<4x32xf32>
    %684 = tpu.matmul %683, %544, %cst_164 {dimension_numbers = #tpu.dot_dimension_numbers<[1], [0], [0], [1], [0, 0, 1, 1], [], []>} : vector<4x16xf32>, vector<16x32xf32>, vector<4x32xf32> -> vector<4x32xf32>
    %685 = vector.extract_strided_slice %542 {offsets = [10, 0], sizes = [2, 32], strides = [1, 1]} : vector<32x32xf32> to vector<2x32xf32>
    %686 = vector.extract_strided_slice %543 {offsets = [20, 0], sizes = [2, 32], strides = [1, 1]} : vector<32x32xf32> to vector<2x32xf32>
    %687 = tpu.concatenate %685, %686 in 0 : vector<2x32xf32>, vector<2x32xf32> -> vector<4x32xf32>
    %688 = arith.addf %684, %687 : vector<4x32xf32>
    %689 = vector.extract_strided_slice %688 {offsets = [0, 0], sizes = [4, 24], strides = [1, 1]} : vector<4x32xf32> to vector<4x24xf32>
    %690 = arith.negf %689 : vector<4x24xf32>
    %691 = math.exp %690 : vector<4x24xf32>
    %cst_165 = arith.constant 1.000000e+00 : f32
    %692 = vector.broadcast %cst_165 : f32 to vector<4x24xf32>
    %693 = arith.addf %692, %691 : vector<4x24xf32>
    %694 = arith.divf %692, %693 : vector<4x24xf32>
    %695 = vector.extract_strided_slice %688 {offsets = [0, 24], sizes = [4, 8], strides = [1, 1]} : vector<4x32xf32> to vector<4x8xf32>
    %696 = math.tanh %695 : vector<4x8xf32>
    %697 = vector.extract_strided_slice %694 {offsets = [0, 8], sizes = [4, 8], strides = [1, 1]} : vector<4x24xf32> to vector<4x8xf32>
    %698 = arith.mulf %697, %674 : vector<4x8xf32>
    %699 = vector.extract_strided_slice %694 {offsets = [0, 0], sizes = [4, 8], strides = [1, 1]} : vector<4x24xf32> to vector<4x8xf32>
    %700 = arith.mulf %699, %696 : vector<4x8xf32>
    %701 = arith.addf %698, %700 : vector<4x8xf32>
    %702 = vector.extract_strided_slice %694 {offsets = [0, 16], sizes = [4, 8], strides = [1, 1]} : vector<4x24xf32> to vector<4x8xf32>
    %703 = math.tanh %701 : vector<4x8xf32>
    %704 = arith.mulf %702, %703 : vector<4x8xf32>
    %705 = vector.extract_strided_slice %704 {offsets = [0, 0], sizes = [2, 8], strides = [1, 1]} : vector<4x8xf32> to vector<2x8xf32>
    %c10_166 = arith.constant 10 : index
    %c0_167 = arith.constant 0 : index
    %706 = vector.load %arg18[%c10_166, %c0_167] : memref<32x8xf32, #tpu.memory_space<vmem>>, vector<2x8xf32>
    tpu.vector_store %arg18[%c10_166, %c0_167], %705 {strides = array<i32>} : memref<32x8xf32, #tpu.memory_space<vmem>>, vector<2x8xf32>,
    %707 = vector.extract_strided_slice %704 {offsets = [2, 0], sizes = [2, 8], strides = [1, 1]} : vector<4x8xf32> to vector<2x8xf32>
    %c20_168 = arith.constant 20 : index
    %c0_169 = arith.constant 0 : index
    %708 = vector.load %arg19[%c20_168, %c0_169] : memref<32x8xf32, #tpu.memory_space<vmem>>, vector<2x8xf32>
    tpu.vector_store %arg19[%c20_168, %c0_169], %707 {strides = array<i32>} : memref<32x8xf32, #tpu.memory_space<vmem>>, vector<2x8xf32>,
    %709 = tpu.concatenate %704, %704 in 1 : vector<4x8xf32>, vector<4x8xf32> -> vector<4x16xf32>
    %710 = arith.mulf %709, %91 : vector<4x16xf32>
    %cst_170 = arith.constant dense<0.000000e+00> : vector<4x32xf32>
    %711 = tpu.matmul %710, %544, %cst_170 {dimension_numbers = #tpu.dot_dimension_numbers<[1], [0], [0], [1], [0, 0, 1, 1], [], []>} : vector<4x16xf32>, vector<16x32xf32>, vector<4x32xf32> -> vector<4x32xf32>
    %712 = vector.extract_strided_slice %542 {offsets = [12, 0], sizes = [2, 32], strides = [1, 1]} : vector<32x32xf32> to vector<2x32xf32>
    %713 = vector.extract_strided_slice %543 {offsets = [18, 0], sizes = [2, 32], strides = [1, 1]} : vector<32x32xf32> to vector<2x32xf32>
    %714 = tpu.concatenate %712, %713 in 0 : vector<2x32xf32>, vector<2x32xf32> -> vector<4x32xf32>
    %715 = arith.addf %711, %714 : vector<4x32xf32>
    %716 = vector.extract_strided_slice %715 {offsets = [0, 0], sizes = [4, 24], strides = [1, 1]} : vector<4x32xf32> to vector<4x24xf32>
    %717 = arith.negf %716 : vector<4x24xf32>
    %718 = math.exp %717 : vector<4x24xf32>
    %cst_171 = arith.constant 1.000000e+00 : f32
    %719 = vector.broadcast %cst_171 : f32 to vector<4x24xf32>
    %720 = arith.addf %719, %718 : vector<4x24xf32>
    %721 = arith.divf %719, %720 : vector<4x24xf32>
    %722 = vector.extract_strided_slice %715 {offsets = [0, 24], sizes = [4, 8], strides = [1, 1]} : vector<4x32xf32> to vector<4x8xf32>
    %723 = math.tanh %722 : vector<4x8xf32>
    %724 = vector.extract_strided_slice %721 {offsets = [0, 8], sizes = [4, 8], strides = [1, 1]} : vector<4x24xf32> to vector<4x8xf32>
    %725 = arith.mulf %724, %701 : vector<4x8xf32>
    %726 = vector.extract_strided_slice %721 {offsets = [0, 0], sizes = [4, 8], strides = [1, 1]} : vector<4x24xf32> to vector<4x8xf32>
    %727 = arith.mulf %726, %723 : vector<4x8xf32>
    %728 = arith.addf %725, %727 : vector<4x8xf32>
    %729 = vector.extract_strided_slice %721 {offsets = [0, 16], sizes = [4, 8], strides = [1, 1]} : vector<4x24xf32> to vector<4x8xf32>
    %730 = math.tanh %728 : vector<4x8xf32>
    %731 = arith.mulf %729, %730 : vector<4x8xf32>
    %732 = vector.extract_strided_slice %731 {offsets = [0, 0], sizes = [2, 8], strides = [1, 1]} : vector<4x8xf32> to vector<2x8xf32>
    %c12_172 = arith.constant 12 : index
    %c0_173 = arith.constant 0 : index
    %733 = vector.load %arg18[%c12_172, %c0_173] : memref<32x8xf32, #tpu.memory_space<vmem>>, vector<2x8xf32>
    tpu.vector_store %arg18[%c12_172, %c0_173], %732 {strides = array<i32>} : memref<32x8xf32, #tpu.memory_space<vmem>>, vector<2x8xf32>,
    %734 = vector.extract_strided_slice %731 {offsets = [2, 0], sizes = [2, 8], strides = [1, 1]} : vector<4x8xf32> to vector<2x8xf32>
    %c18_174 = arith.constant 18 : index
    %c0_175 = arith.constant 0 : index
    %735 = vector.load %arg19[%c18_174, %c0_175] : memref<32x8xf32, #tpu.memory_space<vmem>>, vector<2x8xf32>
    tpu.vector_store %arg19[%c18_174, %c0_175], %734 {strides = array<i32>} : memref<32x8xf32, #tpu.memory_space<vmem>>, vector<2x8xf32>,
    %736 = tpu.concatenate %731, %731 in 1 : vector<4x8xf32>, vector<4x8xf32> -> vector<4x16xf32>
    %737 = arith.mulf %736, %91 : vector<4x16xf32>
    %cst_176 = arith.constant dense<0.000000e+00> : vector<4x32xf32>
    %738 = tpu.matmul %737, %544, %cst_176 {dimension_numbers = #tpu.dot_dimension_numbers<[1], [0], [0], [1], [0, 0, 1, 1], [], []>} : vector<4x16xf32>, vector<16x32xf32>, vector<4x32xf32> -> vector<4x32xf32>
    %739 = vector.extract_strided_slice %542 {offsets = [14, 0], sizes = [2, 32], strides = [1, 1]} : vector<32x32xf32> to vector<2x32xf32>
    %740 = vector.extract_strided_slice %543 {offsets = [16, 0], sizes = [2, 32], strides = [1, 1]} : vector<32x32xf32> to vector<2x32xf32>
    %741 = tpu.concatenate %739, %740 in 0 : vector<2x32xf32>, vector<2x32xf32> -> vector<4x32xf32>
    %742 = arith.addf %738, %741 : vector<4x32xf32>
    %743 = vector.extract_strided_slice %742 {offsets = [0, 0], sizes = [4, 24], strides = [1, 1]} : vector<4x32xf32> to vector<4x24xf32>
    %744 = arith.negf %743 : vector<4x24xf32>
    %745 = math.exp %744 : vector<4x24xf32>
    %cst_177 = arith.constant 1.000000e+00 : f32
    %746 = vector.broadcast %cst_177 : f32 to vector<4x24xf32>
    %747 = arith.addf %746, %745 : vector<4x24xf32>
    %748 = arith.divf %746, %747 : vector<4x24xf32>
    %749 = vector.extract_strided_slice %742 {offsets = [0, 24], sizes = [4, 8], strides = [1, 1]} : vector<4x32xf32> to vector<4x8xf32>
    %750 = math.tanh %749 : vector<4x8xf32>
    %751 = vector.extract_strided_slice %748 {offsets = [0, 8], sizes = [4, 8], strides = [1, 1]} : vector<4x24xf32> to vector<4x8xf32>
    %752 = arith.mulf %751, %728 : vector<4x8xf32>
    %753 = vector.extract_strided_slice %748 {offsets = [0, 0], sizes = [4, 8], strides = [1, 1]} : vector<4x24xf32> to vector<4x8xf32>
    %754 = arith.mulf %753, %750 : vector<4x8xf32>
    %755 = arith.addf %752, %754 : vector<4x8xf32>
    %756 = vector.extract_strided_slice %748 {offsets = [0, 16], sizes = [4, 8], strides = [1, 1]} : vector<4x24xf32> to vector<4x8xf32>
    %757 = math.tanh %755 : vector<4x8xf32>
    %758 = arith.mulf %756, %757 : vector<4x8xf32>
    %759 = vector.extract_strided_slice %758 {offsets = [0, 0], sizes = [2, 8], strides = [1, 1]} : vector<4x8xf32> to vector<2x8xf32>
    %c14_178 = arith.constant 14 : index
    %c0_179 = arith.constant 0 : index
    %760 = vector.load %arg18[%c14_178, %c0_179] : memref<32x8xf32, #tpu.memory_space<vmem>>, vector<2x8xf32>
    tpu.vector_store %arg18[%c14_178, %c0_179], %759 {strides = array<i32>} : memref<32x8xf32, #tpu.memory_space<vmem>>, vector<2x8xf32>,
    %761 = vector.extract_strided_slice %758 {offsets = [2, 0], sizes = [2, 8], strides = [1, 1]} : vector<4x8xf32> to vector<2x8xf32>
    %c16_180 = arith.constant 16 : index
    %c0_181 = arith.constant 0 : index
    %762 = vector.load %arg19[%c16_180, %c0_181] : memref<32x8xf32, #tpu.memory_space<vmem>>, vector<2x8xf32>
    tpu.vector_store %arg19[%c16_180, %c0_181], %761 {strides = array<i32>} : memref<32x8xf32, #tpu.memory_space<vmem>>, vector<2x8xf32>,
    %763 = tpu.concatenate %758, %758 in 1 : vector<4x8xf32>, vector<4x8xf32> -> vector<4x16xf32>
    %764 = arith.mulf %763, %91 : vector<4x16xf32>
    %cst_182 = arith.constant dense<0.000000e+00> : vector<4x32xf32>
    %765 = tpu.matmul %764, %544, %cst_182 {dimension_numbers = #tpu.dot_dimension_numbers<[1], [0], [0], [1], [0, 0, 1, 1], [], []>} : vector<4x16xf32>, vector<16x32xf32>, vector<4x32xf32> -> vector<4x32xf32>
    %766 = vector.extract_strided_slice %542 {offsets = [16, 0], sizes = [2, 32], strides = [1, 1]} : vector<32x32xf32> to vector<2x32xf32>
    %767 = vector.extract_strided_slice %543 {offsets = [14, 0], sizes = [2, 32], strides = [1, 1]} : vector<32x32xf32> to vector<2x32xf32>
    %768 = tpu.concatenate %766, %767 in 0 : vector<2x32xf32>, vector<2x32xf32> -> vector<4x32xf32>
    %769 = arith.addf %765, %768 : vector<4x32xf32>
    %770 = vector.extract_strided_slice %769 {offsets = [0, 0], sizes = [4, 24], strides = [1, 1]} : vector<4x32xf32> to vector<4x24xf32>
    %771 = arith.negf %770 : vector<4x24xf32>
    %772 = math.exp %771 : vector<4x24xf32>
    %cst_183 = arith.constant 1.000000e+00 : f32
    %773 = vector.broadcast %cst_183 : f32 to vector<4x24xf32>
    %774 = arith.addf %773, %772 : vector<4x24xf32>
    %775 = arith.divf %773, %774 : vector<4x24xf32>
    %776 = vector.extract_strided_slice %769 {offsets = [0, 24], sizes = [4, 8], strides = [1, 1]} : vector<4x32xf32> to vector<4x8xf32>
    %777 = math.tanh %776 : vector<4x8xf32>
    %778 = vector.extract_strided_slice %775 {offsets = [0, 8], sizes = [4, 8], strides = [1, 1]} : vector<4x24xf32> to vector<4x8xf32>
    %779 = arith.mulf %778, %755 : vector<4x8xf32>
    %780 = vector.extract_strided_slice %775 {offsets = [0, 0], sizes = [4, 8], strides = [1, 1]} : vector<4x24xf32> to vector<4x8xf32>
    %781 = arith.mulf %780, %777 : vector<4x8xf32>
    %782 = arith.addf %779, %781 : vector<4x8xf32>
    %783 = vector.extract_strided_slice %775 {offsets = [0, 16], sizes = [4, 8], strides = [1, 1]} : vector<4x24xf32> to vector<4x8xf32>
    %784 = math.tanh %782 : vector<4x8xf32>
    %785 = arith.mulf %783, %784 : vector<4x8xf32>
    %786 = vector.extract_strided_slice %785 {offsets = [0, 0], sizes = [2, 8], strides = [1, 1]} : vector<4x8xf32> to vector<2x8xf32>
    %c16_184 = arith.constant 16 : index
    %c0_185 = arith.constant 0 : index
    %787 = vector.load %arg18[%c16_184, %c0_185] : memref<32x8xf32, #tpu.memory_space<vmem>>, vector<2x8xf32>
    tpu.vector_store %arg18[%c16_184, %c0_185], %786 {strides = array<i32>} : memref<32x8xf32, #tpu.memory_space<vmem>>, vector<2x8xf32>,
    %788 = vector.extract_strided_slice %785 {offsets = [2, 0], sizes = [2, 8], strides = [1, 1]} : vector<4x8xf32> to vector<2x8xf32>
    %c14_186 = arith.constant 14 : index
    %c0_187 = arith.constant 0 : index
    %789 = vector.load %arg19[%c14_186, %c0_187] : memref<32x8xf32, #tpu.memory_space<vmem>>, vector<2x8xf32>
    tpu.vector_store %arg19[%c14_186, %c0_187], %788 {strides = array<i32>} : memref<32x8xf32, #tpu.memory_space<vmem>>, vector<2x8xf32>,
    %790 = tpu.concatenate %785, %785 in 1 : vector<4x8xf32>, vector<4x8xf32> -> vector<4x16xf32>
    %791 = arith.mulf %790, %91 : vector<4x16xf32>
    %cst_188 = arith.constant dense<0.000000e+00> : vector<4x32xf32>
    %792 = tpu.matmul %791, %544, %cst_188 {dimension_numbers = #tpu.dot_dimension_numbers<[1], [0], [0], [1], [0, 0, 1, 1], [], []>} : vector<4x16xf32>, vector<16x32xf32>, vector<4x32xf32> -> vector<4x32xf32>
    %793 = vector.extract_strided_slice %542 {offsets = [18, 0], sizes = [2, 32], strides = [1, 1]} : vector<32x32xf32> to vector<2x32xf32>
    %794 = vector.extract_strided_slice %543 {offsets = [12, 0], sizes = [2, 32], strides = [1, 1]} : vector<32x32xf32> to vector<2x32xf32>
    %795 = tpu.concatenate %793, %794 in 0 : vector<2x32xf32>, vector<2x32xf32> -> vector<4x32xf32>
    %796 = arith.addf %792, %795 : vector<4x32xf32>
    %797 = vector.extract_strided_slice %796 {offsets = [0, 0], sizes = [4, 24], strides = [1, 1]} : vector<4x32xf32> to vector<4x24xf32>
    %798 = arith.negf %797 : vector<4x24xf32>
    %799 = math.exp %798 : vector<4x24xf32>
    %cst_189 = arith.constant 1.000000e+00 : f32
    %800 = vector.broadcast %cst_189 : f32 to vector<4x24xf32>
    %801 = arith.addf %800, %799 : vector<4x24xf32>
    %802 = arith.divf %800, %801 : vector<4x24xf32>
    %803 = vector.extract_strided_slice %796 {offsets = [0, 24], sizes = [4, 8], strides = [1, 1]} : vector<4x32xf32> to vector<4x8xf32>
    %804 = math.tanh %803 : vector<4x8xf32>
    %805 = vector.extract_strided_slice %802 {offsets = [0, 8], sizes = [4, 8], strides = [1, 1]} : vector<4x24xf32> to vector<4x8xf32>
    %806 = arith.mulf %805, %782 : vector<4x8xf32>
    %807 = vector.extract_strided_slice %802 {offsets = [0, 0], sizes = [4, 8], strides = [1, 1]} : vector<4x24xf32> to vector<4x8xf32>
    %808 = arith.mulf %807, %804 : vector<4x8xf32>
    %809 = arith.addf %806, %808 : vector<4x8xf32>
    %810 = vector.extract_strided_slice %802 {offsets = [0, 16], sizes = [4, 8], strides = [1, 1]} : vector<4x24xf32> to vector<4x8xf32>
    %811 = math.tanh %809 : vector<4x8xf32>
    %812 = arith.mulf %810, %811 : vector<4x8xf32>
    %813 = vector.extract_strided_slice %812 {offsets = [0, 0], sizes = [2, 8], strides = [1, 1]} : vector<4x8xf32> to vector<2x8xf32>
    %c18_190 = arith.constant 18 : index
    %c0_191 = arith.constant 0 : index
    %814 = vector.load %arg18[%c18_190, %c0_191] : memref<32x8xf32, #tpu.memory_space<vmem>>, vector<2x8xf32>
    tpu.vector_store %arg18[%c18_190, %c0_191], %813 {strides = array<i32>} : memref<32x8xf32, #tpu.memory_space<vmem>>, vector<2x8xf32>,
    %815 = vector.extract_strided_slice %812 {offsets = [2, 0], sizes = [2, 8], strides = [1, 1]} : vector<4x8xf32> to vector<2x8xf32>
    %c12_192 = arith.constant 12 : index
    %c0_193 = arith.constant 0 : index
    %816 = vector.load %arg19[%c12_192, %c0_193] : memref<32x8xf32, #tpu.memory_space<vmem>>, vector<2x8xf32>
    tpu.vector_store %arg19[%c12_192, %c0_193], %815 {strides = array<i32>} : memref<32x8xf32, #tpu.memory_space<vmem>>, vector<2x8xf32>,
    %817 = tpu.concatenate %812, %812 in 1 : vector<4x8xf32>, vector<4x8xf32> -> vector<4x16xf32>
    %818 = arith.mulf %817, %91 : vector<4x16xf32>
    %cst_194 = arith.constant dense<0.000000e+00> : vector<4x32xf32>
    %819 = tpu.matmul %818, %544, %cst_194 {dimension_numbers = #tpu.dot_dimension_numbers<[1], [0], [0], [1], [0, 0, 1, 1], [], []>} : vector<4x16xf32>, vector<16x32xf32>, vector<4x32xf32> -> vector<4x32xf32>
    %820 = vector.extract_strided_slice %542 {offsets = [20, 0], sizes = [2, 32], strides = [1, 1]} : vector<32x32xf32> to vector<2x32xf32>
    %821 = vector.extract_strided_slice %543 {offsets = [10, 0], sizes = [2, 32], strides = [1, 1]} : vector<32x32xf32> to vector<2x32xf32>
    %822 = tpu.concatenate %820, %821 in 0 : vector<2x32xf32>, vector<2x32xf32> -> vector<4x32xf32>
    %823 = arith.addf %819, %822 : vector<4x32xf32>
    %824 = vector.extract_strided_slice %823 {offsets = [0, 0], sizes = [4, 24], strides = [1, 1]} : vector<4x32xf32> to vector<4x24xf32>
    %825 = arith.negf %824 : vector<4x24xf32>
    %826 = math.exp %825 : vector<4x24xf32>
    %cst_195 = arith.constant 1.000000e+00 : f32
    %827 = vector.broadcast %cst_195 : f32 to vector<4x24xf32>
    %828 = arith.addf %827, %826 : vector<4x24xf32>
    %829 = arith.divf %827, %828 : vector<4x24xf32>
    %830 = vector.extract_strided_slice %823 {offsets = [0, 24], sizes = [4, 8], strides = [1, 1]} : vector<4x32xf32> to vector<4x8xf32>
    %831 = math.tanh %830 : vector<4x8xf32>
    %832 = vector.extract_strided_slice %829 {offsets = [0, 8], sizes = [4, 8], strides = [1, 1]} : vector<4x24xf32> to vector<4x8xf32>
    %833 = arith.mulf %832, %809 : vector<4x8xf32>
    %834 = vector.extract_strided_slice %829 {offsets = [0, 0], sizes = [4, 8], strides = [1, 1]} : vector<4x24xf32> to vector<4x8xf32>
    %835 = arith.mulf %834, %831 : vector<4x8xf32>
    %836 = arith.addf %833, %835 : vector<4x8xf32>
    %837 = vector.extract_strided_slice %829 {offsets = [0, 16], sizes = [4, 8], strides = [1, 1]} : vector<4x24xf32> to vector<4x8xf32>
    %838 = math.tanh %836 : vector<4x8xf32>
    %839 = arith.mulf %837, %838 : vector<4x8xf32>
    %840 = vector.extract_strided_slice %839 {offsets = [0, 0], sizes = [2, 8], strides = [1, 1]} : vector<4x8xf32> to vector<2x8xf32>
    %c20_196 = arith.constant 20 : index
    %c0_197 = arith.constant 0 : index
    %841 = vector.load %arg18[%c20_196, %c0_197] : memref<32x8xf32, #tpu.memory_space<vmem>>, vector<2x8xf32>
    tpu.vector_store %arg18[%c20_196, %c0_197], %840 {strides = array<i32>} : memref<32x8xf32, #tpu.memory_space<vmem>>, vector<2x8xf32>,
    %842 = vector.extract_strided_slice %839 {offsets = [2, 0], sizes = [2, 8], strides = [1, 1]} : vector<4x8xf32> to vector<2x8xf32>
    %c10_198 = arith.constant 10 : index
    %c0_199 = arith.constant 0 : index
    %843 = vector.load %arg19[%c10_198, %c0_199] : memref<32x8xf32, #tpu.memory_space<vmem>>, vector<2x8xf32>
    tpu.vector_store %arg19[%c10_198, %c0_199], %842 {strides = array<i32>} : memref<32x8xf32, #tpu.memory_space<vmem>>, vector<2x8xf32>,
    %844 = tpu.concatenate %839, %839 in 1 : vector<4x8xf32>, vector<4x8xf32> -> vector<4x16xf32>
    %845 = arith.mulf %844, %91 : vector<4x16xf32>
    %cst_200 = arith.constant dense<0.000000e+00> : vector<4x32xf32>
    %846 = tpu.matmul %845, %544, %cst_200 {dimension_numbers = #tpu.dot_dimension_numbers<[1], [0], [0], [1], [0, 0, 1, 1], [], []>} : vector<4x16xf32>, vector<16x32xf32>, vector<4x32xf32> -> vector<4x32xf32>
    %847 = vector.extract_strided_slice %542 {offsets = [22, 0], sizes = [2, 32], strides = [1, 1]} : vector<32x32xf32> to vector<2x32xf32>
    %848 = vector.extract_strided_slice %543 {offsets = [8, 0], sizes = [2, 32], strides = [1, 1]} : vector<32x32xf32> to vector<2x32xf32>
    %849 = tpu.concatenate %847, %848 in 0 : vector<2x32xf32>, vector<2x32xf32> -> vector<4x32xf32>
    %850 = arith.addf %846, %849 : vector<4x32xf32>
    %851 = vector.extract_strided_slice %850 {offsets = [0, 0], sizes = [4, 24], strides = [1, 1]} : vector<4x32xf32> to vector<4x24xf32>
    %852 = arith.negf %851 : vector<4x24xf32>
    %853 = math.exp %852 : vector<4x24xf32>
    %cst_201 = arith.constant 1.000000e+00 : f32
    %854 = vector.broadcast %cst_201 : f32 to vector<4x24xf32>
    %855 = arith.addf %854, %853 : vector<4x24xf32>
    %856 = arith.divf %854, %855 : vector<4x24xf32>
    %857 = vector.extract_strided_slice %850 {offsets = [0, 24], sizes = [4, 8], strides = [1, 1]} : vector<4x32xf32> to vector<4x8xf32>
    %858 = math.tanh %857 : vector<4x8xf32>
    %859 = vector.extract_strided_slice %856 {offsets = [0, 8], sizes = [4, 8], strides = [1, 1]} : vector<4x24xf32> to vector<4x8xf32>
    %860 = arith.mulf %859, %836 : vector<4x8xf32>
    %861 = vector.extract_strided_slice %856 {offsets = [0, 0], sizes = [4, 8], strides = [1, 1]} : vector<4x24xf32> to vector<4x8xf32>
    %862 = arith.mulf %861, %858 : vector<4x8xf32>
    %863 = arith.addf %860, %862 : vector<4x8xf32>
    %864 = vector.extract_strided_slice %856 {offsets = [0, 16], sizes = [4, 8], strides = [1, 1]} : vector<4x24xf32> to vector<4x8xf32>
    %865 = math.tanh %863 : vector<4x8xf32>
    %866 = arith.mulf %864, %865 : vector<4x8xf32>
    %867 = vector.extract_strided_slice %866 {offsets = [0, 0], sizes = [2, 8], strides = [1, 1]} : vector<4x8xf32> to vector<2x8xf32>
    %c22_202 = arith.constant 22 : index
    %c0_203 = arith.constant 0 : index
    %868 = vector.load %arg18[%c22_202, %c0_203] : memref<32x8xf32, #tpu.memory_space<vmem>>, vector<2x8xf32>
    tpu.vector_store %arg18[%c22_202, %c0_203], %867 {strides = array<i32>} : memref<32x8xf32, #tpu.memory_space<vmem>>, vector<2x8xf32>,
    %869 = vector.extract_strided_slice %866 {offsets = [2, 0], sizes = [2, 8], strides = [1, 1]} : vector<4x8xf32> to vector<2x8xf32>
    %c8_204 = arith.constant 8 : index
    %c0_205 = arith.constant 0 : index
    %870 = vector.load %arg19[%c8_204, %c0_205] : memref<32x8xf32, #tpu.memory_space<vmem>>, vector<2x8xf32>
    tpu.vector_store %arg19[%c8_204, %c0_205], %869 {strides = array<i32>} : memref<32x8xf32, #tpu.memory_space<vmem>>, vector<2x8xf32>,
    %871 = tpu.concatenate %866, %866 in 1 : vector<4x8xf32>, vector<4x8xf32> -> vector<4x16xf32>
    %872 = arith.mulf %871, %91 : vector<4x16xf32>
    %cst_206 = arith.constant dense<0.000000e+00> : vector<4x32xf32>
    %873 = tpu.matmul %872, %544, %cst_206 {dimension_numbers = #tpu.dot_dimension_numbers<[1], [0], [0], [1], [0, 0, 1, 1], [], []>} : vector<4x16xf32>, vector<16x32xf32>, vector<4x32xf32> -> vector<4x32xf32>
    %874 = vector.extract_strided_slice %542 {offsets = [24, 0], sizes = [2, 32], strides = [1, 1]} : vector<32x32xf32> to vector<2x32xf32>
    %875 = vector.extract_strided_slice %543 {offsets = [6, 0], sizes = [2, 32], strides = [1, 1]} : vector<32x32xf32> to vector<2x32xf32>
    %876 = tpu.concatenate %874, %875 in 0 : vector<2x32xf32>, vector<2x32xf32> -> vector<4x32xf32>
    %877 = arith.addf %873, %876 : vector<4x32xf32>
    %878 = vector.extract_strided_slice %877 {offsets = [0, 0], sizes = [4, 24], strides = [1, 1]} : vector<4x32xf32> to vector<4x24xf32>
    %879 = arith.negf %878 : vector<4x24xf32>
    %880 = math.exp %879 : vector<4x24xf32>
    %cst_207 = arith.constant 1.000000e+00 : f32
    %881 = vector.broadcast %cst_207 : f32 to vector<4x24xf32>
    %882 = arith.addf %881, %880 : vector<4x24xf32>
    %883 = arith.divf %881, %882 : vector<4x24xf32>
    %884 = vector.extract_strided_slice %877 {offsets = [0, 24], sizes = [4, 8], strides = [1, 1]} : vector<4x32xf32> to vector<4x8xf32>
    %885 = math.tanh %884 : vector<4x8xf32>
    %886 = vector.extract_strided_slice %883 {offsets = [0, 8], sizes = [4, 8], strides = [1, 1]} : vector<4x24xf32> to vector<4x8xf32>
    %887 = arith.mulf %886, %863 : vector<4x8xf32>
    %888 = vector.extract_strided_slice %883 {offsets = [0, 0], sizes = [4, 8], strides = [1, 1]} : vector<4x24xf32> to vector<4x8xf32>
    %889 = arith.mulf %888, %885 : vector<4x8xf32>
    %890 = arith.addf %887, %889 : vector<4x8xf32>
    %891 = vector.extract_strided_slice %883 {offsets = [0, 16], sizes = [4, 8], strides = [1, 1]} : vector<4x24xf32> to vector<4x8xf32>
    %892 = math.tanh %890 : vector<4x8xf32>
    %893 = arith.mulf %891, %892 : vector<4x8xf32>
    %894 = vector.extract_strided_slice %893 {offsets = [0, 0], sizes = [2, 8], strides = [1, 1]} : vector<4x8xf32> to vector<2x8xf32>
    %c24_208 = arith.constant 24 : index
    %c0_209 = arith.constant 0 : index
    %895 = vector.load %arg18[%c24_208, %c0_209] : memref<32x8xf32, #tpu.memory_space<vmem>>, vector<2x8xf32>
    tpu.vector_store %arg18[%c24_208, %c0_209], %894 {strides = array<i32>} : memref<32x8xf32, #tpu.memory_space<vmem>>, vector<2x8xf32>,
    %896 = vector.extract_strided_slice %893 {offsets = [2, 0], sizes = [2, 8], strides = [1, 1]} : vector<4x8xf32> to vector<2x8xf32>
    %c6_210 = arith.constant 6 : index
    %c0_211 = arith.constant 0 : index
    %897 = vector.load %arg19[%c6_210, %c0_211] : memref<32x8xf32, #tpu.memory_space<vmem>>, vector<2x8xf32>
    tpu.vector_store %arg19[%c6_210, %c0_211], %896 {strides = array<i32>} : memref<32x8xf32, #tpu.memory_space<vmem>>, vector<2x8xf32>,
    %898 = tpu.concatenate %893, %893 in 1 : vector<4x8xf32>, vector<4x8xf32> -> vector<4x16xf32>
    %899 = arith.mulf %898, %91 : vector<4x16xf32>
    %cst_212 = arith.constant dense<0.000000e+00> : vector<4x32xf32>
    %900 = tpu.matmul %899, %544, %cst_212 {dimension_numbers = #tpu.dot_dimension_numbers<[1], [0], [0], [1], [0, 0, 1, 1], [], []>} : vector<4x16xf32>, vector<16x32xf32>, vector<4x32xf32> -> vector<4x32xf32>
    %901 = vector.extract_strided_slice %542 {offsets = [26, 0], sizes = [2, 32], strides = [1, 1]} : vector<32x32xf32> to vector<2x32xf32>
    %902 = vector.extract_strided_slice %543 {offsets = [4, 0], sizes = [2, 32], strides = [1, 1]} : vector<32x32xf32> to vector<2x32xf32>
    %903 = tpu.concatenate %901, %902 in 0 : vector<2x32xf32>, vector<2x32xf32> -> vector<4x32xf32>
    %904 = arith.addf %900, %903 : vector<4x32xf32>
    %905 = vector.extract_strided_slice %904 {offsets = [0, 0], sizes = [4, 24], strides = [1, 1]} : vector<4x32xf32> to vector<4x24xf32>
    %906 = arith.negf %905 : vector<4x24xf32>
    %907 = math.exp %906 : vector<4x24xf32>
    %cst_213 = arith.constant 1.000000e+00 : f32
    %908 = vector.broadcast %cst_213 : f32 to vector<4x24xf32>
    %909 = arith.addf %908, %907 : vector<4x24xf32>
    %910 = arith.divf %908, %909 : vector<4x24xf32>
    %911 = vector.extract_strided_slice %904 {offsets = [0, 24], sizes = [4, 8], strides = [1, 1]} : vector<4x32xf32> to vector<4x8xf32>
    %912 = math.tanh %911 : vector<4x8xf32>
    %913 = vector.extract_strided_slice %910 {offsets = [0, 8], sizes = [4, 8], strides = [1, 1]} : vector<4x24xf32> to vector<4x8xf32>
    %914 = arith.mulf %913, %890 : vector<4x8xf32>
    %915 = vector.extract_strided_slice %910 {offsets = [0, 0], sizes = [4, 8], strides = [1, 1]} : vector<4x24xf32> to vector<4x8xf32>
    %916 = arith.mulf %915, %912 : vector<4x8xf32>
    %917 = arith.addf %914, %916 : vector<4x8xf32>
    %918 = vector.extract_strided_slice %910 {offsets = [0, 16], sizes = [4, 8], strides = [1, 1]} : vector<4x24xf32> to vector<4x8xf32>
    %919 = math.tanh %917 : vector<4x8xf32>
    %920 = arith.mulf %918, %919 : vector<4x8xf32>
    %921 = vector.extract_strided_slice %920 {offsets = [0, 0], sizes = [2, 8], strides = [1, 1]} : vector<4x8xf32> to vector<2x8xf32>
    %c26_214 = arith.constant 26 : index
    %c0_215 = arith.constant 0 : index
    %922 = vector.load %arg18[%c26_214, %c0_215] : memref<32x8xf32, #tpu.memory_space<vmem>>, vector<2x8xf32>
    tpu.vector_store %arg18[%c26_214, %c0_215], %921 {strides = array<i32>} : memref<32x8xf32, #tpu.memory_space<vmem>>, vector<2x8xf32>,
    %923 = vector.extract_strided_slice %920 {offsets = [2, 0], sizes = [2, 8], strides = [1, 1]} : vector<4x8xf32> to vector<2x8xf32>
    %c4_216 = arith.constant 4 : index
    %c0_217 = arith.constant 0 : index
    %924 = vector.load %arg19[%c4_216, %c0_217] : memref<32x8xf32, #tpu.memory_space<vmem>>, vector<2x8xf32>
    tpu.vector_store %arg19[%c4_216, %c0_217], %923 {strides = array<i32>} : memref<32x8xf32, #tpu.memory_space<vmem>>, vector<2x8xf32>,
    %925 = tpu.concatenate %920, %920 in 1 : vector<4x8xf32>, vector<4x8xf32> -> vector<4x16xf32>
    %926 = arith.mulf %925, %91 : vector<4x16xf32>
    %cst_218 = arith.constant dense<0.000000e+00> : vector<4x32xf32>
    %927 = tpu.matmul %926, %544, %cst_218 {dimension_numbers = #tpu.dot_dimension_numbers<[1], [0], [0], [1], [0, 0, 1, 1], [], []>} : vector<4x16xf32>, vector<16x32xf32>, vector<4x32xf32> -> vector<4x32xf32>
    %928 = vector.extract_strided_slice %542 {offsets = [28, 0], sizes = [2, 32], strides = [1, 1]} : vector<32x32xf32> to vector<2x32xf32>
    %929 = vector.extract_strided_slice %543 {offsets = [2, 0], sizes = [2, 32], strides = [1, 1]} : vector<32x32xf32> to vector<2x32xf32>
    %930 = tpu.concatenate %928, %929 in 0 : vector<2x32xf32>, vector<2x32xf32> -> vector<4x32xf32>
    %931 = arith.addf %927, %930 : vector<4x32xf32>
    %932 = vector.extract_strided_slice %931 {offsets = [0, 0], sizes = [4, 24], strides = [1, 1]} : vector<4x32xf32> to vector<4x24xf32>
    %933 = arith.negf %932 : vector<4x24xf32>
    %934 = math.exp %933 : vector<4x24xf32>
    %cst_219 = arith.constant 1.000000e+00 : f32
    %935 = vector.broadcast %cst_219 : f32 to vector<4x24xf32>
    %936 = arith.addf %935, %934 : vector<4x24xf32>
    %937 = arith.divf %935, %936 : vector<4x24xf32>
    %938 = vector.extract_strided_slice %931 {offsets = [0, 24], sizes = [4, 8], strides = [1, 1]} : vector<4x32xf32> to vector<4x8xf32>
    %939 = math.tanh %938 : vector<4x8xf32>
    %940 = vector.extract_strided_slice %937 {offsets = [0, 8], sizes = [4, 8], strides = [1, 1]} : vector<4x24xf32> to vector<4x8xf32>
    %941 = arith.mulf %940, %917 : vector<4x8xf32>
    %942 = vector.extract_strided_slice %937 {offsets = [0, 0], sizes = [4, 8], strides = [1, 1]} : vector<4x24xf32> to vector<4x8xf32>
    %943 = arith.mulf %942, %939 : vector<4x8xf32>
    %944 = arith.addf %941, %943 : vector<4x8xf32>
    %945 = vector.extract_strided_slice %937 {offsets = [0, 16], sizes = [4, 8], strides = [1, 1]} : vector<4x24xf32> to vector<4x8xf32>
    %946 = math.tanh %944 : vector<4x8xf32>
    %947 = arith.mulf %945, %946 : vector<4x8xf32>
    %948 = vector.extract_strided_slice %947 {offsets = [0, 0], sizes = [2, 8], strides = [1, 1]} : vector<4x8xf32> to vector<2x8xf32>
    %c28_220 = arith.constant 28 : index
    %c0_221 = arith.constant 0 : index
    %949 = vector.load %arg18[%c28_220, %c0_221] : memref<32x8xf32, #tpu.memory_space<vmem>>, vector<2x8xf32>
    tpu.vector_store %arg18[%c28_220, %c0_221], %948 {strides = array<i32>} : memref<32x8xf32, #tpu.memory_space<vmem>>, vector<2x8xf32>,
    %950 = vector.extract_strided_slice %947 {offsets = [2, 0], sizes = [2, 8], strides = [1, 1]} : vector<4x8xf32> to vector<2x8xf32>
    %c2_222 = arith.constant 2 : index
    %c0_223 = arith.constant 0 : index
    %951 = vector.load %arg19[%c2_222, %c0_223] : memref<32x8xf32, #tpu.memory_space<vmem>>, vector<2x8xf32>
    tpu.vector_store %arg19[%c2_222, %c0_223], %950 {strides = array<i32>} : memref<32x8xf32, #tpu.memory_space<vmem>>, vector<2x8xf32>,
    %952 = tpu.concatenate %947, %947 in 1 : vector<4x8xf32>, vector<4x8xf32> -> vector<4x16xf32>
    %953 = arith.mulf %952, %91 : vector<4x16xf32>
    %cst_224 = arith.constant dense<0.000000e+00> : vector<4x32xf32>
    %954 = tpu.matmul %953, %544, %cst_224 {dimension_numbers = #tpu.dot_dimension_numbers<[1], [0], [0], [1], [0, 0, 1, 1], [], []>} : vector<4x16xf32>, vector<16x32xf32>, vector<4x32xf32> -> vector<4x32xf32>
    %955 = vector.extract_strided_slice %542 {offsets = [30, 0], sizes = [2, 32], strides = [1, 1]} : vector<32x32xf32> to vector<2x32xf32>
    %956 = vector.extract_strided_slice %543 {offsets = [0, 0], sizes = [2, 32], strides = [1, 1]} : vector<32x32xf32> to vector<2x32xf32>
    %957 = tpu.concatenate %955, %956 in 0 : vector<2x32xf32>, vector<2x32xf32> -> vector<4x32xf32>
    %958 = arith.addf %954, %957 : vector<4x32xf32>
    %959 = vector.extract_strided_slice %958 {offsets = [0, 0], sizes = [4, 24], strides = [1, 1]} : vector<4x32xf32> to vector<4x24xf32>
    %960 = arith.negf %959 : vector<4x24xf32>
    %961 = math.exp %960 : vector<4x24xf32>
    %cst_225 = arith.constant 1.000000e+00 : f32
    %962 = vector.broadcast %cst_225 : f32 to vector<4x24xf32>
    %963 = arith.addf %962, %961 : vector<4x24xf32>
    %964 = arith.divf %962, %963 : vector<4x24xf32>
    %965 = vector.extract_strided_slice %958 {offsets = [0, 24], sizes = [4, 8], strides = [1, 1]} : vector<4x32xf32> to vector<4x8xf32>
    %966 = math.tanh %965 : vector<4x8xf32>
    %967 = vector.extract_strided_slice %964 {offsets = [0, 8], sizes = [4, 8], strides = [1, 1]} : vector<4x24xf32> to vector<4x8xf32>
    %968 = arith.mulf %967, %944 : vector<4x8xf32>
    %969 = vector.extract_strided_slice %964 {offsets = [0, 0], sizes = [4, 8], strides = [1, 1]} : vector<4x24xf32> to vector<4x8xf32>
    %970 = arith.mulf %969, %966 : vector<4x8xf32>
    %971 = arith.addf %968, %970 : vector<4x8xf32>
    %972 = vector.extract_strided_slice %964 {offsets = [0, 16], sizes = [4, 8], strides = [1, 1]} : vector<4x24xf32> to vector<4x8xf32>
    %973 = math.tanh %971 : vector<4x8xf32>
    %974 = arith.mulf %972, %973 : vector<4x8xf32>
    %975 = vector.extract_strided_slice %974 {offsets = [0, 0], sizes = [2, 8], strides = [1, 1]} : vector<4x8xf32> to vector<2x8xf32>
    %c30_226 = arith.constant 30 : index
    %c0_227 = arith.constant 0 : index
    %976 = vector.load %arg18[%c30_226, %c0_227] : memref<32x8xf32, #tpu.memory_space<vmem>>, vector<2x8xf32>
    tpu.vector_store %arg18[%c30_226, %c0_227], %975 {strides = array<i32>} : memref<32x8xf32, #tpu.memory_space<vmem>>, vector<2x8xf32>,
    %977 = vector.extract_strided_slice %974 {offsets = [2, 0], sizes = [2, 8], strides = [1, 1]} : vector<4x8xf32> to vector<2x8xf32>
    %c0_228 = arith.constant 0 : index
    %c0_229 = arith.constant 0 : index
    %978 = vector.load %arg19[%c0_228, %c0_229] : memref<32x8xf32, #tpu.memory_space<vmem>>, vector<2x8xf32>
    tpu.vector_store %arg19[%c0_228, %c0_229], %977 {strides = array<i32>} : memref<32x8xf32, #tpu.memory_space<vmem>>, vector<2x8xf32>,
    %c0_230 = arith.constant 0 : index
    %c0_231 = arith.constant 0 : index
    %979 = vector.load %arg18[%c0_230, %c0_231] : memref<32x8xf32, #tpu.memory_space<vmem>>, vector<32x8xf32>
    %c0_232 = arith.constant 0 : index
    %c0_233 = arith.constant 0 : index
    %980 = vector.load %arg19[%c0_232, %c0_233] : memref<32x8xf32, #tpu.memory_space<vmem>>, vector<32x8xf32>
    %981 = vector.extract_strided_slice %979 {offsets = [6, 0], sizes = [1, 8], strides = [1, 1]} : vector<32x8xf32> to vector<1x8xf32>
    %982 = vector.extract_strided_slice %980 {offsets = [0, 0], sizes = [1, 8], strides = [1, 1]} : vector<32x8xf32> to vector<1x8xf32>
    %983 = vector.extract_strided_slice %979 {offsets = [7, 0], sizes = [1, 8], strides = [1, 1]} : vector<32x8xf32> to vector<1x8xf32>
    %984 = vector.extract_strided_slice %980 {offsets = [1, 0], sizes = [1, 8], strides = [1, 1]} : vector<32x8xf32> to vector<1x8xf32>
    %985 = tpu.concatenate %981, %982, %983, %984 in 1 : vector<1x8xf32>, vector<1x8xf32>, vector<1x8xf32>, vector<1x8xf32> -> vector<1x32xf32>
    %986 = vector.extract_strided_slice %979 {offsets = [14, 0], sizes = [1, 8], strides = [1, 1]} : vector<32x8xf32> to vector<1x8xf32>
    %987 = vector.extract_strided_slice %980 {offsets = [8, 0], sizes = [1, 8], strides = [1, 1]} : vector<32x8xf32> to vector<1x8xf32>
    %988 = vector.extract_strided_slice %979 {offsets = [15, 0], sizes = [1, 8], strides = [1, 1]} : vector<32x8xf32> to vector<1x8xf32>
    %989 = vector.extract_strided_slice %980 {offsets = [9, 0], sizes = [1, 8], strides = [1, 1]} : vector<32x8xf32> to vector<1x8xf32>
    %990 = tpu.concatenate %986, %987, %988, %989 in 1 : vector<1x8xf32>, vector<1x8xf32>, vector<1x8xf32>, vector<1x8xf32> -> vector<1x32xf32>
    %991 = vector.extract_strided_slice %979 {offsets = [22, 0], sizes = [1, 8], strides = [1, 1]} : vector<32x8xf32> to vector<1x8xf32>
    %992 = vector.extract_strided_slice %980 {offsets = [16, 0], sizes = [1, 8], strides = [1, 1]} : vector<32x8xf32> to vector<1x8xf32>
    %993 = vector.extract_strided_slice %979 {offsets = [23, 0], sizes = [1, 8], strides = [1, 1]} : vector<32x8xf32> to vector<1x8xf32>
    %994 = vector.extract_strided_slice %980 {offsets = [17, 0], sizes = [1, 8], strides = [1, 1]} : vector<32x8xf32> to vector<1x8xf32>
    %995 = tpu.concatenate %991, %992, %993, %994 in 1 : vector<1x8xf32>, vector<1x8xf32>, vector<1x8xf32>, vector<1x8xf32> -> vector<1x32xf32>
    %996 = vector.extract_strided_slice %979 {offsets = [30, 0], sizes = [1, 8], strides = [1, 1]} : vector<32x8xf32> to vector<1x8xf32>
    %997 = vector.extract_strided_slice %980 {offsets = [24, 0], sizes = [1, 8], strides = [1, 1]} : vector<32x8xf32> to vector<1x8xf32>
    %998 = vector.extract_strided_slice %979 {offsets = [31, 0], sizes = [1, 8], strides = [1, 1]} : vector<32x8xf32> to vector<1x8xf32>
    %999 = vector.extract_strided_slice %980 {offsets = [25, 0], sizes = [1, 8], strides = [1, 1]} : vector<32x8xf32> to vector<1x8xf32>
    %1000 = tpu.concatenate %996, %997, %998, %999 in 1 : vector<1x8xf32>, vector<1x8xf32>, vector<1x8xf32>, vector<1x8xf32> -> vector<1x32xf32>
    %1001 = tpu.concatenate %985, %990, %995, %1000 in 0 : vector<1x32xf32>, vector<1x32xf32>, vector<1x32xf32>, vector<1x32xf32> -> vector<4x32xf32>
    %1002 = tpu.concatenate %1001, %1001, %1001, %1001 in 1 : vector<4x32xf32>, vector<4x32xf32>, vector<4x32xf32>, vector<4x32xf32> -> vector<4x128xf32>
    %c0_234 = arith.constant 0 : index
    %c0_235 = arith.constant 0 : index
    %1003 = vector.load %arg17[%c0_234, %c0_235] : memref<4x128xf32, #tpu.memory_space<vmem>>, vector<4x128xf32>
    tpu.vector_store %arg17[%c0_234, %c0_235], %1002 {strides = array<i32>} : memref<4x128xf32, #tpu.memory_space<vmem>>, vector<4x128xf32>,
    return
  }
  func.func @transform_0(%arg0: i32) -> (i32, i32) {
    %c0_i32 = arith.constant 0 : i32
    %c0_i32_0 = arith.constant 0 : i32
    %c0_i32_1 = arith.constant 0 : i32
    return %c0_i32, %c0_i32_0 : i32, i32
  }
  func.func @transform_1(%arg0: i32) -> (i32, i32) {
    %c0_i32 = arith.constant 0 : i32
    %c0_i32_0 = arith.constant 0 : i32
    %c0_i32_1 = arith.constant 0 : i32
    return %c0_i32, %c0_i32_0 : i32, i32
  }
  func.func @transform_2(%arg0: i32) -> (i32, i32) {
    %c0_i32 = arith.constant 0 : i32
    %c0_i32_0 = arith.constant 0 : i32
    %c0_i32_1 = arith.constant 0 : i32
    return %c0_i32, %c0_i32_0 : i32, i32
  }
  func.func @transform_3(%arg0: i32) -> (i32, i32) {
    %c0_i32 = arith.constant 0 : i32
    %c0_i32_0 = arith.constant 0 : i32
    %c0_i32_1 = arith.constant 0 : i32
    return %c0_i32, %c0_i32_0 : i32, i32
  }
  func.func @transform_4(%arg0: i32) -> (i32, i32) {
    %c0_i32 = arith.constant 0 : i32
    %c0_i32_0 = arith.constant 0 : i32
    %c0_i32_1 = arith.constant 0 : i32
    return %c0_i32, %c0_i32_0 : i32, i32
  }
  func.func @transform_5(%arg0: i32) -> (i32, i32) {
    %c0_i32 = arith.constant 0 : i32
    %c0_i32_0 = arith.constant 0 : i32
    %c0_i32_1 = arith.constant 0 : i32
    return %c0_i32, %c0_i32_0 : i32, i32
  }
  func.func @transform_6(%arg0: i32) -> (i32, i32) {
    %c0_i32 = arith.constant 0 : i32
    %c0_i32_0 = arith.constant 0 : i32
    %c0_i32_1 = arith.constant 0 : i32
    return %c0_i32, %c0_i32_0 : i32, i32
  }
  func.func @transform_7(%arg0: i32) -> (i32, i32) {
    %c0_i32 = arith.constant 0 : i32
    %c0_i32_0 = arith.constant 0 : i32
    %c0_i32_1 = arith.constant 0 : i32
    return %c0_i32, %c0_i32_0 : i32, i32
  }
  func.func @transform_8(%arg0: i32) -> (i32, i32) {
    %c0_i32 = arith.constant 0 : i32
    %c0_i32_0 = arith.constant 0 : i32
    %c0_i32_1 = arith.constant 0 : i32
    return %c0_i32, %c0_i32_0 : i32, i32
  }
  func.func @transform_9(%arg0: i32) -> (i32, i32) {
    %c0_i32 = arith.constant 0 : i32
    %c0_i32_0 = arith.constant 0 : i32
    %c0_i32_1 = arith.constant 0 : i32
    return %c0_i32, %c0_i32_0 : i32, i32
  }
  func.func @transform_10(%arg0: i32) -> (i32, i32) {
    %c0_i32 = arith.constant 0 : i32
    %c0_i32_0 = arith.constant 0 : i32
    %c0_i32_1 = arith.constant 0 : i32
    return %c0_i32, %c0_i32_0 : i32, i32
  }
  func.func @transform_11(%arg0: i32) -> (i32, i32) {
    %c0_i32 = arith.constant 0 : i32
    %c0_i32_0 = arith.constant 0 : i32
    %c0_i32_1 = arith.constant 0 : i32
    return %c0_i32, %c0_i32_0 : i32, i32
  }
  func.func @transform_12(%arg0: i32) -> (i32, i32) {
    %c0_i32 = arith.constant 0 : i32
    %c0_i32_0 = arith.constant 0 : i32
    %c0_i32_1 = arith.constant 0 : i32
    return %c0_i32, %c0_i32_0 : i32, i32
  }
  func.func @transform_13(%arg0: i32) -> (i32, i32) {
    %c0_i32 = arith.constant 0 : i32
    %c0_i32_0 = arith.constant 0 : i32
    %c0_i32_1 = arith.constant 0 : i32
    return %c0_i32, %c0_i32_0 : i32, i32
  }
  func.func @transform_14(%arg0: i32) -> (i32, i32) {
    %c0_i32 = arith.constant 0 : i32
    %c0_i32_0 = arith.constant 0 : i32
    %c0_i32_1 = arith.constant 0 : i32
    return %c0_i32, %c0_i32_0 : i32, i32
  }
  func.func @transform_15(%arg0: i32) -> (i32, i32) {
    %c0_i32 = arith.constant 0 : i32
    %c0_i32_0 = arith.constant 0 : i32
    %c0_i32_1 = arith.constant 0 : i32
    return %c0_i32, %c0_i32_0 : i32, i32
  }
  func.func @transform_16(%arg0: i32) -> (i32, i32) {
    %c0_i32 = arith.constant 0 : i32
    %c0_i32_0 = arith.constant 0 : i32
    %c0_i32_1 = arith.constant 0 : i32
    return %c0_i32, %c0_i32_0 : i32, i32
  }
}

</mosaic_0001>

<bundles_post_ra>
// kernel: tpu_custom_call.1
= control target key start
LH: loop header
LB: loop body
LE: loop exit
PB: predicated region body
PF: predicated region fallthrough
CT: control target
= control target key end

     0   :  { %s6992_s0 = inlined_call_operand.vmem [shape: f32[32,4], index: 0, kind: input, shape index: {}]   ;;  %s6993_s1 = inlined_call_operand.hbm [shape: f32[2,32], index: 1, kind: input, shape index: {}]   ;;  %s6994_s2 = inlined_call_operand.vmem [shape: f32[20,8], index: 2, kind: input, shape index: {}]   ;;  %s6995_s3 = inlined_call_operand.vmem [shape: f32[1,8], index: 3, kind: input, shape index: {}]   ;;  %s6996_s4 = inlined_call_operand.vmem [shape: f32[1,16], index: 4, kind: input, shape index: {}]   ;;  %s6997_s5 = inlined_call_operand.vmem [shape: f32[16,16], index: 5, kind: input, shape index: {}]   ;;  %s6998_s6 = inlined_call_operand.vmem [shape: f32[24,8], index: 6, kind: input, shape index: {}]   ;;  %s6999_s7 = inlined_call_operand.vmem [shape: f32[1,8], index: 7, kind: input, shape index: {}]   ;;  %s7000_s8 = inlined_call_operand.vmem [shape: f32[1,16], index: 8, kind: input, shape index: {}]   ;;  %s7001_s9 = inlined_call_operand.vmem [shape: f32[16,16], index: 9, kind: input, shape index: {}]   ;;  %s7002_s10 = inlined_call_operand.vmem [shape: f32[8,64], index: 10, kind: input, shape index: {}]   ;;  %s7003_s11 = inlined_call_operand.vmem [shape: f32[1,64], index: 11, kind: input, shape index: {}]   ;;  %s7004_s12 = inlined_call_operand.vmem [shape: f32[16,32], index: 12, kind: input, shape index: {}]   ;;  %s7005_s13 = inlined_call_operand.vmem [shape: f32[16,64], index: 13, kind: input, shape index: {}]   ;;  %s7006_s14 = inlined_call_operand.vmem [shape: f32[1,64], index: 14, kind: input, shape index: {}]   ;;  %s7007_s15 = inlined_call_operand.vmem [shape: f32[16,32], index: 15, kind: input, shape index: {}]   ;;  %s7008_s16 = inlined_call_operand.hbm [shape: f32[4,128], index: 16, kind: output, shape index: {}]  }
   0x1   :  { %7010 = sst [smem:[#allocation10_spill]] %s6992_s0 }
   0x2   :  { %21 = vsyncpa [#allocation5], 0 }
   0x3   :  { %22 = vsyncpa [#allocation6], 0  ;;  %s5788_s21 = smov [#allocation4]  }
   0x4   :  { %s31_s22 = sshll.u32 %s5788_s21, 4  ;;  %s32_s22 = int_to_ptr.vmem [resolvable:$true] %s31_s22 }
   0x5   :  { %s5752_s23 = scalar_lea.vmem %s32_s22, 32  ;;  %p5757_p1 = scmp.lt.s32.totalorder %s32_s22, %s32_s22 }
   0x6   :  { %p5753_p0 = scmp.ne.s32.totalorder %s32_s22, %s5752_s23  ;;  %p5758_p2 = scmp.lt.s32.totalorder %s5752_s23, %s5752_s23 }
   0x8   :  { %p5759_p3 = por %p5758_p2, %p5757_p1 }
   0xa   :  { %p5760_p4 = pnand %p5759_p3, %p5753_p0 }
   0xc   :  { %5763 = shalt.err (!%p5760_p4)
}
   0xd   :  { %34 = dma.hbm_to_vmem [thread:$0]  %s6993_s1, 32, %s32_s22, [#allocation5]  }
   0xe   :  { %5784 = dma.done.wait [#allocation5], 32  }
   0xf   :  { %5785 = vsyncadd [#allocation5], 4294967264  ;;  %s7011_s28 = sld [smem:[#allocation10_spill]]  ;;  %vm75_vm0 = vcmask 1043456   ;;  %v191_v6 = vld [vmem:[%s6994_s2 + $0x10] sm:$0xf] }
  0x10   :  { %5162 = vmatprep.subr.msk.mxu0 %vm75_vm0, %v191_v6  ;;  %vm92_vm1 = vcmask 1045504   ;;  %v190_v11 = vld [vmem:[%s6994_s2 + $0x8] sm:$0xff]  ;;  %s5789_s23 = smov 16   ;;  %v189_v19 = vld [vmem:[%s6994_s2] sm:$0xff]  ;;  %s5790_s26 = smov 8   ;;  %vm135_vm2 = vcmask 1041408  }
  0x11   :  { %5163 = vmatpush3.msk.msra.mxu0 %vm75_vm0, %v191_v6  ;;  %s5791_s27 = smov 4   ;;  %s5792_s2 = smov 12   ;;  %vm169_vm3 = vcmask 31744   ;;  %vm174_vm4 = vcmask 64512   ;;  %vm179_vm5 = vcmask 97280   ;;  %vm184_vm6 = vcmask 130048  }
  0x12   :  { %5164 = vmatprep.subr.mxu0 %v190_v11  ;;  %vm199_vm7 = vcmask 162816   ;;  %vm5794_vm8 = vmmov 0   ;;  %vm324_vm9 = vcmask 261120   ;;  %vm606_vm10 = vcmask 195584   ;;  %s5799_s19 = smov 112  }
  0x13   :  { %5165 = vmatpush3.msra.mxu0 %v190_v11  ;;  %v5793_v11 = vmov 0.0   ;;  %vm5796_vm14 = vmmov 1  }
  0x14   :  { %5166 = vmatprep.subr.mxu0 %v189_v19  ;;  %5174 = vmatprep.subr.mxu1 %v5793_v11 }
  0x15   :  { %v67_v0 = vld [vmem:[%s7011_s28] sm:$0xff]  ;;  %v68_v1 = vld [vmem:[%s7011_s28 + $0x8] sm:$0xff]  ;;  %v69_v2 = vld [vmem:[%s7011_s28 + $0x10] sm:$0xff]  ;;  %5167 = vmatpush3.msra.mxu0 %v189_v19  ;;  %5182 = vmatprep.mubr.msk.f32.mxu1 %vm5794_vm8, %v5793_v11 }
  0x16   :  { %v76_v3 = vrot.slane %v67_v0, 4  ;;  %v77_v4 = vrot.slane %v68_v1, 4  ;;  %v79_v5 = vrot.slane %v69_v2, 4  ;;  %v70_v7 = vld [vmem:[%s7011_s28 + $0x18] sm:$0xff] }
  0x17   :  { %v81_v18 = vrot.slane %v70_v7, 4 }
  0x18   :  { %v5909_v8 = vsel %vm75_vm0, %v76_v3, %v77_v4  ;;  %v5912_v9 = vsel %vm75_vm0, 0.0, %v76_v3  ;;  %v5915_v10 = vsel %vm75_vm0, %v77_v4, %v79_v5 }
  0x19   :  { %157 = vrot.lane.b32.xlu0 %v5909_v8, %s5789_s23  ;;  %v114_v12 = vrot.slane %v5912_v9, 4  ;;  %v115_v13 = vrot.slane %v5909_v8, 4  ;;  %v93_v14 = vrot.slane %v5912_v9, 2  ;;  %v94_v15 = vrot.slane %v5909_v8, 2 }
  0x1a   :  { %v117_v16 = vrot.slane %v5915_v10, 4  ;;  %v96_v17 = vrot.slane %v5915_v10, 2  ;;  %v137_v23 = vrot.slane %v5909_v8, 6  ;;  %v139_v24 = vrot.slane %v5915_v10, 6 }
  0x1b   :  { %v116_v20 = vsel %vm75_vm0, %v114_v12, %v115_v13  ;;  %v95_v21 = vsel %vm92_vm1, %v93_v14, %v94_v15  ;;  %v136_v26 = vrot.slane %v5912_v9, 6  ;;  %v5941_v27 = vsel %vm75_vm0, %v79_v5, %v81_v18  ;;  %v4933_v14 = vld [vmem:[%s6995_s3] ss:$0 sm:$0xff] }
  0x1c   :  { %123 = vrot.lane.b32.xlu1 %v116_v20, %s5790_s26  ;;  %v118_v22 = vsel %vm75_vm0, %v115_v13, %v117_v16  ;;  %v97_v25 = vsel %vm92_vm1, %v94_v15, %v96_v17  ;;  %v140_v28 = vsel %vm135_vm2, %v137_v23, %v139_v24  ;;  %v98_v29 = vrot.slane %v5941_v27, 2 }
  0x1d   :  { %102 = vrot.lane.b32.xlu0 %v95_v21, %s5791_s27  ;;  %v138_v30 = vsel %vm135_vm2, %v136_v26, %v137_v23  ;;  %v89_v31 = vsel %vm75_vm0, %v81_v18, 0.0  ;;  %v119_v34 = vrot.slane %v5941_v27, 4  ;;  %v141_v38 = vrot.slane %v5941_v27, 6 }
  0x1e   :  { %v99_v32 = vsel %vm92_vm1, %v96_v17, %v98_v29  ;;  %v100_v33 = vrot.slane %v89_v31, 2  ;;  %v121_v36 = vrot.slane %v89_v31, 4  ;;  %v143_v40 = vrot.slane %v89_v31, 6 }
  0x1f   :  { %v120_v37 = vsel %vm75_vm0, %v117_v16, %v119_v34  ;;  %v142_v41 = vsel %vm135_vm2, %v139_v24, %v141_v38 }
  0x20   :  { %125 = vrot.lane.b32.xlu1 %v118_v22, %s5790_s26  ;;  %v101_v35 = vsel %vm92_vm1, %v98_v29, %v100_v33  ;;  %v122_v39 = vsel %vm75_vm0, %v119_v34, %v121_v36  ;;  %v144_v42 = vsel %vm135_vm2, %v141_v38, %v143_v40  ;;  %v399_v34 = vld [vmem:[%s6997_s5 + $0x8] sm:$0xff]  ;;  %v4941_v38 = vld [vmem:[%s6996_s4] ss:$0 sm:$0xff]  ;;  %s5797_s4 = smov 96  }
  0x21   :  { %104 = vrot.lane.b32.xlu0 %v97_v25, %s5791_s27 }
  0x24   :  { %147 = vrot.lane.b32.xlu1 %v140_v28, %s5792_s2 }
  0x25   :  { %145 = vrot.lane.b32.xlu0 %v138_v30, %s5792_s2 }
  0x28   :  { %106 = vrot.lane.b32.xlu1 %v99_v32, %s5791_s27  ;;  %v6021_v32 = vld [vmem:[#allocation4] sm:$0x3] }
  0x29   :  { %159 = vrot.lane.b32.xlu0 %v5915_v10, %s5789_s23 }
  0x2c   :  { %108 = vrot.lane.b32.xlu1 %v101_v35, %s5791_s27  ;;  %v398_v35 = vld [vmem:[%s6997_s5] sm:$0xff]  ;;  %s5795_s5 = smov 120  }
  0x2d   :  { %127 = vrot.lane.b32.xlu0 %v120_v37, %s5790_s26 }
  0x30   :  { %129 = vrot.lane.b32.xlu1 %v122_v39, %s5790_s26 }
  0x31   :  { %149 = vrot.lane.b32.xlu0 %v142_v41, %s5792_s2 }
  0x34   :  { %151 = vrot.lane.b32.xlu1 %v144_v42, %s5792_s2 }
  0x35   :  { %161 = vrot.lane.b32.xlu0 %v5941_v27, %s5789_s23 }
  0x38   :  { %163 = vrot.lane.b32.xlu1 %v89_v31, %s5789_s23 }
  0x8b   :  { %v158_v43 = vpop.permute.xlu0 %157 }
  0x8e   :  { %v124_v44 = vpop.permute.xlu1 %123 }
  0x8f   :  { %v103_v45 = vpop.permute.xlu0 %102 }
  0x90   :  { %v170_v48 = vsel %vm169_vm3, %v5912_v9, %v103_v45 }
  0x91   :  { %v175_v51 = vsel %vm174_vm4, %v170_v48, %v124_v44 }
  0x92   :  { %v126_v46 = vpop.permute.xlu1 %125 }
  0x93   :  { %v105_v47 = vpop.permute.xlu0 %104 }
  0x94   :  { %v171_v49 = vsel %vm169_vm3, %v5909_v8, %v105_v47 }
  0x95   :  { %v176_v53 = vsel %vm174_vm4, %v171_v49, %v126_v46 }
  0x96   :  { %v148_v50 = vpop.permute.xlu1 %147 }
  0x97   :  { %v146_v52 = vpop.permute.xlu0 %145  ;;  %v181_v57 = vsel %vm179_vm5, %v176_v53, %v148_v50 }
  0x98   :  { %v180_v54 = vsel %vm179_vm5, %v175_v51, %v146_v52 }
  0x99   :  { %v185_v55 = vsel %vm184_vm6, %v180_v54, %v158_v43 }
  0x9a   :  { %v107_v56 = vpop.permute.xlu1 %106  ;;  %5168 = vmatprep.mubr.msk.f32.mxu0 %vm199_vm7, %v185_v55 }
  0x9b   :  { %v160_v58 = vpop.permute.xlu0 %159  ;;  %v172_v0 = vsel %vm169_vm3, %v5915_v10, %v107_v56 }
  0x9c   :  { %v186_v59 = vsel %vm184_vm6, %v181_v57, %v160_v58 }
  0x9d   :  { %5169 = vmatmul.mubr.msk.f32.vlgmr.msra.gmra.mxu0 %vm199_vm7, %v186_v59 }
  0x9e   :  { %v109_v60 = vpop.permute.xlu1 %108 }
  0x9f   :  { %v128_v61 = vpop.permute.xlu0 %127  ;;  %v173_v5 = vsel %vm169_vm3, %v5941_v27, %v109_v60  ;;  %v598_v60 = vld [vmem:[%s6998_s6 + $0x10] sm:$0xff]  ;;  %vm4897_vm3 = vcmask 1040384  }
  0xa0   :  { %v177_v1 = vsel %vm174_vm4, %v172_v0, %v128_v61  ;;  %v597_v61 = vld [vmem:[%s6998_s6 + $0x8] sm:$0xff]  ;;  %5192 = vmatprep.subr.mxu0 %v598_v60 }
  0xa1   :  { %5193 = vmatpush3.msra.mxu0 %v598_v60 }
  0xa2   :  { %v130_v62 = vpop.permute.xlu1 %129  ;;  %5194 = vmatprep.subr.mxu0 %v597_v61 }
  0xa3   :  { %v150_v63 = vpop.permute.xlu0 %149  ;;  %v178_v7 = vsel %vm174_vm4, %v173_v5, %v130_v62  ;;  %5195 = vmatpush3.msra.mxu0 %v597_v61 }
  0xa4   :  { %v182_v3 = vsel %vm179_vm5, %v177_v1, %v150_v63 }
  0xa6   :  { %v152_v2 = vpop.permute.xlu1 %151 }
  0xa7   :  { %v162_v4 = vpop.permute.xlu0 %161  ;;  %v183_v8 = vsel %vm179_vm5, %v178_v7, %v152_v2  ;;  %vm4900_vm5 = vcmask 1042432  }
  0xa8   :  { %v187_v6 = vsel %vm184_vm6, %v182_v3, %v162_v4  ;;  %v596_v3 = vld [vmem:[%s6998_s6] sm:$0xff] }
  0xa9   :  { %5171 = vmatprep.mubr.msk.f32.mxu0 %vm199_vm7, %v187_v6  ;;  %5196 = vmatprep.subr.mxu0 %v596_v3 }
  0xaa   :  { %v164_v9 = vpop.permute.xlu1 %163  ;;  %5197 = vmatpush3.msra.mxu0 %v596_v3 }
  0xab   :  { %v188_v10 = vsel %vm184_vm6, %v183_v8, %v164_v9  ;;  %5215 = vmatprep.subr.mxu0 %v5793_v11 }
  0xac   :  { %5172 = vmatmul.mubr.msk.f32.gmra.mxu0 %vm199_vm7, %v188_v10 }
 0x15d   :  { %v5170_v12 = vpop.f32.mrf.mxu0 }
 0x15e   :  { %v5995_v18 = vadd.f32 %v5170_v12, %v4933_v14 }
 0x15f   :  { %v281_v13 = vpop.f32.mrf.mxu0 }
 0x160   :  { %v6001_v21 = vadd.f32 %v4933_v14, %v281_v13  ;;  %v301_v23 = vmul.f32 %v5995_v18, %v5995_v18 }
 0x162   :  { %v300_v24 = vmul.f32 %v6001_v21, %v6001_v21 }
 0x16c   :  { %v5173_v15 = vpop.f32.mrf.mxu0 }
 0x16d   :  { %v5993_v16 = vadd.f32 %v5173_v15, %v4933_v14 }
 0x16e   :  { %v291_v17 = vpop.f32.mrf.mxu0 }
 0x16f   :  { %v5997_v19 = vadd.f32 %v4933_v14, %v291_v17  ;;  %v303_v20 = vmul.f32 %v5993_v16, %v5993_v16 }
 0x171   :  { %314 = vrot.lane.b32.xlu0 %v303_v20, %s5790_s26  ;;  %v302_v22 = vmul.f32 %v5997_v19, %v5997_v19 }
 0x173   :  { %312 = vrot.lane.b32.xlu1 %v302_v22, %s5790_s26 }
 0x175   :  { %310 = vrot.lane.b32.xlu0 %v301_v23, %s5790_s26 }
 0x177   :  { %308 = vrot.lane.b32.xlu1 %v300_v24, %s5790_s26 }
 0x17b   :  { %488 = vrot.lane.b32.xlu1 %v4941_v38, %s5790_s26 }
 0x1e3   :  { %v315_v25 = vpop.permute.xlu0 %314 }
 0x1e4   :  { %v323_v26 = vsel %vm174_vm4, %v5993_v16, %v315_v25 }
 0x1e5   :  { %5175 = vmatpush3.msra.mxu1 %v323_v26  ;;  %v313_v27 = vpop.permute.xlu1 %312 }
 0x1e6   :  { %5176 = vmatprep.subr.mxu1 %v5793_v11  ;;  %v322_v28 = vsel %vm174_vm4, %v5997_v19, %v313_v27 }
 0x1e7   :  { %v311_v29 = vpop.permute.xlu0 %310  ;;  %5177 = vmatpush3.msra.mxu1 %v322_v28 }
 0x1e8   :  { %5178 = vmatprep.subr.mxu1 %v5793_v11  ;;  %v321_v30 = vsel %vm174_vm4, %v5995_v18, %v311_v29 }
 0x1e9   :  { %5179 = vmatpush3.msra.mxu1 %v321_v30  ;;  %v309_v31 = vpop.permute.xlu1 %308 }
 0x1ea   :  { %5180 = vmatprep.subr.mxu1 %v5793_v11  ;;  %v320_v33 = vsel %vm174_vm4, %v6001_v21, %v309_v31 }
 0x1eb   :  { %5181 = vmatpush3.msra.mxu1 %v320_v33 }
 0x1ec   :  { %5183 = vmatmul.mubr.msk.f32.vlgmr.msra.gmra.mxu1 %vm324_vm9, %v6021_v32  ;;  %5185 = vmatprep.subr.mxu1 %v5793_v11 }
 0x1ed   :  { %5186 = vmatpush3.msra.mxu1 %v399_v34  ;;  %5189 = vmatprep.mubr.msk.f32.mxu1 %vm5794_vm8, %v5793_v11  ;;  %v489_v46 = vpop.permute.xlu1 %488 }
 0x1ee   :  { %5187 = vmatprep.subr.mxu1 %v5793_v11 }
 0x1ef   :  { %5188 = vmatpush3.msra.mxu1 %v398_v35 }
 0x1f0   :  { %5204 = vmatprep.subr.mxu1 %v5793_v11 }
 0x2ac   :  { %v394_v36 = vpop.f32.mrf.mxu1 }
 0x2ad   :  { %5190 = vmatmul.mubr.msk.f32.vlgmr.msra.gmra.mxu1 %vm184_vm6, %v394_v36 }
 0x2ae   :  { %v5184_v37 = vpop.f32.mrf.mxu1  ;;  %5212 = vmatprep.mubr.msk.f32.mxu1 %vm5794_vm8, %v5793_v11 }
 0x36d   :  { %v469_v39 = vpop.f32.mrf.mxu1 }
 0x36e   :  { %v473_v40 = vmul.f32 %v469_v39, %v469_v39 }
 0x36f   :  { %v5191_v41 = vpop.f32.mrf.mxu1 }
 0x370   :  { %475 = vrot.lane.b32.xlu0 %v473_v40, %s5790_s26 }
 0x3e2   :  { %v476_v42 = vpop.permute.xlu0 %475 }
 0x3e3   :  { %v478_v43 = vsub.f32 %v469_v39, %v476_v42 }
 0x3e5   :  { %v479_v44 = vmax.f32 %v478_v43, 0.0 }
 0x3e7   :  { %v480_v45 = vadd.f32 1e-05, %v479_v44 }
 0x3e9   :  { %5480 = vrsqrt.f32 %v480_v45 }
 0x3f6   :  { %v5481_v47 = vpop.eup %5480 }
 0x3f7   :  { %v491_v48 = vmul.f32 %v5481_v47, %v489_v46 }
 0x3f9   :  { %493 = vrot.lane.b32.xlu0 %v491_v48, %s5795_s5 }
 0x46b   :  { %v494_v49 = vpop.permute.xlu0 %493 }
 0x46c   :  { %v496_v50 = vmul.f32 %v494_v49, %v469_v39 }
 0x46e   :  { %499 = vrot.lane.b32.xlu1 %v496_v50, %s5790_s26 }
 0x4e0   :  { %v500_v51 = vpop.permute.xlu1 %499 }
 0x4e1   :  { %v502_v52 = vsub.f32 %v4941_v38, %v500_v51 }
 0x4e3   :  { %v503_v53 = vsel %vm174_vm4, %v494_v49, %v502_v52 }
 0x4e4   :  { %v505_v54 = vrot.slane %v503_v53, 6  ;;  %v507_v55 = vrot.slane %v503_v53, 4  ;;  %v509_v56 = vrot.slane %v503_v53, 2 }
 0x4e6   :  { %v511_v57 = vsel %vm135_vm2, %v503_v53, %v505_v54 }
 0x4e7   :  { %v512_v58 = vsel %vm75_vm0, %v511_v57, %v507_v55  ;;  %v4942_v55 = vld [vmem:[%s6999_s7] ss:$0 sm:$0xff]  ;;  %v799_v57 = vld [vmem:[%s7001_s9 + $0x8] sm:$0xff] }
 0x4e8   :  { %v513_v59 = vsel %vm92_vm1, %v512_v58, %v509_v56  ;;  %v798_v58 = vld [vmem:[%s7001_s9] sm:$0xff] }
 0x4e9   :  { %519 = vrot.lane.b32.xlu0 %v513_v59, %s5795_s5  ;;  %v514_v62 = vmul.f32 %v513_v59, %v6001_v21  ;;  %v515_v63 = vmul.f32 %v513_v59, %v5995_v18  ;;  %v516_v0 = vmul.f32 %v513_v59, %v5997_v19  ;;  %v517_v1 = vmul.f32 %v513_v59, %v5993_v16 }
 0x55b   :  { %v520_v2 = vpop.permute.xlu0 %519 }
 0x55c   :  { %v522_v4 = vadd.f32 %v520_v2, %v514_v62  ;;  %v523_v5 = vadd.f32 %v520_v2, %v515_v63  ;;  %v524_v6 = vadd.f32 %v520_v2, %v516_v0  ;;  %v525_v7 = vadd.f32 %v520_v2, %v517_v1 }
 0x55e   :  { %v530_v8 = vrot.slane %v522_v4, 6  ;;  %v531_v9 = vrot.slane %v523_v5, 6  ;;  %v533_v10 = vrot.slane %v524_v6, 6  ;;  %v535_v12 = vrot.slane %v525_v7, 6 }
 0x560   :  { %v532_v13 = vsel %vm135_vm2, %v530_v8, %v531_v9  ;;  %v534_v14 = vsel %vm135_vm2, %v531_v9, %v533_v10  ;;  %v542_v15 = vsel %vm135_vm2, 0.0, %v530_v8  ;;  %v536_v24 = vsel %vm135_vm2, %v533_v10, %v535_v12 }
 0x561   :  { %v547_v16 = vrot.slane %v532_v13, 2  ;;  %v549_v17 = vrot.slane %v534_v14, 2  ;;  %v546_v18 = vrot.slane %v542_v15, 2  ;;  %v568_v19 = vrot.slane %v532_v13, 4 }
 0x562   :  { %v570_v22 = vrot.slane %v534_v14, 4  ;;  %v567_v23 = vrot.slane %v542_v15, 4  ;;  %v543_v25 = vsel %vm135_vm2, %v535_v12, 0.0  ;;  %v551_v28 = vrot.slane %v536_v24, 2 }
 0x563   :  { %v550_v20 = vsel %vm92_vm1, %v547_v16, %v549_v17  ;;  %v548_v21 = vsel %vm92_vm1, %v546_v18, %v547_v16  ;;  %v553_v29 = vrot.slane %v543_v25, 2  ;;  %v572_v33 = vrot.slane %v536_v24, 4 }
 0x564   :  { %557 = vrot.lane.b32.xlu0 %v550_v20, %s5790_s26  ;;  %555 = vrot.lane.b32.xlu1 %v548_v21, %s5790_s26  ;;  %v571_v26 = vsel %vm75_vm0, %v568_v19, %v570_v22  ;;  %v569_v27 = vsel %vm75_vm0, %v567_v23, %v568_v19  ;;  %v552_v31 = vsel %vm92_vm1, %v549_v17, %v551_v28  ;;  %v574_v34 = vrot.slane %v543_v25, 4  ;;  %v936_v25 = vld [vmem:[%s7002_s10] sm:$0xff] }
 0x565   :  { %v554_v30 = vsel %vm92_vm1, %v551_v28, %v553_v29  ;;  %v573_v36 = vsel %vm75_vm0, %v570_v22, %v572_v33 }
 0x566   :  { %v575_v35 = vsel %vm75_vm0, %v572_v33, %v574_v34  ;;  %v6170_v33 = vld [vmem:[%s7004_s12] sm:$0xff]  ;;  %v926_v34 = vlaneseq }
 0x568   :  { %578 = vrot.lane.b32.xlu0 %v571_v26, %s5789_s23  ;;  %576 = vrot.lane.b32.xlu1 %v569_v27, %s5789_s23 }
 0x56c   :  { %561 = vrot.lane.b32.xlu0 %v554_v30, %s5790_s26  ;;  %559 = vrot.lane.b32.xlu1 %v552_v31, %s5790_s26  ;;  %v6165_v31 = vld [vmem:[%s7004_s12 + $0x8] sm:$0xff] }
 0x570   :  { %582 = vrot.lane.b32.xlu0 %v575_v35, %s5789_s23  ;;  %580 = vrot.lane.b32.xlu1 %v573_v36, %s5789_s23 }
 0x5d6   :  { %v558_v37 = vpop.permute.xlu0 %557  ;;  %v556_v38 = vpop.permute.xlu1 %555 }
 0x5d7   :  { %v589_v39 = vsel %vm174_vm4, %v532_v13, %v558_v37  ;;  %v588_v40 = vsel %vm174_vm4, %v542_v15, %v556_v38  ;;  %v4949_v15 = vld [vmem:[%s7000_s8] ss:$0 sm:$0xff]  ;;  %v927_v37 = vshrl.u32 %v926_v34, 7  ;;  %v929_v38 = vand.u32 127, %v926_v34 }
 0x5d9   :  { %vm930_vm11 = vcmp.lt.s32.totalorder %v927_v37, 2  ;;  %vm931_vm12 = vcmp.lt.s32.totalorder %v929_v38, 8 }
 0x5da   :  { %v579_v41 = vpop.permute.xlu0 %578  ;;  %v577_v42 = vpop.permute.xlu1 %576  ;;  %vm932_vm13 = vmxor %vm930_vm11, %vm931_vm12 }
 0x5db   :  { %v593_v43 = vsel %vm184_vm6, %v589_v39, %v579_v41  ;;  %v592_v44 = vsel %vm184_vm6, %v588_v40, %v577_v42  ;;  %vm933_vm15 = vmxor %vm932_vm13, %vm5796_vm14 }
 0x5dc   :  { %5198 = vmatprep.mubr.msk.f32.mxu0 %vm606_vm10, %v592_v44 }
 0x5dd   :  { %5199 = vmatmul.mubr.msk.f32.vlgmr.msra.gmra.mxu0 %vm606_vm10, %v593_v43  ;;  %v6181_v43 = vsel %vm933_vm15, 1.0, %v5793_v11 }
 0x5de   :  { %v562_v45 = vpop.permute.xlu0 %561  ;;  %v560_v46 = vpop.permute.xlu1 %559  ;;  %5216 = vmatpush3.msra.mxu0 %v799_v57  ;;  %v6184_v44 = vmul.f32 0.0, %v6181_v43 }
 0x5df   :  { %v591_v47 = vsel %vm174_vm4, %v536_v24, %v562_v45  ;;  %v590_v48 = vsel %vm174_vm4, %v534_v14, %v560_v46  ;;  %5217 = vmatprep.subr.mxu0 %v5793_v11 }
 0x5e0   :  { %5218 = vmatpush3.msra.mxu0 %v798_v58 }
 0x5e1   :  { %5230 = vmatprep.subr.mxu0 %v5793_v11 }
 0x5e2   :  { %v583_v49 = vpop.permute.xlu0 %582  ;;  %v581_v50 = vpop.permute.xlu1 %580 }
 0x5e3   :  { %v595_v51 = vsel %vm184_vm6, %v591_v47, %v583_v49  ;;  %v594_v52 = vsel %vm184_vm6, %v590_v48, %v581_v50 }
 0x5e4   :  { %5201 = vmatprep.mubr.msk.f32.mxu0 %vm606_vm10, %v594_v52 }
 0x5e5   :  { %5202 = vmatmul.mubr.msk.f32.gmra.mxu0 %vm606_vm10, %v595_v51 }
 0x5e6   :  { %5219 = vmatprep.mubr.msk.f32.mxu0 %vm5794_vm8, %v5793_v11 }
 0x69d   :  { %v5200_v53 = vpop.f32.mrf.mxu0 }
 0x69e   :  { %v6115_v61 = vadd.f32 %v5200_v53, %v4942_v55 }
 0x69f   :  { %v685_v54 = vpop.f32.mrf.mxu0 }
 0x6a0   :  { %v6122_v0 = vadd.f32 %v4942_v55, %v685_v54  ;;  %v705_v2 = vmul.f32 %v6115_v61, %v6115_v61 }
 0x6a2   :  { %v704_v3 = vmul.f32 %v6122_v0, %v6122_v0 }
 0x6a5   :  { %v5203_v56 = vpop.f32.mrf.mxu0 }
 0x6a6   :  { %v6112_v59 = vadd.f32 %v5203_v56, %v4942_v55  ;;  %v6211_v56 = vld [vmem:[%s7003_s11] ss:$0 sm:$0xff]  ;;  %s5798_s11 = smov 104  }
 0x6a7   :  { %v695_v60 = vpop.f32.mrf.mxu0 }
 0x6a8   :  { %v6117_v62 = vadd.f32 %v4942_v55, %v695_v60  ;;  %v707_v63 = vmul.f32 %v6112_v59, %v6112_v59 }
 0x6aa   :  { %718 = vrot.lane.b32.xlu1 %v707_v63, %s5790_s26  ;;  %v706_v1 = vmul.f32 %v6117_v62, %v6117_v62 }
 0x6ac   :  { %716 = vrot.lane.b32.xlu0 %v706_v1, %s5790_s26 }
 0x6ae   :  { %714 = vrot.lane.b32.xlu1 %v705_v2, %s5790_s26 }
 0x6b0   :  { %712 = vrot.lane.b32.xlu0 %v704_v3, %s5790_s26 }
 0x6b4   :  { %888 = vrot.lane.b32.xlu0 %v4949_v15, %s5790_s26 }
 0x71c   :  { %v719_v4 = vpop.permute.xlu1 %718 }
 0x71d   :  { %v727_v5 = vsel %vm174_vm4, %v6112_v59, %v719_v4 }
 0x71e   :  { %5205 = vmatpush3.msra.mxu1 %v727_v5  ;;  %v717_v6 = vpop.permute.xlu0 %716 }
 0x71f   :  { %v726_v7 = vsel %vm174_vm4, %v6117_v62, %v717_v6  ;;  %5206 = vmatprep.subr.mxu1 %v5793_v11 }
 0x720   :  { %v715_v8 = vpop.permute.xlu1 %714  ;;  %5207 = vmatpush3.msra.mxu1 %v726_v7 }
 0x721   :  { %v725_v9 = vsel %vm174_vm4, %v6115_v61, %v715_v8  ;;  %5208 = vmatprep.subr.mxu1 %v5793_v11 }
 0x722   :  { %5209 = vmatpush3.msra.mxu1 %v725_v9  ;;  %v713_v10 = vpop.permute.xlu0 %712 }
 0x723   :  { %v724_v12 = vsel %vm174_vm4, %v6122_v0, %v713_v10  ;;  %5210 = vmatprep.subr.mxu1 %v5793_v11 }
 0x724   :  { %5211 = vmatpush3.msra.mxu1 %v724_v12 }
 0x725   :  { %5213 = vmatmul.mubr.msk.f32.vlgmr.msra.gmra.mxu1 %vm324_vm9, %v6021_v32  ;;  %5222 = vmatprep.subr.mxu1 %v936_v25 }
 0x726   :  { %v889_v22 = vpop.permute.xlu0 %888  ;;  %5223 = vmatpush3.msra.mxu1 %v936_v25 }
 0x727   :  { %5244 = vmatprep.subr.mxu1 %v5793_v11 }
 0x7e5   :  { %v794_v13 = vpop.f32.mrf.mxu1 }
 0x7e6   :  { %5220 = vmatmul.mubr.msk.f32.vlgmr.msra.gmra.mxu0 %vm184_vm6, %v794_v13 }
 0x7e7   :  { %v5214_v14 = vpop.f32.mrf.mxu1  ;;  %5234 = vmatprep.mubr.msk.f32.mxu0 %vm5794_vm8, %v5793_v11  ;;  %5231 = vmatpush3.msra.mxu0 %v6165_v31 }
 0x7e8   :  { %5232 = vmatprep.subr.mxu0 %v5793_v11 }
 0x7e9   :  { %5233 = vmatpush3.msra.mxu0 %v6170_v33 }
 0x7ea   :  { %5237 = vmatprep.subr.mxu0 %v5793_v11  ;;  %5235 = vmatmul.mubr.msk.f32.vlgmr.msra.gmra.mxu0 %vm184_vm6, %v6184_v44 }
 0x7eb   :  { %5238 = vmatpush3.msra.mxu0 %v6165_v31  ;;  %5241 = vmatprep.mubr.msk.f32.mxu0 %vm5794_vm8, %v5793_v11 }
 0x7ec   :  { %5239 = vmatprep.subr.mxu0 %v5793_v11 }
 0x7ed   :  { %5240 = vmatpush3.msra.mxu0 %v6170_v33 }
 0x7ee   :  { %5251 = vmatprep.subr.mxu0 %v5793_v11 }
 0x8a6   :  { %v869_v16 = vpop.f32.mrf.mxu0 }
 0x8a7   :  { %v873_v17 = vmul.f32 %v869_v16, %v869_v16 }
 0x8a8   :  { %v5221_v18 = vpop.f32.mrf.mxu0 }
 0x8a9   :  { %875 = vrot.lane.b32.xlu1 %v873_v17, %s5790_s26 }
 0x8aa   :  { %v1119_v54 = vpop.f32.mrf.mxu0 }
 0x8ac   :  { %v5236_v55 = vpop.f32.mrf.mxu0 }
 0x91b   :  { %v876_v19 = vpop.permute.xlu1 %875 }
 0x91c   :  { %v878_v32 = vsub.f32 %v869_v16, %v876_v19 }
 0x91e   :  { %v879_v20 = vmax.f32 %v878_v32, 0.0 }
 0x920   :  { %v880_v21 = vadd.f32 1e-05, %v879_v20 }
 0x922   :  { %5482 = vrsqrt.f32 %v880_v21 }
 0x92f   :  { %v5483_v23 = vpop.eup %5482 }
 0x930   :  { %v891_v24 = vmul.f32 %v5483_v23, %v889_v22 }
 0x932   :  { %893 = vrot.lane.b32.xlu1 %v891_v24, %s5795_s5 }
 0x9a4   :  { %v894_v26 = vpop.permute.xlu1 %893 }
 0x9a5   :  { %v896_v27 = vmul.f32 %v894_v26, %v869_v16 }
 0x9a7   :  { %899 = vrot.lane.b32.xlu0 %v896_v27, %s5790_s26 }
 0xa19   :  { %v900_v28 = vpop.permute.xlu0 %899 }
 0xa1a   :  { %v902_v29 = vsub.f32 %v4949_v15, %v900_v28 }
 0xa1c   :  { %v903_v30 = vsel %vm174_vm4, %v894_v26, %v902_v29 }
 0xa1d   :  { %v905_v35 = vrot.slane %v903_v30, 6  ;;  %v907_v36 = vrot.slane %v903_v30, 4  ;;  %v909_v39 = vrot.slane %v903_v30, 2 }
 0xa1f   :  { %v911_v40 = vsel %vm135_vm2, %v903_v30, %v905_v35 }
 0xa20   :  { %v912_v41 = vsel %vm75_vm0, %v911_v40, %v907_v36  ;;  %vm1151_vm0 = vcmask 58368  }
 0xa21   :  { %v913_v42 = vsel %vm92_vm1, %v912_v41, %v909_v39  ;;  %vm1153_vm1 = vcmask 60418  }
 0xa22   :  { %919 = vrot.lane.b32.xlu1 %v913_v42, %s5795_s5  ;;  %v915_v45 = vmul.f32 %v913_v42, %v6115_v61  ;;  %v914_v46 = vmul.f32 %v913_v42, %v6122_v0  ;;  %v916_v50 = vmul.f32 %v913_v42, %v6117_v62  ;;  %v917_v52 = vmul.f32 %v913_v42, %v6112_v59 }
 0xa94   :  { %v920_v47 = vpop.permute.xlu1 %919 }
 0xa95   :  { %v923_v48 = vadd.f32 %v920_v47, %v915_v45  ;;  %v922_v49 = vadd.f32 %v920_v47, %v914_v46  ;;  %v924_v51 = vadd.f32 %v920_v47, %v916_v50  ;;  %v925_v53 = vadd.f32 %v920_v47, %v917_v52 }
 0xa97   :  { %5224 = vmatprep.mubr.msk.f32.mxu1 %vm174_vm4, %v922_v49 }
 0xa98   :  { %5225 = vmatmul.mubr.msk.f32.vlgmr.msra.gmra.mxu1 %vm174_vm4, %v923_v48 }
 0xa99   :  { %5227 = vmatprep.mubr.msk.f32.mxu1 %vm174_vm4, %v924_v51  ;;  %5245 = vmatpush3.msra.mxu1 %v6165_v31 }
 0xa9a   :  { %5246 = vmatprep.subr.mxu1 %v5793_v11 }
 0xa9b   :  { %5247 = vmatpush3.msra.mxu1 %v6170_v33 }
 0xa9c   :  { %5228 = vmatmul.mubr.msk.f32.gmra.mxu1 %vm174_vm4, %v925_v53  ;;  %5258 = vmatprep.subr.mxu1 %v5793_v11 }
 0xa9d   :  { %5248 = vmatprep.mubr.msk.f32.mxu1 %vm5794_vm8, %v5793_v11 }
 0xb58   :  { %v5226_v57 = vpop.f32.mrf.mxu1 }
 0xb59   :  { %v6214_v58 = vadd.f32 %v5226_v57, %v6211_v56 }
 0xb5a   :  { %v1022_v59 = vpop.f32.mrf.mxu1 }
 0xb5b   :  { %v6217_v60 = vadd.f32 %v6211_v56, %v1022_v59 }
 0xb5c   :  { %v5229_v61 = vpop.f32.mrf.mxu1 }
 0xb5d   :  { %v6220_v62 = vadd.f32 %v5229_v61, %v6211_v56  ;;  %v1161_v22 = vrot.slane %v6217_v60, 2  ;;  %v1276_v51 = vrot.slane %v6217_v60, 4 }
 0xb5e   :  { %v6270_v50 = vpop.f32.mrf.mxu1 }
 0xb5f   :  { %v1045_v63 = vrot.slane %v6220_v62, 4  ;;  %v1163_v17 = vrot.slane %v6220_v62, 2 }
 0xb61   :  { %1046 = vrot.lane.b32.xlu0 %v1045_v63, %s5797_s4 }
 0xbd3   :  { %v1047_v0 = vpop.permute.xlu0 %1046 }
 0xbd4   :  { %v1049_v1 = vsel %vm135_vm2, %v6217_v60, %v1047_v0 }
 0xbd5   :  { %v1120_v2 = vadd.f32 %v1119_v54, %v1049_v1 }
 0xbd7   :  { %5484 = vtanh.f32 %v1120_v2  ;;  %v4957_v4 = vmul.f32 -1.442695, %v1120_v2 }
 0xbd9   :  { %5486 = vpow2.f32 %v4957_v4 }
 0xbe4   :  { %v5485_v3 = vpop.eup %5484 }
 0xbe5   :  { %1132 = vrot.lane.b32.xlu1 %v5485_v3, %s5798_s11 }
 0xbe6   :  { %v5487_v5 = vpop.eup %5486 }
 0xbe7   :  { %v1126_v6 = vadd.f32 1.0, %v5487_v5 }
 0xbe9   :  { %5488 = vrcp.f32 %v1126_v6 }
 0xbf6   :  { %v5489_v7 = vpop.eup %5488 }
 0xbf7   :  { %v1130_v10 = vmul.f32 0.0, %v5489_v7 }
 0xc57   :  { %v1133_v8 = vpop.permute.xlu1 %1132 }
 0xc58   :  { %v1135_v9 = vmul.f32 %v5489_v7, %v1133_v8 }
 0xc5a   :  { %1137 = vrot.lane.b32.xlu0 %v1135_v9, %s5790_s26 }
 0xccc   :  { %v1138_v12 = vpop.permute.xlu0 %1137 }
 0xccd   :  { %v1140_v13 = vadd.f32 %v1138_v12, %v1130_v10  ;;  %v1392_v10 = vrot.slane %v6220_v62, 6 }
 0xccf   :  { %5490 = vtanh.f32 %v1140_v13 }
 0xcdc   :  { %v5491_v14 = vpop.eup %5490 }
 0xcdd   :  { %1143 = vrot.lane.b32.xlu1 %v5491_v14, %s5790_s26 }
 0xd4f   :  { %v1144_v15 = vpop.permute.xlu1 %1143 }
 0xd50   :  { %v1146_v16 = vmul.f32 %v5489_v7, %v1144_v15 }
 0xd52   :  { %1155 = vrot.lane.b32.xlu1 %v1146_v16, %s5795_s5  ;;  %1148 = vrot.lane.b32.xlu0 %v1146_v16, %s5799_s19 }
 0xd56   :  { %1164 = vrot.lane.b32.xlu0 %v1163_v17, %s5797_s4 }
 0xdc4   :  { %v1156_v18 = vpop.permute.xlu1 %1155  ;;  %v1149_v19 = vpop.permute.xlu0 %1148 }
 0xdc5   :  { %1152 = vst.msk [vmem:[#allocation2] sm:$0x3] %vm1151_vm0, %v1149_v19  ;;  %v1158_v32 = vsel %vm174_vm4, %v1149_v19, %v1156_v18  ;;  %v1390_v18 = vrot.slane %v6217_v60, 6 }
 0xdc6   :  { %1154 = vst.msk [vmem:[#allocation3 + $0x1c] sm:$0xc] %vm1153_vm1, %v1149_v19  ;;  %v1159_v20 = vmul.f32 %v6181_v43, %v1158_v32 }
 0xdc8   :  { %5242 = vmatmul.mubr.msk.f32.vlgmr.msra.gmra.mxu0 %vm184_vm6, %v1159_v20  ;;  %v1165_v21 = vpop.permute.xlu0 %1164 }
 0xdc9   :  { %5252 = vmatpush3.msra.mxu0 %v6165_v31  ;;  %5255 = vmatprep.mubr.msk.f32.mxu0 %vm5794_vm8, %v5793_v11  ;;  %v1167_v23 = vsel %vm135_vm2, %v1161_v22, %v1165_v21 }
 0xdca   :  { %5253 = vmatprep.subr.mxu0 %v5793_v11 }
 0xdcb   :  { %5254 = vmatpush3.msra.mxu0 %v6170_v33 }
 0xdcc   :  { %5265 = vmatprep.subr.mxu0 %v5793_v11 }
 0xe88   :  { %v1237_v24 = vpop.f32.mrf.mxu0 }
 0xe89   :  { %v1238_v25 = vadd.f32 %v1237_v24, %v1167_v23 }
 0xe8a   :  { %v5243_v26 = vpop.f32.mrf.mxu0 }
 0xe8b   :  { %5492 = vtanh.f32 %v1238_v25  ;;  %v4959_v28 = vmul.f32 -1.442695, %v1238_v25 }
 0xe8d   :  { %5494 = vpow2.f32 %v4959_v28 }
 0xe98   :  { %v5493_v27 = vpop.eup %5492 }
 0xe99   :  { %1250 = vrot.lane.b32.xlu1 %v5493_v27, %s5798_s11 }
 0xe9a   :  { %v5495_v29 = vpop.eup %5494 }
 0xe9b   :  { %v1244_v30 = vadd.f32 1.0, %v5495_v29 }
 0xe9d   :  { %5496 = vrcp.f32 %v1244_v30 }
 0xeaa   :  { %v5497_v34 = vpop.eup %5496 }
 0xeab   :  { %v1248_v37 = vmul.f32 %v5497_v34, %v1140_v13 }
 0xf0b   :  { %v1251_v35 = vpop.permute.xlu1 %1250 }
 0xf0c   :  { %v1253_v36 = vmul.f32 %v5497_v34, %v1251_v35 }
 0xf0e   :  { %1255 = vrot.lane.b32.xlu0 %v1253_v36, %s5790_s26 }
 0xf80   :  { %v1256_v38 = vpop.permute.xlu0 %1255 }
 0xf81   :  { %v1258_v39 = vadd.f32 %v1256_v38, %v1248_v37  ;;  %v6305_v38 = vadd.f32 %v6211_v56, %v6270_v50 }
 0xf83   :  { %5498 = vtanh.f32 %v1258_v39 }
 0xf90   :  { %v5499_v40 = vpop.eup %5498 }
 0xf91   :  { %1261 = vrot.lane.b32.xlu1 %v5499_v40, %s5790_s26  ;;  %v1506_v40 = vrot.slane %v6305_v38, 4 }
0x1003   :  { %v1262_v41 = vpop.permute.xlu1 %1261 }
0x1004   :  { %v1264_v42 = vmul.f32 %v5497_v34, %v1262_v41 }
0x1006   :  { %1271 = vrot.lane.b32.xlu1 %v1264_v42, %s5795_s5  ;;  %1266 = vrot.lane.b32.xlu0 %v1264_v42, %s5799_s19 }
0x100a   :  { %1278 = vrot.lane.b32.xlu0 %v6220_v62, %s5797_s4 }
0x1078   :  { %v1272_v45 = vpop.permute.xlu1 %1271  ;;  %v1267_v46 = vpop.permute.xlu0 %1266 }
0x1079   :  { %1269 = vst.msk [vmem:[#allocation2 + $0x2] sm:$0x3] %vm1151_vm0, %v1267_v46  ;;  %v1274_v47 = vsel %vm174_vm4, %v1267_v46, %v1272_v45 }
0x107a   :  { %1270 = vst.msk [vmem:[#allocation3 + $0x1a] sm:$0xc] %vm1153_vm1, %v1267_v46  ;;  %v1275_v48 = vmul.f32 %v6181_v43, %v1274_v47 }
0x107c   :  { %5249 = vmatmul.mubr.msk.f32.vlgmr.msra.gmra.mxu1 %vm184_vm6, %v1275_v48  ;;  %v1279_v49 = vpop.permute.xlu0 %1278 }
0x107d   :  { %5259 = vmatpush3.msra.mxu1 %v6165_v31  ;;  %5262 = vmatprep.mubr.msk.f32.mxu1 %vm5794_vm8, %v5793_v11  ;;  %v1281_v52 = vsel %vm135_vm2, %v1276_v51, %v1279_v49 }
0x107e   :  { %5260 = vmatprep.subr.mxu1 %v5793_v11 }
0x107f   :  { %5261 = vmatpush3.msra.mxu1 %v6170_v33 }
0x1080   :  { %5272 = vmatprep.subr.mxu1 %v5793_v11 }
0x113c   :  { %v1351_v53 = vpop.f32.mrf.mxu1 }
0x113d   :  { %v1352_v54 = vadd.f32 %v1351_v53, %v1281_v52 }
0x113e   :  { %v5250_v55 = vpop.f32.mrf.mxu1 }
0x113f   :  { %5500 = vtanh.f32 %v1352_v54  ;;  %v4961_v59 = vmul.f32 -1.442695, %v1352_v54 }
0x1141   :  { %5502 = vpow2.f32 %v4961_v59 }
0x114c   :  { %v5501_v57 = vpop.eup %5500 }
0x114d   :  { %1364 = vrot.lane.b32.xlu1 %v5501_v57, %s5798_s11 }
0x114e   :  { %v5503_v61 = vpop.eup %5502 }
0x114f   :  { %v1358_v0 = vadd.f32 1.0, %v5503_v61 }
0x1151   :  { %5504 = vrcp.f32 %v1358_v0 }
0x115e   :  { %v5505_v1 = vpop.eup %5504 }
0x115f   :  { %v1362_v4 = vmul.f32 %v5505_v1, %v1258_v39 }
0x11bf   :  { %v1365_v2 = vpop.permute.xlu1 %1364 }
0x11c0   :  { %v1367_v3 = vmul.f32 %v5505_v1, %v1365_v2 }
0x11c2   :  { %1369 = vrot.lane.b32.xlu0 %v1367_v3, %s5790_s26 }
0x1234   :  { %v1370_v5 = vpop.permute.xlu0 %1369 }
0x1235   :  { %v1372_v6 = vadd.f32 %v1370_v5, %v1362_v4 }
0x1237   :  { %5506 = vtanh.f32 %v1372_v6 }
0x1244   :  { %v5507_v7 = vpop.eup %5506 }
0x1245   :  { %1375 = vrot.lane.b32.xlu1 %v5507_v7, %s5790_s26 }
0x12b7   :  { %v1376_v8 = vpop.permute.xlu1 %1375 }
0x12b8   :  { %v1378_v9 = vmul.f32 %v5505_v1, %v1376_v8 }
0x12ba   :  { %1385 = vrot.lane.b32.xlu1 %v1378_v9, %s5795_s5  ;;  %1380 = vrot.lane.b32.xlu0 %v1378_v9, %s5799_s19 }
0x12be   :  { %1393 = vrot.lane.b32.xlu0 %v1392_v10, %s5797_s4 }
0x132c   :  { %v1386_v12 = vpop.permute.xlu1 %1385  ;;  %v1381_v13 = vpop.permute.xlu0 %1380 }
0x132d   :  { %1383 = vst.msk [vmem:[#allocation2 + $0x4] sm:$0x3] %vm1151_vm0, %v1381_v13  ;;  %v1388_v14 = vsel %vm174_vm4, %v1381_v13, %v1386_v12 }
0x132e   :  { %1384 = vst.msk [vmem:[#allocation3 + $0x18] sm:$0xc] %vm1153_vm1, %v1381_v13  ;;  %v1389_v15 = vmul.f32 %v6181_v43, %v1388_v14  ;;  %v1620_v14 = vrot.slane %v6214_v58, 2 }
0x1330   :  { %5256 = vmatmul.mubr.msk.f32.vlgmr.msra.gmra.mxu0 %vm184_vm6, %v1389_v15  ;;  %v1394_v16 = vpop.permute.xlu0 %1393 }
0x1331   :  { %5266 = vmatpush3.msra.mxu0 %v6165_v31  ;;  %5269 = vmatprep.mubr.msk.f32.mxu0 %vm5794_vm8, %v5793_v11  ;;  %v1396_v19 = vsel %vm135_vm2, %v1390_v18, %v1394_v16 }
0x1332   :  { %5267 = vmatprep.subr.mxu0 %v5793_v11 }
0x1333   :  { %5268 = vmatpush3.msra.mxu0 %v6170_v33 }
0x1334   :  { %5279 = vmatprep.subr.mxu0 %v5793_v11 }
0x13f0   :  { %v1466_v32 = vpop.f32.mrf.mxu0 }
0x13f1   :  { %v1467_v20 = vadd.f32 %v1466_v32, %v1396_v19 }
0x13f2   :  { %v5257_v21 = vpop.f32.mrf.mxu0 }
0x13f3   :  { %5508 = vtanh.f32 %v1467_v20  ;;  %v4963_v24 = vmul.f32 -1.442695, %v1467_v20 }
0x13f5   :  { %5510 = vpow2.f32 %v4963_v24 }
0x1400   :  { %v5509_v23 = vpop.eup %5508 }
0x1401   :  { %1479 = vrot.lane.b32.xlu1 %v5509_v23, %s5798_s11 }
0x1402   :  { %v5511_v25 = vpop.eup %5510 }
0x1403   :  { %v1473_v26 = vadd.f32 1.0, %v5511_v25 }
0x1405   :  { %5512 = vrcp.f32 %v1473_v26 }
0x1412   :  { %v5513_v27 = vpop.eup %5512 }
0x1413   :  { %v1477_v30 = vmul.f32 %v5513_v27, %v1372_v6  ;;  %v1622_v6 = vrot.slane %v6305_v38, 2 }
0x1473   :  { %v1480_v28 = vpop.permute.xlu1 %1479 }
0x1474   :  { %v1482_v29 = vmul.f32 %v5513_v27, %v1480_v28 }
0x1476   :  { %1484 = vrot.lane.b32.xlu0 %v1482_v29, %s5790_s26 }
0x14e8   :  { %v1485_v34 = vpop.permute.xlu0 %1484 }
0x14e9   :  { %v1487_v35 = vadd.f32 %v1485_v34, %v1477_v30 }
0x14eb   :  { %5514 = vtanh.f32 %v1487_v35 }
0x14f8   :  { %v5515_v36 = vpop.eup %5514 }
0x14f9   :  { %1490 = vrot.lane.b32.xlu1 %v5515_v36, %s5790_s26 }
0x156b   :  { %v1491_v37 = vpop.permute.xlu1 %1490 }
0x156c   :  { %v1493_v39 = vmul.f32 %v5513_v27, %v1491_v37 }
0x156e   :  { %1500 = vrot.lane.b32.xlu1 %v1493_v39, %s5795_s5  ;;  %1495 = vrot.lane.b32.xlu0 %v1493_v39, %s5799_s19 }
0x1572   :  { %1507 = vrot.lane.b32.xlu0 %v1506_v40, %s5797_s4 }
0x15e0   :  { %v1501_v41 = vpop.permute.xlu1 %1500  ;;  %v1496_v42 = vpop.permute.xlu0 %1495 }
0x15e1   :  { %1498 = vst.msk [vmem:[#allocation2 + $0x6] sm:$0x3] %vm1151_vm0, %v1496_v42  ;;  %v1503_v56 = vsel %vm174_vm4, %v1496_v42, %v1501_v41 }
0x15e2   :  { %1499 = vst.msk [vmem:[#allocation3 + $0x16] sm:$0xc] %vm1153_vm1, %v1496_v42  ;;  %v1504_v45 = vmul.f32 %v6181_v43, %v1503_v56 }
0x15e4   :  { %5263 = vmatmul.mubr.msk.f32.vlgmr.msra.gmra.mxu1 %vm184_vm6, %v1504_v45  ;;  %v1508_v46 = vpop.permute.xlu0 %1507  ;;  %v1735_v45 = vrot.slane %v6214_v58, 4 }
0x15e5   :  { %5273 = vmatpush3.msra.mxu1 %v6165_v31  ;;  %5276 = vmatprep.mubr.msk.f32.mxu1 %vm5794_vm8, %v5793_v11  ;;  %v1510_v47 = vsel %vm135_vm2, %v6214_v58, %v1508_v46 }
0x15e6   :  { %5274 = vmatprep.subr.mxu1 %v5793_v11 }
0x15e7   :  { %5275 = vmatpush3.msra.mxu1 %v6170_v33 }
0x15e8   :  { %5286 = vmatprep.subr.mxu1 %v5793_v11 }
0x16a4   :  { %v1580_v48 = vpop.f32.mrf.mxu1 }
0x16a5   :  { %v1581_v49 = vadd.f32 %v1580_v48, %v1510_v47 }
0x16a6   :  { %v5264_v50 = vpop.f32.mrf.mxu1 }
0x16a7   :  { %5516 = vtanh.f32 %v1581_v49  ;;  %v4965_v53 = vmul.f32 -1.442695, %v1581_v49 }
0x16a9   :  { %5518 = vpow2.f32 %v4965_v53 }
0x16b4   :  { %v5517_v52 = vpop.eup %5516 }
0x16b5   :  { %1593 = vrot.lane.b32.xlu1 %v5517_v52, %s5798_s11 }
0x16b6   :  { %v5519_v54 = vpop.eup %5518 }
0x16b7   :  { %v1587_v55 = vadd.f32 1.0, %v5519_v54 }
0x16b9   :  { %5520 = vrcp.f32 %v1587_v55 }
0x16c6   :  { %v5521_v57 = vpop.eup %5520 }
0x16c7   :  { %v1591_v0 = vmul.f32 %v5521_v57, %v1487_v35 }
0x1727   :  { %v1594_v59 = vpop.permute.xlu1 %1593 }
0x1728   :  { %v1596_v61 = vmul.f32 %v5521_v57, %v1594_v59 }
0x172a   :  { %1598 = vrot.lane.b32.xlu0 %v1596_v61, %s5790_s26 }
0x179c   :  { %v1599_v1 = vpop.permute.xlu0 %1598 }
0x179d   :  { %v1601_v2 = vadd.f32 %v1599_v1, %v1591_v0 }
0x179f   :  { %5522 = vtanh.f32 %v1601_v2 }
0x17ac   :  { %v5523_v3 = vpop.eup %5522 }
0x17ad   :  { %1604 = vrot.lane.b32.xlu1 %v5523_v3, %s5790_s26 }
0x181f   :  { %v1605_v4 = vpop.permute.xlu1 %1604 }
0x1820   :  { %v1607_v5 = vmul.f32 %v5521_v57, %v1605_v4 }
0x1822   :  { %1614 = vrot.lane.b32.xlu1 %v1607_v5, %s5795_s5  ;;  %1609 = vrot.lane.b32.xlu0 %v1607_v5, %s5799_s19  ;;  %v1851_v5 = vrot.slane %v6305_v38, 6 }
0x1826   :  { %1623 = vrot.lane.b32.xlu0 %v1622_v6, %s5797_s4 }
0x1894   :  { %v1615_v7 = vpop.permute.xlu1 %1614  ;;  %v1610_v8 = vpop.permute.xlu0 %1609 }
0x1895   :  { %1612 = vst.msk [vmem:[#allocation2 + $0x8] sm:$0x3] %vm1151_vm0, %v1610_v8  ;;  %v1617_v9 = vsel %vm174_vm4, %v1610_v8, %v1615_v7 }
0x1896   :  { %1613 = vst.msk [vmem:[#allocation3 + $0x14] sm:$0xc] %vm1153_vm1, %v1610_v8  ;;  %v1618_v12 = vmul.f32 %v6181_v43, %v1617_v9 }
0x1898   :  { %5270 = vmatmul.mubr.msk.f32.vlgmr.msra.gmra.mxu0 %vm184_vm6, %v1618_v12  ;;  %v1624_v13 = vpop.permute.xlu0 %1623 }
0x1899   :  { %5280 = vmatpush3.msra.mxu0 %v6165_v31  ;;  %5283 = vmatprep.mubr.msk.f32.mxu0 %vm5794_vm8, %v5793_v11  ;;  %v1626_v15 = vsel %vm135_vm2, %v1620_v14, %v1624_v13 }
0x189a   :  { %5281 = vmatprep.subr.mxu0 %v5793_v11 }
0x189b   :  { %5282 = vmatpush3.msra.mxu0 %v6170_v33 }
0x189c   :  { %5293 = vmatprep.subr.mxu0 %v5793_v11 }
0x1958   :  { %v1696_v16 = vpop.f32.mrf.mxu0 }
0x1959   :  { %v1697_v19 = vadd.f32 %v1696_v16, %v1626_v15  ;;  %v1849_v15 = vrot.slane %v6214_v58, 6 }
0x195a   :  { %v5271_v32 = vpop.f32.mrf.mxu0 }
0x195b   :  { %5524 = vtanh.f32 %v1697_v19  ;;  %v4967_v21 = vmul.f32 -1.442695, %v1697_v19 }
0x195d   :  { %5526 = vpow2.f32 %v4967_v21 }
0x1968   :  { %v5525_v20 = vpop.eup %5524 }
0x1969   :  { %1709 = vrot.lane.b32.xlu1 %v5525_v20, %s5798_s11 }
0x196a   :  { %v5527_v23 = vpop.eup %5526 }
0x196b   :  { %v1703_v24 = vadd.f32 1.0, %v5527_v23 }
0x196d   :  { %5528 = vrcp.f32 %v1703_v24 }
0x197a   :  { %v5529_v25 = vpop.eup %5528 }
0x197b   :  { %v1707_v28 = vmul.f32 %v5529_v25, %v1601_v2 }
0x19db   :  { %v1710_v26 = vpop.permute.xlu1 %1709 }
0x19dc   :  { %v1712_v27 = vmul.f32 %v5529_v25, %v1710_v26 }
0x19de   :  { %1714 = vrot.lane.b32.xlu0 %v1712_v27, %s5790_s26 }
0x1a50   :  { %v1715_v29 = vpop.permute.xlu0 %1714 }
0x1a51   :  { %v1717_v30 = vadd.f32 %v1715_v29, %v1707_v28 }
0x1a53   :  { %5530 = vtanh.f32 %v1717_v30 }
0x1a60   :  { %v5531_v34 = vpop.eup %5530 }
0x1a61   :  { %1720 = vrot.lane.b32.xlu1 %v5531_v34, %s5790_s26 }
0x1ad3   :  { %v1721_v35 = vpop.permute.xlu1 %1720 }
0x1ad4   :  { %v1723_v36 = vmul.f32 %v5529_v25, %v1721_v35 }
0x1ad6   :  { %1730 = vrot.lane.b32.xlu1 %v1723_v36, %s5795_s5  ;;  %1725 = vrot.lane.b32.xlu0 %v1723_v36, %s5799_s19 }
0x1ada   :  { %1737 = vrot.lane.b32.xlu0 %v6305_v38, %s5797_s4 }
0x1b48   :  { %v1731_v37 = vpop.permute.xlu1 %1730  ;;  %v1726_v39 = vpop.permute.xlu0 %1725 }
0x1b49   :  { %1728 = vst.msk [vmem:[#allocation2 + $0xa] sm:$0x3] %vm1151_vm0, %v1726_v39  ;;  %v1733_v41 = vsel %vm174_vm4, %v1726_v39, %v1731_v37 }
0x1b4a   :  { %1729 = vst.msk [vmem:[#allocation3 + $0x12] sm:$0xc] %vm1153_vm1, %v1726_v39  ;;  %v1734_v42 = vmul.f32 %v6181_v43, %v1733_v41 }
0x1b4c   :  { %5277 = vmatmul.mubr.msk.f32.vlgmr.msra.gmra.mxu1 %vm184_vm6, %v1734_v42  ;;  %v1738_v56 = vpop.permute.xlu0 %1737 }
0x1b4d   :  { %5287 = vmatpush3.msra.mxu1 %v6165_v31  ;;  %5290 = vmatprep.mubr.msk.f32.mxu1 %vm5794_vm8, %v5793_v11  ;;  %v1740_v46 = vsel %vm135_vm2, %v1735_v45, %v1738_v56 }
0x1b4e   :  { %5288 = vmatprep.subr.mxu1 %v5793_v11 }
0x1b4f   :  { %5289 = vmatpush3.msra.mxu1 %v6170_v33 }
0x1b50   :  { %5300 = vmatprep.subr.mxu1 %v5793_v11 }
0x1c0c   :  { %v1810_v47 = vpop.f32.mrf.mxu1 }
0x1c0d   :  { %v1811_v48 = vadd.f32 %v1810_v47, %v1740_v46 }
0x1c0e   :  { %v5278_v49 = vpop.f32.mrf.mxu1 }
0x1c0f   :  { %5532 = vtanh.f32 %v1811_v48  ;;  %v4969_v52 = vmul.f32 -1.442695, %v1811_v48 }
0x1c11   :  { %5534 = vpow2.f32 %v4969_v52 }
0x1c1c   :  { %v5533_v50 = vpop.eup %5532 }
0x1c1d   :  { %1823 = vrot.lane.b32.xlu1 %v5533_v50, %s5798_s11 }
0x1c1e   :  { %v5535_v53 = vpop.eup %5534 }
0x1c1f   :  { %v1817_v54 = vadd.f32 1.0, %v5535_v53 }
0x1c21   :  { %5536 = vrcp.f32 %v1817_v54 }
0x1c2e   :  { %v5537_v55 = vpop.eup %5536 }
0x1c2f   :  { %v1821_v61 = vmul.f32 %v5537_v55, %v1717_v30 }
0x1c8f   :  { %v1824_v57 = vpop.permute.xlu1 %1823 }
0x1c90   :  { %v1826_v59 = vmul.f32 %v5537_v55, %v1824_v57 }
0x1c92   :  { %1828 = vrot.lane.b32.xlu0 %v1826_v59, %s5790_s26 }
0x1d04   :  { %v1829_v0 = vpop.permute.xlu0 %1828 }
0x1d05   :  { %v1831_v1 = vadd.f32 %v1829_v0, %v1821_v61 }
0x1d07   :  { %5538 = vtanh.f32 %v1831_v1 }
0x1d14   :  { %v5539_v2 = vpop.eup %5538 }
0x1d15   :  { %1834 = vrot.lane.b32.xlu1 %v5539_v2, %s5790_s26 }
0x1d87   :  { %v1835_v3 = vpop.permute.xlu1 %1834 }
0x1d88   :  { %v1837_v4 = vmul.f32 %v5537_v55, %v1835_v3 }
0x1d8a   :  { %1844 = vrot.lane.b32.xlu1 %v1837_v4, %s5795_s5  ;;  %1839 = vrot.lane.b32.xlu0 %v1837_v4, %s5799_s19 }
0x1d8e   :  { %1852 = vrot.lane.b32.xlu0 %v1851_v5, %s5797_s4 }
0x1dfc   :  { %v1845_v7 = vpop.permute.xlu1 %1844  ;;  %v1840_v8 = vpop.permute.xlu0 %1839 }
0x1dfd   :  { %1842 = vst.msk [vmem:[#allocation2 + $0xc] sm:$0x3] %vm1151_vm0, %v1840_v8  ;;  %v1847_v9 = vsel %vm174_vm4, %v1840_v8, %v1845_v7 }
0x1dfe   :  { %1843 = vst.msk [vmem:[#allocation3 + $0x10] sm:$0xc] %vm1153_vm1, %v1840_v8  ;;  %v1848_v12 = vmul.f32 %v6181_v43, %v1847_v9 }
0x1e00   :  { %5284 = vmatmul.mubr.msk.f32.vlgmr.msra.gmra.mxu0 %vm184_vm6, %v1848_v12  ;;  %v1853_v13 = vpop.permute.xlu0 %1852 }
0x1e01   :  { %5294 = vmatpush3.msra.mxu0 %v6165_v31  ;;  %5297 = vmatprep.mubr.msk.f32.mxu0 %vm5794_vm8, %v5793_v11  ;;  %v1855_v16 = vsel %vm135_vm2, %v1849_v15, %v1853_v13 }
0x1e02   :  { %5295 = vmatprep.subr.mxu0 %v5793_v11 }
0x1e03   :  { %5296 = vmatpush3.msra.mxu0 %v6170_v33 }
0x1e04   :  { %5307 = vmatprep.subr.mxu0 %v5793_v11 }
0x1ec0   :  { %v1925_v19 = vpop.f32.mrf.mxu0 }
0x1ec1   :  { %v1926_v32 = vadd.f32 %v1925_v19, %v1855_v16 }
0x1ec2   :  { %v5285_v20 = vpop.f32.mrf.mxu0 }
0x1ec3   :  { %5540 = vtanh.f32 %v1926_v32  ;;  %v4971_v23 = vmul.f32 -1.442695, %v1926_v32 }
0x1ec5   :  { %5542 = vpow2.f32 %v4971_v23 }
0x1ed0   :  { %v5541_v21 = vpop.eup %5540 }
0x1ed1   :  { %1938 = vrot.lane.b32.xlu1 %v5541_v21, %s5798_s11 }
0x1ed2   :  { %v5543_v24 = vpop.eup %5542 }
0x1ed3   :  { %v1932_v25 = vadd.f32 1.0, %v5543_v24 }
0x1ed5   :  { %5544 = vrcp.f32 %v1932_v25 }
0x1ee2   :  { %v5545_v26 = vpop.eup %5544 }
0x1ee3   :  { %v1936_v29 = vmul.f32 %v5545_v26, %v1831_v1 }
0x1f43   :  { %v1939_v27 = vpop.permute.xlu1 %1938 }
0x1f44   :  { %v1941_v28 = vmul.f32 %v5545_v26, %v1939_v27 }
0x1f46   :  { %1943 = vrot.lane.b32.xlu0 %v1941_v28, %s5790_s26 }
0x1fb8   :  { %v1944_v30 = vpop.permute.xlu0 %1943 }
0x1fb9   :  { %v1946_v34 = vadd.f32 %v1944_v30, %v1936_v29 }
0x1fbb   :  { %5546 = vtanh.f32 %v1946_v34 }
0x1fc8   :  { %v5547_v35 = vpop.eup %5546 }
0x1fc9   :  { %1949 = vrot.lane.b32.xlu1 %v5547_v35, %s5790_s26 }
0x203b   :  { %v1950_v36 = vpop.permute.xlu1 %1949 }
0x203c   :  { %v1952_v37 = vmul.f32 %v5545_v26, %v1950_v36 }
0x203e   :  { %1959 = vrot.lane.b32.xlu1 %v1952_v37, %s5795_s5  ;;  %1954 = vrot.lane.b32.xlu0 %v1952_v37, %s5799_s19 }
0x2042   :  { %1964 = vrot.lane.b32.xlu0 %v1735_v45, %s5797_s4 }
0x20b0   :  { %v1960_v39 = vpop.permute.xlu1 %1959  ;;  %v1955_v41 = vpop.permute.xlu0 %1954 }
0x20b1   :  { %1957 = vst.msk [vmem:[#allocation2 + $0xe] sm:$0x3] %vm1151_vm0, %v1955_v41  ;;  %v1962_v42 = vsel %vm174_vm4, %v1955_v41, %v1960_v39 }
0x20b2   :  { %1958 = vst.msk [vmem:[#allocation3 + $0xe] sm:$0xc] %vm1153_vm1, %v1955_v41  ;;  %v1963_v56 = vmul.f32 %v6181_v43, %v1962_v42 }
0x20b4   :  { %5291 = vmatmul.mubr.msk.f32.vlgmr.msra.gmra.mxu1 %vm184_vm6, %v1963_v56  ;;  %v1965_v45 = vpop.permute.xlu0 %1964 }
0x20b5   :  { %5301 = vmatpush3.msra.mxu1 %v6165_v31  ;;  %5304 = vmatprep.mubr.msk.f32.mxu1 %vm5794_vm8, %v5793_v11  ;;  %v1967_v46 = vsel %vm135_vm2, %v6305_v38, %v1965_v45 }
0x20b6   :  { %5302 = vmatprep.subr.mxu1 %v5793_v11 }
0x20b7   :  { %5303 = vmatpush3.msra.mxu1 %v6170_v33 }
0x20b8   :  { %5314 = vmatprep.subr.mxu1 %v5793_v11 }
0x2174   :  { %v2037_v47 = vpop.f32.mrf.mxu1 }
0x2175   :  { %v2038_v48 = vadd.f32 %v2037_v47, %v1967_v46 }
0x2176   :  { %v5292_v49 = vpop.f32.mrf.mxu1 }
0x2177   :  { %5548 = vtanh.f32 %v2038_v48  ;;  %v4973_v52 = vmul.f32 -1.442695, %v2038_v48 }
0x2179   :  { %5550 = vpow2.f32 %v4973_v52 }
0x2184   :  { %v5549_v50 = vpop.eup %5548 }
0x2185   :  { %2050 = vrot.lane.b32.xlu1 %v5549_v50, %s5798_s11 }
0x2186   :  { %v5551_v53 = vpop.eup %5550 }
0x2187   :  { %v2044_v54 = vadd.f32 1.0, %v5551_v53 }
0x2189   :  { %5552 = vrcp.f32 %v2044_v54 }
0x2196   :  { %v5553_v55 = vpop.eup %5552 }
0x2197   :  { %v2048_v61 = vmul.f32 %v5553_v55, %v1946_v34 }
0x21f7   :  { %v2051_v57 = vpop.permute.xlu1 %2050 }
0x21f8   :  { %v2053_v59 = vmul.f32 %v5553_v55, %v2051_v57 }
0x21fa   :  { %2055 = vrot.lane.b32.xlu0 %v2053_v59, %s5790_s26 }
0x226c   :  { %v2056_v0 = vpop.permute.xlu0 %2055 }
0x226d   :  { %v2058_v1 = vadd.f32 %v2056_v0, %v2048_v61 }
0x226f   :  { %5554 = vtanh.f32 %v2058_v1 }
0x227c   :  { %v5555_v2 = vpop.eup %5554 }
0x227d   :  { %2061 = vrot.lane.b32.xlu1 %v5555_v2, %s5790_s26 }
0x22ef   :  { %v2062_v3 = vpop.permute.xlu1 %2061 }
0x22f0   :  { %v2064_v4 = vmul.f32 %v5553_v55, %v2062_v3 }
0x22f2   :  { %2071 = vrot.lane.b32.xlu1 %v2064_v4, %s5795_s5  ;;  %2066 = vrot.lane.b32.xlu0 %v2064_v4, %s5799_s19 }
0x22f6   :  { %2077 = vrot.lane.b32.xlu0 %v1620_v14, %s5797_s4 }
0x2364   :  { %v2072_v7 = vpop.permute.xlu1 %2071  ;;  %v2067_v8 = vpop.permute.xlu0 %2066 }
0x2365   :  { %2069 = vst.msk [vmem:[#allocation2 + $0x10] sm:$0x3] %vm1151_vm0, %v2067_v8  ;;  %v2074_v9 = vsel %vm174_vm4, %v2067_v8, %v2072_v7 }
0x2366   :  { %2070 = vst.msk [vmem:[#allocation3 + $0xc] sm:$0xc] %vm1153_vm1, %v2067_v8  ;;  %v2075_v12 = vmul.f32 %v6181_v43, %v2074_v9 }
0x2368   :  { %5298 = vmatmul.mubr.msk.f32.vlgmr.msra.gmra.mxu0 %vm184_vm6, %v2075_v12  ;;  %v2078_v14 = vpop.permute.xlu0 %2077 }
0x2369   :  { %5308 = vmatpush3.msra.mxu0 %v6165_v31  ;;  %5311 = vmatprep.mubr.msk.f32.mxu0 %vm5794_vm8, %v5793_v11  ;;  %v2080_v13 = vsel %vm135_vm2, %v1622_v6, %v2078_v14 }
0x236a   :  { %5309 = vmatprep.subr.mxu0 %v5793_v11 }
0x236b   :  { %5310 = vmatpush3.msra.mxu0 %v6170_v33 }
0x236c   :  { %5321 = vmatprep.subr.mxu0 %v5793_v11 }
0x2428   :  { %v2150_v16 = vpop.f32.mrf.mxu0 }
0x2429   :  { %v2151_v19 = vadd.f32 %v2150_v16, %v2080_v13 }
0x242a   :  { %v5299_v32 = vpop.f32.mrf.mxu0 }
0x242b   :  { %5556 = vtanh.f32 %v2151_v19  ;;  %v4975_v21 = vmul.f32 -1.442695, %v2151_v19 }
0x242d   :  { %5558 = vpow2.f32 %v4975_v21 }
0x2438   :  { %v5557_v20 = vpop.eup %5556 }
0x2439   :  { %2163 = vrot.lane.b32.xlu1 %v5557_v20, %s5798_s11 }
0x243a   :  { %v5559_v23 = vpop.eup %5558 }
0x243b   :  { %v2157_v24 = vadd.f32 1.0, %v5559_v23 }
0x243d   :  { %5560 = vrcp.f32 %v2157_v24 }
0x244a   :  { %v5561_v25 = vpop.eup %5560 }
0x244b   :  { %v2161_v28 = vmul.f32 %v5561_v25, %v2058_v1 }
0x24ab   :  { %v2164_v26 = vpop.permute.xlu1 %2163 }
0x24ac   :  { %v2166_v27 = vmul.f32 %v5561_v25, %v2164_v26 }
0x24ae   :  { %2168 = vrot.lane.b32.xlu0 %v2166_v27, %s5790_s26 }
0x2520   :  { %v2169_v29 = vpop.permute.xlu0 %2168 }
0x2521   :  { %v2171_v6 = vadd.f32 %v2169_v29, %v2161_v28  ;;  %v5740_v29 = vld [vmem:[%s7004_s12 + $0x8] sm:$0xff] }
0x2523   :  { %5562 = vtanh.f32 %v2171_v6 }
0x2530   :  { %v5563_v30 = vpop.eup %5562 }
0x2531   :  { %2174 = vrot.lane.b32.xlu1 %v5563_v30, %s5790_s26 }
0x25a3   :  { %v2175_v34 = vpop.permute.xlu1 %2174 }
0x25a4   :  { %v2177_v35 = vmul.f32 %v5561_v25, %v2175_v34 }
0x25a6   :  { %2184 = vrot.lane.b32.xlu1 %v2177_v35, %s5795_s5  ;;  %2179 = vrot.lane.b32.xlu0 %v2177_v35, %s5799_s19 }
0x25aa   :  { %2190 = vrot.lane.b32.xlu0 %v6214_v58, %s5797_s4 }
0x2618   :  { %v2185_v36 = vpop.permute.xlu1 %2184  ;;  %v2180_v37 = vpop.permute.xlu0 %2179 }
0x2619   :  { %2182 = vst.msk [vmem:[#allocation2 + $0x12] sm:$0x3] %vm1151_vm0, %v2180_v37  ;;  %v2187_v39 = vsel %vm174_vm4, %v2180_v37, %v2185_v36 }
0x261a   :  { %2183 = vst.msk [vmem:[#allocation3 + $0xa] sm:$0xc] %vm1153_vm1, %v2180_v37  ;;  %v2188_v41 = vmul.f32 %v6181_v43, %v2187_v39 }
0x261c   :  { %5305 = vmatmul.mubr.msk.f32.vlgmr.msra.gmra.mxu1 %vm184_vm6, %v2188_v41  ;;  %v2191_v42 = vpop.permute.xlu0 %2190 }
0x261d   :  { %5315 = vmatpush3.msra.mxu1 %v6165_v31  ;;  %5318 = vmatprep.mubr.msk.f32.mxu1 %vm5794_vm8, %v5793_v11  ;;  %v2193_v56 = vsel %vm135_vm2, %v1506_v40, %v2191_v42 }
0x261e   :  { %5316 = vmatprep.subr.mxu1 %v5793_v11 }
0x261f   :  { %5317 = vmatpush3.msra.mxu1 %v6170_v33 }
0x2620   :  { %5328 = vmatprep.subr.mxu1 %v5793_v11 }
0x26dc   :  { %v2263_v45 = vpop.f32.mrf.mxu1 }
0x26dd   :  { %v2264_v46 = vadd.f32 %v2263_v45, %v2193_v56 }
0x26de   :  { %v5306_v47 = vpop.f32.mrf.mxu1 }
0x26df   :  { %5564 = vtanh.f32 %v2264_v46  ;;  %v4977_v49 = vmul.f32 -1.442695, %v2264_v46 }
0x26e1   :  { %5566 = vpow2.f32 %v4977_v49 }
0x26ec   :  { %v5565_v48 = vpop.eup %5564 }
0x26ed   :  { %2276 = vrot.lane.b32.xlu1 %v5565_v48, %s5798_s11 }
0x26ee   :  { %v5567_v50 = vpop.eup %5566 }
0x26ef   :  { %v2270_v52 = vadd.f32 1.0, %v5567_v50 }
0x26f1   :  { %5568 = vrcp.f32 %v2270_v52 }
0x26fe   :  { %v5569_v53 = vpop.eup %5568 }
0x26ff   :  { %v2274_v57 = vmul.f32 %v5569_v53, %v2171_v6 }
0x275f   :  { %v2277_v54 = vpop.permute.xlu1 %2276 }
0x2760   :  { %v2279_v55 = vmul.f32 %v5569_v53, %v2277_v54 }
0x2762   :  { %2281 = vrot.lane.b32.xlu0 %v2279_v55, %s5790_s26 }
0x27d4   :  { %v2282_v59 = vpop.permute.xlu0 %2281 }
0x27d5   :  { %v2284_v40 = vadd.f32 %v2282_v59, %v2274_v57 }
0x27d7   :  { %5570 = vtanh.f32 %v2284_v40 }
0x27e4   :  { %v5571_v61 = vpop.eup %5570 }
0x27e5   :  { %2287 = vrot.lane.b32.xlu1 %v5571_v61, %s5790_s26 }
0x2857   :  { %v2288_v0 = vpop.permute.xlu1 %2287 }
0x2858   :  { %v2290_v1 = vmul.f32 %v5569_v53, %v2288_v0 }
0x285a   :  { %2297 = vrot.lane.b32.xlu1 %v2290_v1, %s5795_s5  ;;  %2292 = vrot.lane.b32.xlu0 %v2290_v1, %s5799_s19 }
0x285e   :  { %2303 = vrot.lane.b32.xlu0 %v1849_v15, %s5797_s4 }
0x28cc   :  { %v2298_v2 = vpop.permute.xlu1 %2297  ;;  %v2293_v3 = vpop.permute.xlu0 %2292 }
0x28cd   :  { %2295 = vst.msk [vmem:[#allocation2 + $0x14] sm:$0x3] %vm1151_vm0, %v2293_v3  ;;  %v2300_v4 = vsel %vm174_vm4, %v2293_v3, %v2298_v2 }
0x28ce   :  { %2296 = vst.msk [vmem:[#allocation3 + $0x8] sm:$0xc] %vm1153_vm1, %v2293_v3  ;;  %v2301_v7 = vmul.f32 %v6181_v43, %v2300_v4 }
0x28d0   :  { %5312 = vmatmul.mubr.msk.f32.vlgmr.msra.gmra.mxu0 %vm184_vm6, %v2301_v7  ;;  %v2304_v58 = vpop.permute.xlu0 %2303 }
0x28d1   :  { %5322 = vmatpush3.msra.mxu0 %v6165_v31  ;;  %5325 = vmatprep.mubr.msk.f32.mxu0 %vm5794_vm8, %v5793_v11  ;;  %v2306_v15 = vsel %vm135_vm2, %v1851_v5, %v2304_v58 }
0x28d2   :  { %5323 = vmatprep.subr.mxu0 %v5793_v11 }
0x28d3   :  { %5324 = vmatpush3.msra.mxu0 %v6170_v33 }
0x28d4   :  { %5335 = vmatprep.subr.mxu0 %v5793_v11 }
0x2990   :  { %v2376_v8 = vpop.f32.mrf.mxu0 }
0x2991   :  { %v2377_v9 = vadd.f32 %v2376_v8, %v2306_v15 }
0x2992   :  { %v5313_v12 = vpop.f32.mrf.mxu0 }
0x2993   :  { %5572 = vtanh.f32 %v2377_v9  ;;  %v4979_v31 = vmul.f32 -1.442695, %v2377_v9 }
0x2995   :  { %5574 = vpow2.f32 %v4979_v31 }
0x29a0   :  { %v5573_v14 = vpop.eup %5572 }
0x29a1   :  { %2389 = vrot.lane.b32.xlu1 %v5573_v14, %s5798_s11 }
0x29a2   :  { %v5575_v13 = vpop.eup %5574 }
0x29a3   :  { %v2383_v16 = vadd.f32 1.0, %v5575_v13 }
0x29a5   :  { %5576 = vrcp.f32 %v2383_v16 }
0x29b2   :  { %v5577_v33 = vpop.eup %5576 }
0x29b3   :  { %v2387_v38 = vmul.f32 %v5577_v33, %v2284_v40 }
0x2a13   :  { %v2390_v19 = vpop.permute.xlu1 %2389 }
0x2a14   :  { %v2392_v32 = vmul.f32 %v5577_v33, %v2390_v19 }
0x2a16   :  { %2394 = vrot.lane.b32.xlu0 %v2392_v32, %s5790_s26 }
0x2a88   :  { %v2395_v20 = vpop.permute.xlu0 %2394 }
0x2a89   :  { %v2397_v5 = vadd.f32 %v2395_v20, %v2387_v38 }
0x2a8b   :  { %5578 = vtanh.f32 %v2397_v5 }
0x2a98   :  { %v5579_v21 = vpop.eup %5578 }
0x2a99   :  { %2400 = vrot.lane.b32.xlu1 %v5579_v21, %s5790_s26 }
0x2b0b   :  { %v2401_v23 = vpop.permute.xlu1 %2400 }
0x2b0c   :  { %v2403_v24 = vmul.f32 %v5577_v33, %v2401_v23 }
0x2b0e   :  { %2410 = vrot.lane.b32.xlu1 %v2403_v24, %s5795_s5  ;;  %2405 = vrot.lane.b32.xlu0 %v2403_v24, %s5799_s19 }
0x2b12   :  { %2415 = vrot.lane.b32.xlu0 %v1276_v51, %s5797_s4  ;;  %v5741_v51 = vld [vmem:[%s7004_s12] sm:$0xff] }
0x2b80   :  { %v2411_v25 = vpop.permute.xlu1 %2410  ;;  %v2406_v26 = vpop.permute.xlu0 %2405 }
0x2b81   :  { %2408 = vst.msk [vmem:[#allocation2 + $0x16] sm:$0x3] %vm1151_vm0, %v2406_v26  ;;  %v2413_v27 = vsel %vm174_vm4, %v2406_v26, %v2411_v25 }
0x2b82   :  { %2409 = vst.msk [vmem:[#allocation3 + $0x6] sm:$0xc] %vm1153_vm1, %v2406_v26  ;;  %v2414_v28 = vmul.f32 %v6181_v43, %v2413_v27 }
0x2b84   :  { %5319 = vmatmul.mubr.msk.f32.vlgmr.msra.gmra.mxu1 %vm184_vm6, %v2414_v28  ;;  %v2416_v6 = vpop.permute.xlu0 %2415 }
0x2b85   :  { %5329 = vmatpush3.msra.mxu1 %v5740_v29  ;;  %5332 = vmatprep.mubr.msk.f32.mxu1 %vm5794_vm8, %v5793_v11  ;;  %v2418_v30 = vsel %vm135_vm2, %v6220_v62, %v2416_v6 }
0x2b86   :  { %5330 = vmatprep.subr.mxu1 %v5793_v11 }
0x2b87   :  { %5331 = vmatpush3.msra.mxu1 %v5741_v51 }
0x2c44   :  { %v2488_v34 = vpop.f32.mrf.mxu1 }
0x2c45   :  { %v2489_v35 = vadd.f32 %v2488_v34, %v2418_v30 }
0x2c46   :  { %v5320_v36 = vpop.f32.mrf.mxu1 }
0x2c47   :  { %5580 = vtanh.f32 %v2489_v35  ;;  %v4981_v39 = vmul.f32 -1.442695, %v2489_v35 }
0x2c49   :  { %5582 = vpow2.f32 %v4981_v39 }
0x2c54   :  { %v5581_v37 = vpop.eup %5580 }
0x2c55   :  { %2501 = vrot.lane.b32.xlu1 %v5581_v37, %s5798_s11 }
0x2c56   :  { %v5583_v41 = vpop.eup %5582 }
0x2c57   :  { %v2495_v42 = vadd.f32 1.0, %v5583_v41 }
0x2c59   :  { %5584 = vrcp.f32 %v2495_v42 }
0x2c66   :  { %v5585_v56 = vpop.eup %5584 }
0x2c67   :  { %v2499_v47 = vmul.f32 %v5585_v56, %v2397_v5 }
0x2cc7   :  { %v2502_v45 = vpop.permute.xlu1 %2501 }
0x2cc8   :  { %v2504_v46 = vmul.f32 %v5585_v56, %v2502_v45 }
0x2cca   :  { %2506 = vrot.lane.b32.xlu0 %v2504_v46, %s5790_s26 }
0x2d3c   :  { %v2507_v48 = vpop.permute.xlu0 %2506 }
0x2d3d   :  { %v2509_v49 = vadd.f32 %v2507_v48, %v2499_v47 }
0x2d3f   :  { %5586 = vtanh.f32 %v2509_v49 }
0x2d4c   :  { %v5587_v50 = vpop.eup %5586 }
0x2d4d   :  { %2512 = vrot.lane.b32.xlu1 %v5587_v50, %s5790_s26 }
0x2dbf   :  { %v2513_v52 = vpop.permute.xlu1 %2512 }
0x2dc0   :  { %v2515_v53 = vmul.f32 %v5585_v56, %v2513_v52 }
0x2dc2   :  { %2522 = vrot.lane.b32.xlu1 %v2515_v53, %s5795_s5  ;;  %2517 = vrot.lane.b32.xlu0 %v2515_v53, %s5799_s19 }
0x2dc6   :  { %2528 = vrot.lane.b32.xlu0 %v1161_v22, %s5797_s4 }
0x2e34   :  { %v2523_v54 = vpop.permute.xlu1 %2522  ;;  %v2518_v55 = vpop.permute.xlu0 %2517 }
0x2e35   :  { %2520 = vst.msk [vmem:[#allocation2 + $0x18] sm:$0x3] %vm1151_vm0, %v2518_v55  ;;  %v2525_v57 = vsel %vm174_vm4, %v2518_v55, %v2523_v54 }
0x2e36   :  { %2521 = vst.msk [vmem:[#allocation3 + $0x4] sm:$0xc] %vm1153_vm1, %v2518_v55  ;;  %v2526_v59 = vmul.f32 %v6181_v43, %v2525_v57 }
0x2e38   :  { %5326 = vmatmul.mubr.msk.f32.vlgmr.msra.gmra.mxu0 %vm184_vm6, %v2526_v59  ;;  %v2529_v22 = vpop.permute.xlu0 %2528 }
0x2e39   :  { %5336 = vmatpush3.msra.mxu0 %v5740_v29  ;;  %5339 = vmatprep.mubr.msk.f32.mxu0 %vm5794_vm8, %v5793_v11  ;;  %v2531_v40 = vsel %vm135_vm2, %v1163_v17, %v2529_v22 }
0x2e3a   :  { %5337 = vmatprep.subr.mxu0 %v5793_v11 }
0x2e3b   :  { %5338 = vmatpush3.msra.mxu0 %v5741_v51 }
0x2e3c   :  { %5352 = vmatprep.subr.mxu0 %v5793_v11 }
0x2ef8   :  { %v2601_v61 = vpop.f32.mrf.mxu0 }
0x2ef9   :  { %v2602_v0 = vadd.f32 %v2601_v61, %v2531_v40  ;;  %v2890_v40 = vld [vmem:[%s7005_s13 + $0x8] sm:$0xff]  ;;  %v2889_v61 = vld [vmem:[%s7005_s13] sm:$0xff] }
0x2efa   :  { %v5327_v1 = vpop.f32.mrf.mxu0  ;;  %5342 = vmatprep.subr.mxu1 %v2890_v40 }
0x2efb   :  { %5588 = vtanh.f32 %v2602_v0  ;;  %v4983_v3 = vmul.f32 -1.442695, %v2602_v0  ;;  %v2866_v0 = vld [vmem:[#allocation3 + $0x8] sm:$0xff]  ;;  %v2868_v1 = vld [vmem:[#allocation3 + $0x18] sm:$0xff] }
0x2efd   :  { %5590 = vpow2.f32 %v4983_v3  ;;  %v6577_v3 = vld [vmem:[%s7007_s15 + $0x8] sm:$0xff] }
0x2f08   :  { %v5589_v2 = vpop.eup %5588 }
0x2f09   :  { %2614 = vrot.lane.b32.xlu1 %v5589_v2, %s5798_s11 }
0x2f0a   :  { %v5591_v4 = vpop.eup %5590 }
0x2f0b   :  { %v2608_v7 = vadd.f32 1.0, %v5591_v4  ;;  %v6582_v4 = vld [vmem:[%s7007_s15] sm:$0xff] }
0x2f0d   :  { %5592 = vrcp.f32 %v2608_v7 }
0x2f1a   :  { %v5593_v58 = vpop.eup %5592 }
0x2f1b   :  { %v2612_v9 = vmul.f32 %v5593_v58, %v2509_v49 }
0x2f7b   :  { %v2615_v15 = vpop.permute.xlu1 %2614 }
0x2f7c   :  { %v2617_v8 = vmul.f32 %v5593_v58, %v2615_v15  ;;  %v2861_v15 = vld [vmem:[#allocation2] sm:$0xff] }
0x2f7e   :  { %2619 = vrot.lane.b32.xlu0 %v2617_v8, %s5790_s26 }
0x2ff0   :  { %v2620_v12 = vpop.permute.xlu0 %2619 }
0x2ff1   :  { %v2622_v17 = vadd.f32 %v2620_v12, %v2612_v9  ;;  %v2862_v9 = vld [vmem:[#allocation2 + $0x8] sm:$0xff] }
0x2ff3   :  { %5594 = vtanh.f32 %v2622_v17 }
0x3000   :  { %v5595_v14 = vpop.eup %5594 }
0x3001   :  { %2625 = vrot.lane.b32.xlu1 %v5595_v14, %s5790_s26 }
0x3073   :  { %v2626_v31 = vpop.permute.xlu1 %2625 }
0x3074   :  { %v2628_v13 = vmul.f32 %v5593_v58, %v2626_v31  ;;  %v2867_v58 = vld [vmem:[#allocation3 + $0x10] sm:$0xff] }
0x3076   :  { %2635 = vrot.lane.b32.xlu1 %v2628_v13, %s5795_s5  ;;  %2630 = vrot.lane.b32.xlu0 %v2628_v13, %s5799_s19  ;;  %v2863_v13 = vld [vmem:[#allocation2 + $0x10] sm:$0xff] }
0x307a   :  { %2641 = vrot.lane.b32.xlu0 %v6217_v60, %s5797_s4 }
0x30e8   :  { %v2636_v16 = vpop.permute.xlu1 %2635  ;;  %v2631_v33 = vpop.permute.xlu0 %2630 }
0x30e9   :  { %2633 = vst.msk [vmem:[#allocation2 + $0x1a] sm:$0x3] %vm1151_vm0, %v2631_v33  ;;  %v2638_v19 = vsel %vm174_vm4, %v2631_v33, %v2636_v16 }
0x30ea   :  { %2634 = vst.msk [vmem:[#allocation3 + $0x2] sm:$0xc] %vm1153_vm1, %v2631_v33  ;;  %v2639_v32 = vmul.f32 %v6181_v43, %v2638_v19 }
0x30ec   :  { %5333 = vmatmul.mubr.msk.f32.vlgmr.msra.gmra.mxu1 %vm184_vm6, %v2639_v32  ;;  %v2642_v38 = vpop.permute.xlu0 %2641 }
0x30ed   :  { %v2644_v20 = vsel %vm135_vm2, %v1045_v63, %v2642_v38  ;;  %5343 = vmatpush3.msra.mxu1 %v2890_v40 }
0x30ee   :  { %5344 = vmatprep.subr.mxu1 %v2889_v61 }
0x30ef   :  { %5345 = vmatpush3.msra.mxu1 %v2889_v61 }
0x30f0   :  { %5366 = vmatprep.subr.mxu1 %v5793_v11 }
0x31ac   :  { %v2714_v5 = vpop.f32.mrf.mxu1 }
0x31ad   :  { %v2715_v21 = vadd.f32 %v2714_v5, %v2644_v20  ;;  %v6615_v20 = vld [vmem:[%s7006_s14] ss:$0 sm:$0xff] }
0x31ae   :  { %v5334_v23 = vpop.f32.mrf.mxu1 }
0x31af   :  { %5596 = vtanh.f32 %v2715_v21  ;;  %v4985_v25 = vmul.f32 -1.442695, %v2715_v21 }
0x31b1   :  { %5598 = vpow2.f32 %v4985_v25 }
0x31bc   :  { %v5597_v24 = vpop.eup %5596 }
0x31bd   :  { %2727 = vrot.lane.b32.xlu1 %v5597_v24, %s5798_s11 }
0x31be   :  { %v5599_v26 = vpop.eup %5598 }
0x31bf   :  { %v2721_v27 = vadd.f32 1.0, %v5599_v26 }
0x31c1   :  { %5600 = vrcp.f32 %v2721_v27 }
0x31ce   :  { %v5601_v28 = vpop.eup %5600 }
0x31cf   :  { %v2725_v6 = vmul.f32 %v5601_v28, %v2622_v17 }
0x322f   :  { %v2728_v29 = vpop.permute.xlu1 %2727 }
0x3230   :  { %v2730_v51 = vmul.f32 %v5601_v28, %v2728_v29 }
0x3232   :  { %2732 = vrot.lane.b32.xlu0 %v2730_v51, %s5790_s26 }
0x32a4   :  { %v2733_v30 = vpop.permute.xlu0 %2732 }
0x32a5   :  { %v2735_v63 = vadd.f32 %v2733_v30, %v2725_v6 }
0x32a7   :  { %5602 = vtanh.f32 %v2735_v63 }
0x32b4   :  { %v5603_v34 = vpop.eup %5602 }
0x32b5   :  { %2738 = vrot.lane.b32.xlu1 %v5603_v34, %s5790_s26 }
0x3327   :  { %v2739_v35 = vpop.permute.xlu1 %2738 }
0x3328   :  { %v2741_v36 = vmul.f32 %v5601_v28, %v2739_v35 }
0x332a   :  { %2748 = vrot.lane.b32.xlu1 %v2741_v36, %s5795_s5  ;;  %2743 = vrot.lane.b32.xlu0 %v2741_v36, %s5799_s19 }
0x332e   :  { %2754 = vrot.lane.b32.xlu0 %v1390_v18, %s5797_s4 }
0x339c   :  { %v2749_v37 = vpop.permute.xlu1 %2748  ;;  %v2744_v39 = vpop.permute.xlu0 %2743 }
0x339d   :  { %2746 = vst.msk [vmem:[#allocation2 + $0x1c] sm:$0x3] %vm1151_vm0, %v2744_v39  ;;  %v2751_v41 = vsel %vm174_vm4, %v2744_v39, %v2749_v37 }
0x339e   :  { %2747 = vst.msk [vmem:[#allocation3] sm:$0xc] %vm1153_vm1, %v2744_v39  ;;  %v2752_v42 = vmul.f32 %v6181_v43, %v2751_v41 }
0x33a0   :  { %5340 = vmatmul.mubr.msk.f32.vlgmr.msra.gmra.mxu0 %vm184_vm6, %v2752_v42  ;;  %v2755_v56 = vpop.permute.xlu0 %2754 }
0x33a1   :  { %5356 = vmatprep.mubr.msk.f32.mxu0 %vm5794_vm8, %v5793_v11  ;;  %v2757_v60 = vsel %vm135_vm2, %v1392_v10, %v2755_v56  ;;  %5353 = vmatpush3.msra.mxu0 %v6577_v3 }
0x33a2   :  { %5354 = vmatprep.subr.mxu0 %v5793_v11 }
0x33a3   :  { %5355 = vmatpush3.msra.mxu0 %v6582_v4 }
0x33a4   :  { %5357 = vmatmul.mubr.msk.f32.vlgmr.msra.gmra.mxu0 %vm184_vm6, %v6184_v44  ;;  %5359 = vmatprep.subr.mxu0 %v5793_v11 }
0x33a5   :  { %5360 = vmatpush3.msra.mxu0 %v6577_v3  ;;  %5363 = vmatprep.mubr.msk.f32.mxu0 %vm5794_vm8, %v5793_v11 }
0x33a6   :  { %5361 = vmatprep.subr.mxu0 %v5793_v11 }
0x33a7   :  { %5362 = vmatpush3.msra.mxu0 %v6582_v4 }
0x33a8   :  { %5373 = vmatprep.subr.mxu0 %v5793_v11 }
0x3460   :  { %v2827_v18 = vpop.f32.mrf.mxu0 }
0x3461   :  { %v2828_v45 = vadd.f32 %v2827_v18, %v2757_v60 }
0x3462   :  { %v5341_v46 = vpop.f32.mrf.mxu0 }
0x3463   :  { %5604 = vtanh.f32 %v2828_v45  ;;  %v4987_v48 = vmul.f32 -1.442695, %v2828_v45 }
0x3464   :  { %v3069_v32 = vpop.f32.mrf.mxu0 }
0x3465   :  { %5606 = vpow2.f32 %v4987_v48 }
0x3466   :  { %v5358_v38 = vpop.f32.mrf.mxu0 }
0x3470   :  { %v5605_v47 = vpop.eup %5604 }
0x3471   :  { %2840 = vrot.lane.b32.xlu1 %v5605_v47, %s5798_s11 }
0x3472   :  { %v5607_v49 = vpop.eup %5606 }
0x3473   :  { %v2834_v50 = vadd.f32 1.0, %v5607_v49 }
0x3475   :  { %5608 = vrcp.f32 %v2834_v50 }
0x3482   :  { %v5609_v52 = vpop.eup %5608 }
0x3483   :  { %v2838_v62 = vmul.f32 %v5609_v52, %v2735_v63 }
0x34e3   :  { %v2841_v53 = vpop.permute.xlu1 %2840 }
0x34e4   :  { %v2843_v54 = vmul.f32 %v5609_v52, %v2841_v53 }
0x34e6   :  { %2845 = vrot.lane.b32.xlu0 %v2843_v54, %s5790_s26 }
0x3558   :  { %v2846_v55 = vpop.permute.xlu0 %2845 }
0x3559   :  { %v2848_v10 = vadd.f32 %v2846_v55, %v2838_v62 }
0x355b   :  { %5610 = vtanh.f32 %v2848_v10 }
0x3568   :  { %v5611_v57 = vpop.eup %5610 }
0x3569   :  { %2851 = vrot.lane.b32.xlu1 %v5611_v57, %s5790_s26 }
0x35db   :  { %v2852_v59 = vpop.permute.xlu1 %2851 }
0x35dc   :  { %v2854_v22 = vmul.f32 %v5609_v52, %v2852_v59 }
0x35de   :  { %2856 = vrot.lane.b32.xlu0 %v2854_v22, %s5799_s19 }
0x35e2   :  { %2875 = vrot.lane.b32.xlu0 %v2866_v0, %s5790_s26 }
0x35e6   :  { %2879 = vrot.lane.b32.xlu0 %v2868_v1, %s5790_s26 }
0x3650   :  { %v2857_v2 = vpop.permute.xlu0 %2856 }
0x3651   :  { %2859 = vst.msk [vmem:[#allocation2 + $0x1e] sm:$0x3] %vm1151_vm0, %v2857_v2 }
0x3652   :  { %2860 = vst.msk [vmem:[#allocation3 - $0x2] sm:$0xc] %vm1153_vm1, %v2857_v2 }
0x3654   :  { %v2876_v44 = vpop.permute.xlu0 %2875 }
0x3655   :  { %v2886_v17 = vsel %vm174_vm4, %v2862_v9, %v2876_v44 }
0x3658   :  { %v2864_v14 = vld [vmem:[#allocation2 + $0x18] sm:$0xff]  ;;  %v2880_v31 = vpop.permute.xlu0 %2879 }
0x3659   :  { %v2865_v7 = vld [vmem:[#allocation3] sm:$0xff]  ;;  %v2888_v19 = vsel %vm174_vm4, %v2864_v14, %v2880_v31 }
0x365a   :  { %2873 = vrot.lane.b32.xlu1 %v2865_v7, %s5790_s26 }
0x365e   :  { %2877 = vrot.lane.b32.xlu1 %v2867_v58, %s5790_s26 }
0x36cc   :  { %v2874_v8 = vpop.permute.xlu1 %2873 }
0x36cd   :  { %v2885_v12 = vsel %vm174_vm4, %v2861_v15, %v2874_v8 }
0x36ce   :  { %5346 = vmatprep.mubr.msk.f32.mxu1 %vm184_vm6, %v2885_v12 }
0x36cf   :  { %5347 = vmatmul.mubr.msk.f32.vlgmr.msra.gmra.mxu1 %vm184_vm6, %v2886_v17 }
0x36d0   :  { %v2878_v16 = vpop.permute.xlu1 %2877  ;;  %5367 = vmatpush3.msra.mxu1 %v6577_v3 }
0x36d1   :  { %v2887_v33 = vsel %vm174_vm4, %v2863_v13, %v2878_v16  ;;  %5368 = vmatprep.subr.mxu1 %v5793_v11 }
0x36d2   :  { %5349 = vmatprep.mubr.msk.f32.mxu1 %vm184_vm6, %v2887_v33  ;;  %5369 = vmatpush3.msra.mxu1 %v6582_v4 }
0x36d3   :  { %5350 = vmatmul.mubr.msk.f32.gmra.mxu1 %vm184_vm6, %v2888_v19  ;;  %5380 = vmatprep.subr.mxu1 %v5793_v11 }
0x36d4   :  { %5370 = vmatprep.mubr.msk.f32.mxu1 %vm5794_vm8, %v5793_v11 }
0x378f   :  { %v5348_v5 = vpop.f32.mrf.mxu1 }
0x3790   :  { %v6618_v21 = vadd.f32 %v5348_v5, %v6615_v20 }
0x3791   :  { %v2976_v23 = vpop.f32.mrf.mxu1 }
0x3792   :  { %v6621_v24 = vadd.f32 %v6615_v20, %v2976_v23 }
0x3793   :  { %v5351_v25 = vpop.f32.mrf.mxu1 }
0x3794   :  { %v6624_v26 = vadd.f32 %v5351_v25, %v6615_v20  ;;  %v3109_v52 = vrot.slane %v6621_v24, 2  ;;  %v3224_v13 = vrot.slane %v6621_v24, 4 }
0x3795   :  { %v6674_v31 = vpop.f32.mrf.mxu1 }
0x3796   :  { %v2998_v27 = vrot.slane %v6624_v26, 4  ;;  %v3111_v45 = vrot.slane %v6624_v26, 2 }
0x3798   :  { %2999 = vrot.lane.b32.xlu1 %v2998_v27, %s5797_s4 }
0x380a   :  { %v3000_v28 = vpop.permute.xlu1 %2999 }
0x380b   :  { %v3002_v29 = vsel %vm135_vm2, %v6621_v24, %v3000_v28 }
0x380c   :  { %v3070_v51 = vadd.f32 %v3069_v32, %v3002_v29 }
0x380e   :  { %5612 = vtanh.f32 %v3070_v51  ;;  %v4994_v30 = vmul.f32 -1.442695, %v3070_v51 }
0x3810   :  { %5614 = vpow2.f32 %v4994_v30 }
0x381b   :  { %v5613_v6 = vpop.eup %5612 }
0x381c   :  { %3082 = vrot.lane.b32.xlu0 %v5613_v6, %s5798_s11 }
0x381d   :  { %v5615_v63 = vpop.eup %5614 }
0x381e   :  { %v3076_v34 = vadd.f32 1.0, %v5615_v63 }
0x3820   :  { %5616 = vrcp.f32 %v3076_v34 }
0x382d   :  { %v5617_v35 = vpop.eup %5616 }
0x382e   :  { %v3080_v39 = vmul.f32 0.0, %v5617_v35 }
0x388e   :  { %v3083_v36 = vpop.permute.xlu0 %3082 }
0x388f   :  { %v3085_v37 = vmul.f32 %v5617_v35, %v3083_v36 }
0x3891   :  { %3087 = vrot.lane.b32.xlu1 %v3085_v37, %s5790_s26  ;;  %v3340_v37 = vrot.slane %v6624_v26, 6 }
0x3903   :  { %v3088_v41 = vpop.permute.xlu1 %3087 }
0x3904   :  { %v3090_v42 = vadd.f32 %v3088_v41, %v3080_v39 }
0x3906   :  { %5618 = vtanh.f32 %v3090_v42 }
0x3913   :  { %v5619_v56 = vpop.eup %5618 }
0x3914   :  { %3093 = vrot.lane.b32.xlu0 %v5619_v56, %s5790_s26 }
0x3986   :  { %v3094_v60 = vpop.permute.xlu0 %3093 }
0x3987   :  { %v3096_v18 = vmul.f32 %v5617_v35, %v3094_v60 }
0x3989   :  { %3103 = vrot.lane.b32.xlu0 %v3096_v18, %s5795_s5  ;;  %3098 = vrot.lane.b32.xlu1 %v3096_v18, %s5799_s19  ;;  %v3338_v18 = vrot.slane %v6621_v24, 6 }
0x398d   :  { %3112 = vrot.lane.b32.xlu1 %v3111_v45, %s5797_s4 }
0x39fb   :  { %v3104_v46 = vpop.permute.xlu0 %3103  ;;  %v3099_v47 = vpop.permute.xlu1 %3098 }
0x39fc   :  { %3101 = vst.msk [vmem:[#allocation2] sm:$0x3] %vm1151_vm0, %v3099_v47  ;;  %v3106_v48 = vsel %vm174_vm4, %v3099_v47, %v3104_v46 }
0x39fd   :  { %3102 = vst.msk [vmem:[#allocation3 + $0x1c] sm:$0xc] %vm1153_vm1, %v3099_v47  ;;  %v3107_v49 = vmul.f32 %v6181_v43, %v3106_v48 }
0x39ff   :  { %5364 = vmatmul.mubr.msk.f32.vlgmr.msra.gmra.mxu0 %vm184_vm6, %v3107_v49  ;;  %v3113_v50 = vpop.permute.xlu1 %3112 }
0x3a00   :  { %5374 = vmatpush3.msra.mxu0 %v6577_v3  ;;  %5377 = vmatprep.mubr.msk.f32.mxu0 %vm5794_vm8, %v5793_v11  ;;  %v3115_v53 = vsel %vm135_vm2, %v3109_v52, %v3113_v50 }
0x3a01   :  { %5375 = vmatprep.subr.mxu0 %v5793_v11 }
0x3a02   :  { %5376 = vmatpush3.msra.mxu0 %v6582_v4 }
0x3a03   :  { %5387 = vmatprep.subr.mxu0 %v5793_v11 }
0x3abf   :  { %v3185_v54 = vpop.f32.mrf.mxu0 }
0x3ac0   :  { %v3186_v62 = vadd.f32 %v3185_v54, %v3115_v53 }
0x3ac1   :  { %v5365_v55 = vpop.f32.mrf.mxu0 }
0x3ac2   :  { %5620 = vtanh.f32 %v3186_v62  ;;  %v4996_v57 = vmul.f32 -1.442695, %v3186_v62 }
0x3ac4   :  { %5622 = vpow2.f32 %v4996_v57 }
0x3acf   :  { %v5621_v10 = vpop.eup %5620 }
0x3ad0   :  { %3198 = vrot.lane.b32.xlu0 %v5621_v10, %s5798_s11 }
0x3ad1   :  { %v5623_v59 = vpop.eup %5622 }
0x3ad2   :  { %v3192_v22 = vadd.f32 1.0, %v5623_v59 }
0x3ad4   :  { %5624 = vrcp.f32 %v3192_v22 }
0x3ae1   :  { %v5625_v40 = vpop.eup %5624 }
0x3ae2   :  { %v3196_v1 = vmul.f32 %v5625_v40, %v3090_v42 }
0x3b42   :  { %v3199_v61 = vpop.permute.xlu0 %3198 }
0x3b43   :  { %v3201_v0 = vmul.f32 %v5625_v40, %v3199_v61 }
0x3b45   :  { %3203 = vrot.lane.b32.xlu1 %v3201_v0, %s5790_s26 }
0x3bb7   :  { %v3204_v2 = vpop.permute.xlu1 %3203 }
0x3bb8   :  { %v3206_v7 = vadd.f32 %v3204_v2, %v3196_v1  ;;  %v6709_v1 = vadd.f32 %v6615_v20, %v6674_v31 }
0x3bba   :  { %5626 = vtanh.f32 %v3206_v7 }
0x3bc7   :  { %v5627_v58 = vpop.eup %5626 }
0x3bc8   :  { %3209 = vrot.lane.b32.xlu0 %v5627_v58, %s5790_s26 }
0x3c3a   :  { %v3210_v44 = vpop.permute.xlu0 %3209 }
0x3c3b   :  { %v3212_v15 = vmul.f32 %v5625_v40, %v3210_v44 }
0x3c3d   :  { %3219 = vrot.lane.b32.xlu0 %v3212_v15, %s5795_s5  ;;  %3214 = vrot.lane.b32.xlu1 %v3212_v15, %s5799_s19 }
0x3c41   :  { %3226 = vrot.lane.b32.xlu1 %v6624_v26, %s5797_s4 }
0x3caf   :  { %v3220_v8 = vpop.permute.xlu0 %3219  ;;  %v3215_v9 = vpop.permute.xlu1 %3214 }
0x3cb0   :  { %3217 = vst.msk [vmem:[#allocation2 + $0x2] sm:$0x3] %vm1151_vm0, %v3215_v9  ;;  %v3222_v12 = vsel %vm174_vm4, %v3215_v9, %v3220_v8 }
0x3cb1   :  { %3218 = vst.msk [vmem:[#allocation3 + $0x1a] sm:$0xc] %vm1153_vm1, %v3215_v9  ;;  %v3223_v17 = vmul.f32 %v6181_v43, %v3222_v12 }
0x3cb3   :  { %5371 = vmatmul.mubr.msk.f32.vlgmr.msra.gmra.mxu1 %vm184_vm6, %v3223_v17  ;;  %v3227_v14 = vpop.permute.xlu1 %3226 }
0x3cb4   :  { %5381 = vmatpush3.msra.mxu1 %v6577_v3  ;;  %5384 = vmatprep.mubr.msk.f32.mxu1 %vm5794_vm8, %v5793_v11  ;;  %v3229_v16 = vsel %vm135_vm2, %v3224_v13, %v3227_v14 }
0x3cb5   :  { %5382 = vmatprep.subr.mxu1 %v5793_v11 }
0x3cb6   :  { %5383 = vmatpush3.msra.mxu1 %v6582_v4 }
0x3cb7   :  { %5394 = vmatprep.subr.mxu1 %v5793_v11 }
0x3d73   :  { %v3299_v33 = vpop.f32.mrf.mxu1 }
0x3d74   :  { %v3300_v19 = vadd.f32 %v3299_v33, %v3229_v16 }
0x3d75   :  { %v5372_v32 = vpop.f32.mrf.mxu1 }
0x3d76   :  { %5628 = vtanh.f32 %v3300_v19  ;;  %v4998_v5 = vmul.f32 -1.442695, %v3300_v19 }
0x3d78   :  { %5630 = vpow2.f32 %v4998_v5 }
0x3d83   :  { %v5629_v38 = vpop.eup %5628 }
0x3d84   :  { %3312 = vrot.lane.b32.xlu0 %v5629_v38, %s5798_s11 }
0x3d85   :  { %v5631_v23 = vpop.eup %5630 }
0x3d86   :  { %v3306_v25 = vadd.f32 1.0, %v5631_v23 }
0x3d88   :  { %5632 = vrcp.f32 %v3306_v25 }
0x3d95   :  { %v5633_v28 = vpop.eup %5632 }
0x3d96   :  { %v3310_v6 = vmul.f32 %v5633_v28, %v3206_v7  ;;  %v3454_v7 = vrot.slane %v6709_v1, 4 }
0x3df6   :  { %v3313_v29 = vpop.permute.xlu0 %3312 }
0x3df7   :  { %v3315_v51 = vmul.f32 %v5633_v28, %v3313_v29 }
0x3df9   :  { %3317 = vrot.lane.b32.xlu1 %v3315_v51, %s5790_s26 }
0x3e6b   :  { %v3318_v30 = vpop.permute.xlu1 %3317 }
0x3e6c   :  { %v3320_v63 = vadd.f32 %v3318_v30, %v3310_v6  ;;  %v3570_v30 = vrot.slane %v6709_v1, 2 }
0x3e6e   :  { %5634 = vtanh.f32 %v3320_v63 }
0x3e7b   :  { %v5635_v34 = vpop.eup %5634 }
0x3e7c   :  { %3323 = vrot.lane.b32.xlu0 %v5635_v34, %s5790_s26 }
0x3eee   :  { %v3324_v35 = vpop.permute.xlu0 %3323 }
0x3eef   :  { %v3326_v36 = vmul.f32 %v5633_v28, %v3324_v35 }
0x3ef1   :  { %3333 = vrot.lane.b32.xlu0 %v3326_v36, %s5795_s5  ;;  %3328 = vrot.lane.b32.xlu1 %v3326_v36, %s5799_s19 }
0x3ef5   :  { %3341 = vrot.lane.b32.xlu1 %v3340_v37, %s5797_s4 }
0x3f63   :  { %v3334_v39 = vpop.permute.xlu0 %3333  ;;  %v3329_v41 = vpop.permute.xlu1 %3328 }
0x3f64   :  { %3331 = vst.msk [vmem:[#allocation2 + $0x4] sm:$0x3] %vm1151_vm0, %v3329_v41  ;;  %v3336_v42 = vsel %vm174_vm4, %v3329_v41, %v3334_v39 }
0x3f65   :  { %3332 = vst.msk [vmem:[#allocation3 + $0x18] sm:$0xc] %vm1153_vm1, %v3329_v41  ;;  %v3337_v56 = vmul.f32 %v6181_v43, %v3336_v42  ;;  %v3568_v41 = vrot.slane %v6618_v21, 2 }
0x3f67   :  { %5378 = vmatmul.mubr.msk.f32.vlgmr.msra.gmra.mxu0 %vm184_vm6, %v3337_v56  ;;  %v3342_v60 = vpop.permute.xlu1 %3341 }
0x3f68   :  { %5388 = vmatpush3.msra.mxu0 %v6577_v3  ;;  %5391 = vmatprep.mubr.msk.f32.mxu0 %vm5794_vm8, %v5793_v11  ;;  %v3344_v46 = vsel %vm135_vm2, %v3338_v18, %v3342_v60 }
0x3f69   :  { %5389 = vmatprep.subr.mxu0 %v5793_v11 }
0x3f6a   :  { %5390 = vmatpush3.msra.mxu0 %v6582_v4 }
0x3f6b   :  { %5401 = vmatprep.subr.mxu0 %v5793_v11 }
0x4027   :  { %v3414_v47 = vpop.f32.mrf.mxu0 }
0x4028   :  { %v3415_v48 = vadd.f32 %v3414_v47, %v3344_v46 }
0x4029   :  { %v5379_v49 = vpop.f32.mrf.mxu0 }
0x402a   :  { %5636 = vtanh.f32 %v3415_v48  ;;  %v5000_v53 = vmul.f32 -1.442695, %v3415_v48 }
0x402c   :  { %5638 = vpow2.f32 %v5000_v53 }
0x4037   :  { %v5637_v50 = vpop.eup %5636 }
0x4038   :  { %3427 = vrot.lane.b32.xlu0 %v5637_v50, %s5798_s11 }
0x4039   :  { %v5639_v54 = vpop.eup %5638 }
0x403a   :  { %v3421_v62 = vadd.f32 1.0, %v5639_v54 }
0x403c   :  { %5640 = vrcp.f32 %v3421_v62 }
0x4049   :  { %v5641_v55 = vpop.eup %5640 }
0x404a   :  { %v3425_v59 = vmul.f32 %v5641_v55, %v3320_v63 }
0x40aa   :  { %v3428_v10 = vpop.permute.xlu0 %3427 }
0x40ab   :  { %v3430_v57 = vmul.f32 %v5641_v55, %v3428_v10 }
0x40ad   :  { %3432 = vrot.lane.b32.xlu1 %v3430_v57, %s5790_s26 }
0x411f   :  { %v3433_v22 = vpop.permute.xlu1 %3432 }
0x4120   :  { %v3435_v40 = vadd.f32 %v3433_v22, %v3425_v59 }
0x4122   :  { %5642 = vtanh.f32 %v3435_v40 }
0x412f   :  { %v5643_v61 = vpop.eup %5642 }
0x4130   :  { %3438 = vrot.lane.b32.xlu0 %v5643_v61, %s5790_s26 }
0x41a2   :  { %v3439_v0 = vpop.permute.xlu0 %3438 }
0x41a3   :  { %v3441_v2 = vmul.f32 %v5641_v55, %v3439_v0 }
0x41a5   :  { %3448 = vrot.lane.b32.xlu0 %v3441_v2, %s5795_s5  ;;  %3443 = vrot.lane.b32.xlu1 %v3441_v2, %s5799_s19 }
0x41a9   :  { %3455 = vrot.lane.b32.xlu1 %v3454_v7, %s5797_s4 }
0x4217   :  { %v3449_v58 = vpop.permute.xlu0 %3448  ;;  %v3444_v44 = vpop.permute.xlu1 %3443 }
0x4218   :  { %3446 = vst.msk [vmem:[#allocation2 + $0x6] sm:$0x3] %vm1151_vm0, %v3444_v44  ;;  %v3451_v20 = vsel %vm174_vm4, %v3444_v44, %v3449_v58 }
0x4219   :  { %3447 = vst.msk [vmem:[#allocation3 + $0x16] sm:$0xc] %vm1153_vm1, %v3444_v44  ;;  %v3452_v15 = vmul.f32 %v6181_v43, %v3451_v20  ;;  %v3683_v20 = vrot.slane %v6618_v21, 4 }
0x421b   :  { %5385 = vmatmul.mubr.msk.f32.vlgmr.msra.gmra.mxu1 %vm184_vm6, %v3452_v15  ;;  %v3456_v8 = vpop.permute.xlu1 %3455 }
0x421c   :  { %5395 = vmatpush3.msra.mxu1 %v6577_v3  ;;  %5398 = vmatprep.mubr.msk.f32.mxu1 %vm5794_vm8, %v5793_v11  ;;  %v3458_v9 = vsel %vm135_vm2, %v6618_v21, %v3456_v8 }
0x421d   :  { %5396 = vmatprep.subr.mxu1 %v5793_v11 }
0x421e   :  { %5397 = vmatpush3.msra.mxu1 %v6582_v4 }
0x421f   :  { %5408 = vmatprep.subr.mxu1 %v5793_v11 }
0x42db   :  { %v3528_v12 = vpop.f32.mrf.mxu1 }
0x42dc   :  { %v3529_v17 = vadd.f32 %v3528_v12, %v3458_v9 }
0x42dd   :  { %v5386_v14 = vpop.f32.mrf.mxu1 }
0x42de   :  { %5644 = vtanh.f32 %v3529_v17  ;;  %v5002_v16 = vmul.f32 -1.442695, %v3529_v17 }
0x42e0   :  { %5646 = vpow2.f32 %v5002_v16 }
0x42eb   :  { %v5645_v31 = vpop.eup %5644 }
0x42ec   :  { %3541 = vrot.lane.b32.xlu0 %v5645_v31, %s5798_s11 }
0x42ed   :  { %v5647_v33 = vpop.eup %5646 }
0x42ee   :  { %v3535_v19 = vadd.f32 1.0, %v5647_v33 }
0x42f0   :  { %5648 = vrcp.f32 %v3535_v19 }
0x42fd   :  { %v5649_v32 = vpop.eup %5648 }
0x42fe   :  { %v3539_v23 = vmul.f32 %v5649_v32, %v3435_v40 }
0x435e   :  { %v3542_v38 = vpop.permute.xlu0 %3541 }
0x435f   :  { %v3544_v5 = vmul.f32 %v5649_v32, %v3542_v38 }
0x4361   :  { %3546 = vrot.lane.b32.xlu1 %v3544_v5, %s5790_s26 }
0x43d3   :  { %v3547_v25 = vpop.permute.xlu1 %3546 }
0x43d4   :  { %v3549_v28 = vadd.f32 %v3547_v25, %v3539_v23 }
0x43d6   :  { %5650 = vtanh.f32 %v3549_v28 }
0x43e3   :  { %v5651_v29 = vpop.eup %5650 }
0x43e4   :  { %3552 = vrot.lane.b32.xlu0 %v5651_v29, %s5790_s26 }
0x4456   :  { %v3553_v51 = vpop.permute.xlu0 %3552 }
0x4457   :  { %v3555_v6 = vmul.f32 %v5649_v32, %v3553_v51  ;;  %v3799_v51 = vrot.slane %v6709_v1, 6 }
0x4459   :  { %3562 = vrot.lane.b32.xlu0 %v3555_v6, %s5795_s5  ;;  %3557 = vrot.lane.b32.xlu1 %v3555_v6, %s5799_s19 }
0x445d   :  { %3571 = vrot.lane.b32.xlu1 %v3570_v30, %s5797_s4 }
0x44cb   :  { %v3563_v63 = vpop.permute.xlu0 %3562  ;;  %v3558_v34 = vpop.permute.xlu1 %3557 }
0x44cc   :  { %3560 = vst.msk [vmem:[#allocation2 + $0x8] sm:$0x3] %vm1151_vm0, %v3558_v34  ;;  %v3565_v35 = vsel %vm174_vm4, %v3558_v34, %v3563_v63 }
0x44cd   :  { %3561 = vst.msk [vmem:[#allocation3 + $0x14] sm:$0xc] %vm1153_vm1, %v3558_v34  ;;  %v3566_v36 = vmul.f32 %v6181_v43, %v3565_v35 }
0x44cf   :  { %5392 = vmatmul.mubr.msk.f32.vlgmr.msra.gmra.mxu0 %vm184_vm6, %v3566_v36  ;;  %v3572_v39 = vpop.permute.xlu1 %3571 }
0x44d0   :  { %5402 = vmatpush3.msra.mxu0 %v6577_v3  ;;  %5405 = vmatprep.mubr.msk.f32.mxu0 %vm5794_vm8, %v5793_v11  ;;  %v3574_v42 = vsel %vm135_vm2, %v3568_v41, %v3572_v39  ;;  %v3797_v39 = vrot.slane %v6618_v21, 6 }
0x44d1   :  { %5403 = vmatprep.subr.mxu0 %v5793_v11 }
0x44d2   :  { %5404 = vmatpush3.msra.mxu0 %v6582_v4 }
0x44d3   :  { %5415 = vmatprep.subr.mxu0 %v5793_v11 }
0x458f   :  { %v3644_v56 = vpop.f32.mrf.mxu0 }
0x4590   :  { %v3645_v60 = vadd.f32 %v3644_v56, %v3574_v42 }
0x4591   :  { %v5393_v46 = vpop.f32.mrf.mxu0 }
0x4592   :  { %5652 = vtanh.f32 %v3645_v60  ;;  %v5004_v48 = vmul.f32 -1.442695, %v3645_v60 }
0x4594   :  { %5654 = vpow2.f32 %v5004_v48 }
0x459f   :  { %v5653_v47 = vpop.eup %5652 }
0x45a0   :  { %3657 = vrot.lane.b32.xlu0 %v5653_v47, %s5798_s11 }
0x45a1   :  { %v5655_v49 = vpop.eup %5654 }
0x45a2   :  { %v3651_v50 = vadd.f32 1.0, %v5655_v49 }
0x45a4   :  { %5656 = vrcp.f32 %v3651_v50 }
0x45b1   :  { %v5657_v53 = vpop.eup %5656 }
0x45b2   :  { %v3655_v55 = vmul.f32 %v5657_v53, %v3549_v28 }
0x4612   :  { %v3658_v54 = vpop.permute.xlu0 %3657 }
0x4613   :  { %v3660_v62 = vmul.f32 %v5657_v53, %v3658_v54 }
0x4615   :  { %3662 = vrot.lane.b32.xlu1 %v3660_v62, %s5790_s26 }
0x4687   :  { %v3663_v10 = vpop.permute.xlu1 %3662 }
0x4688   :  { %v3665_v57 = vadd.f32 %v3663_v10, %v3655_v55 }
0x468a   :  { %5658 = vtanh.f32 %v3665_v57 }
0x4697   :  { %v5659_v59 = vpop.eup %5658 }
0x4698   :  { %3668 = vrot.lane.b32.xlu0 %v5659_v59, %s5790_s26 }
0x470a   :  { %v3669_v22 = vpop.permute.xlu0 %3668 }
0x470b   :  { %v3671_v40 = vmul.f32 %v5657_v53, %v3669_v22 }
0x470d   :  { %3678 = vrot.lane.b32.xlu0 %v3671_v40, %s5795_s5  ;;  %3673 = vrot.lane.b32.xlu1 %v3671_v40, %s5799_s19 }
0x4711   :  { %3685 = vrot.lane.b32.xlu1 %v6709_v1, %s5797_s4 }
0x477f   :  { %v3679_v61 = vpop.permute.xlu0 %3678  ;;  %v3674_v0 = vpop.permute.xlu1 %3673 }
0x4780   :  { %3676 = vst.msk [vmem:[#allocation2 + $0xa] sm:$0x3] %vm1151_vm0, %v3674_v0  ;;  %v3681_v2 = vsel %vm174_vm4, %v3674_v0, %v3679_v61 }
0x4781   :  { %3677 = vst.msk [vmem:[#allocation3 + $0x12] sm:$0xc] %vm1153_vm1, %v3674_v0  ;;  %v3682_v58 = vmul.f32 %v6181_v43, %v3681_v2 }
0x4783   :  { %5399 = vmatmul.mubr.msk.f32.vlgmr.msra.gmra.mxu1 %vm184_vm6, %v3682_v58  ;;  %v3686_v44 = vpop.permute.xlu1 %3685 }
0x4784   :  { %5409 = vmatpush3.msra.mxu1 %v6577_v3  ;;  %5412 = vmatprep.mubr.msk.f32.mxu1 %vm5794_vm8, %v5793_v11  ;;  %v3688_v15 = vsel %vm135_vm2, %v3683_v20, %v3686_v44 }
0x4785   :  { %5410 = vmatprep.subr.mxu1 %v5793_v11 }
0x4786   :  { %5411 = vmatpush3.msra.mxu1 %v6582_v4 }
0x4787   :  { %5422 = vmatprep.subr.mxu1 %v5793_v11 }
0x4843   :  { %v3758_v8 = vpop.f32.mrf.mxu1 }
0x4844   :  { %v3759_v9 = vadd.f32 %v3758_v8, %v3688_v15 }
0x4845   :  { %v5400_v12 = vpop.f32.mrf.mxu1 }
0x4846   :  { %5660 = vtanh.f32 %v3759_v9  ;;  %v5006_v14 = vmul.f32 -1.442695, %v3759_v9 }
0x4848   :  { %5662 = vpow2.f32 %v5006_v14 }
0x4853   :  { %v5661_v17 = vpop.eup %5660 }
0x4854   :  { %3771 = vrot.lane.b32.xlu0 %v5661_v17, %s5798_s11 }
0x4855   :  { %v5663_v31 = vpop.eup %5662 }
0x4856   :  { %v3765_v16 = vadd.f32 1.0, %v5663_v31 }
0x4858   :  { %5664 = vrcp.f32 %v3765_v16 }
0x4865   :  { %v5665_v33 = vpop.eup %5664 }
0x4866   :  { %v3769_v38 = vmul.f32 %v5665_v33, %v3665_v57 }
0x48c6   :  { %v3772_v19 = vpop.permute.xlu0 %3771 }
0x48c7   :  { %v3774_v32 = vmul.f32 %v5665_v33, %v3772_v19 }
0x48c9   :  { %3776 = vrot.lane.b32.xlu1 %v3774_v32, %s5790_s26 }
0x493b   :  { %v3777_v5 = vpop.permute.xlu1 %3776 }
0x493c   :  { %v3779_v23 = vadd.f32 %v3777_v5, %v3769_v38 }
0x493e   :  { %5666 = vtanh.f32 %v3779_v23 }
0x494b   :  { %v5667_v25 = vpop.eup %5666 }
0x494c   :  { %3782 = vrot.lane.b32.xlu0 %v5667_v25, %s5790_s26 }
0x49be   :  { %v3783_v28 = vpop.permute.xlu0 %3782 }
0x49bf   :  { %v3785_v29 = vmul.f32 %v5665_v33, %v3783_v28 }
0x49c1   :  { %3792 = vrot.lane.b32.xlu0 %v3785_v29, %s5795_s5  ;;  %3787 = vrot.lane.b32.xlu1 %v3785_v29, %s5799_s19 }
0x49c5   :  { %3800 = vrot.lane.b32.xlu1 %v3799_v51, %s5797_s4 }
0x4a33   :  { %v3793_v6 = vpop.permute.xlu0 %3792  ;;  %v3788_v63 = vpop.permute.xlu1 %3787 }
0x4a34   :  { %3790 = vst.msk [vmem:[#allocation2 + $0xc] sm:$0x3] %vm1151_vm0, %v3788_v63  ;;  %v3795_v34 = vsel %vm174_vm4, %v3788_v63, %v3793_v6 }
0x4a35   :  { %3791 = vst.msk [vmem:[#allocation3 + $0x10] sm:$0xc] %vm1153_vm1, %v3788_v63  ;;  %v3796_v35 = vmul.f32 %v6181_v43, %v3795_v34 }
0x4a37   :  { %5406 = vmatmul.mubr.msk.f32.vlgmr.msra.gmra.mxu0 %vm184_vm6, %v3796_v35  ;;  %v3801_v36 = vpop.permute.xlu1 %3800 }
0x4a38   :  { %5416 = vmatpush3.msra.mxu0 %v6577_v3  ;;  %5419 = vmatprep.mubr.msk.f32.mxu0 %vm5794_vm8, %v5793_v11  ;;  %v3803_v42 = vsel %vm135_vm2, %v3797_v39, %v3801_v36 }
0x4a39   :  { %5417 = vmatprep.subr.mxu0 %v5793_v11 }
0x4a3a   :  { %5418 = vmatpush3.msra.mxu0 %v6582_v4 }
0x4a3b   :  { %5429 = vmatprep.subr.mxu0 %v5793_v11 }
0x4af7   :  { %v3873_v56 = vpop.f32.mrf.mxu0 }
0x4af8   :  { %v3874_v60 = vadd.f32 %v3873_v56, %v3803_v42 }
0x4af9   :  { %v5407_v46 = vpop.f32.mrf.mxu0 }
0x4afa   :  { %5668 = vtanh.f32 %v3874_v60  ;;  %v5008_v48 = vmul.f32 -1.442695, %v3874_v60 }
0x4afc   :  { %5670 = vpow2.f32 %v5008_v48 }
0x4b07   :  { %v5669_v47 = vpop.eup %5668 }
0x4b08   :  { %3886 = vrot.lane.b32.xlu0 %v5669_v47, %s5798_s11 }
0x4b09   :  { %v5671_v49 = vpop.eup %5670 }
0x4b0a   :  { %v3880_v50 = vadd.f32 1.0, %v5671_v49 }
0x4b0c   :  { %5672 = vrcp.f32 %v3880_v50 }
0x4b19   :  { %v5673_v53 = vpop.eup %5672 }
0x4b1a   :  { %v3884_v55 = vmul.f32 %v5673_v53, %v3779_v23 }
0x4b7a   :  { %v3887_v54 = vpop.permute.xlu0 %3886 }
0x4b7b   :  { %v3889_v62 = vmul.f32 %v5673_v53, %v3887_v54 }
0x4b7d   :  { %3891 = vrot.lane.b32.xlu1 %v3889_v62, %s5790_s26 }
0x4bef   :  { %v3892_v10 = vpop.permute.xlu1 %3891 }
0x4bf0   :  { %v3894_v57 = vadd.f32 %v3892_v10, %v3884_v55 }
0x4bf2   :  { %5674 = vtanh.f32 %v3894_v57 }
0x4bff   :  { %v5675_v59 = vpop.eup %5674 }
0x4c00   :  { %3897 = vrot.lane.b32.xlu0 %v5675_v59, %s5790_s26 }
0x4c72   :  { %v3898_v22 = vpop.permute.xlu0 %3897 }
0x4c73   :  { %v3900_v40 = vmul.f32 %v5673_v53, %v3898_v22 }
0x4c75   :  { %3907 = vrot.lane.b32.xlu0 %v3900_v40, %s5795_s5  ;;  %3902 = vrot.lane.b32.xlu1 %v3900_v40, %s5799_s19 }
0x4c79   :  { %3912 = vrot.lane.b32.xlu1 %v3683_v20, %s5797_s4 }
0x4ce7   :  { %v3908_v61 = vpop.permute.xlu0 %3907  ;;  %v3903_v0 = vpop.permute.xlu1 %3902 }
0x4ce8   :  { %3905 = vst.msk [vmem:[#allocation2 + $0xe] sm:$0x3] %vm1151_vm0, %v3903_v0  ;;  %v3910_v2 = vsel %vm174_vm4, %v3903_v0, %v3908_v61 }
0x4ce9   :  { %3906 = vst.msk [vmem:[#allocation3 + $0xe] sm:$0xc] %vm1153_vm1, %v3903_v0  ;;  %v3911_v58 = vmul.f32 %v6181_v43, %v3910_v2 }
0x4ceb   :  { %5413 = vmatmul.mubr.msk.f32.vlgmr.msra.gmra.mxu1 %vm184_vm6, %v3911_v58  ;;  %v3913_v44 = vpop.permute.xlu1 %3912 }
0x4cec   :  { %5423 = vmatpush3.msra.mxu1 %v6577_v3  ;;  %5426 = vmatprep.mubr.msk.f32.mxu1 %vm5794_vm8, %v5793_v11  ;;  %v3915_v20 = vsel %vm135_vm2, %v6709_v1, %v3913_v44 }
0x4ced   :  { %5424 = vmatprep.subr.mxu1 %v5793_v11 }
0x4cee   :  { %5425 = vmatpush3.msra.mxu1 %v6582_v4 }
0x4cef   :  { %5436 = vmatprep.subr.mxu1 %v5793_v11 }
0x4dab   :  { %v3985_v15 = vpop.f32.mrf.mxu1 }
0x4dac   :  { %v3986_v8 = vadd.f32 %v3985_v15, %v3915_v20 }
0x4dad   :  { %v5414_v9 = vpop.f32.mrf.mxu1 }
0x4dae   :  { %5676 = vtanh.f32 %v3986_v8  ;;  %v5010_v17 = vmul.f32 -1.442695, %v3986_v8 }
0x4db0   :  { %5678 = vpow2.f32 %v5010_v17 }
0x4dbb   :  { %v5677_v12 = vpop.eup %5676 }
0x4dbc   :  { %3998 = vrot.lane.b32.xlu0 %v5677_v12, %s5798_s11 }
0x4dbd   :  { %v5679_v14 = vpop.eup %5678 }
0x4dbe   :  { %v3992_v31 = vadd.f32 1.0, %v5679_v14 }
0x4dc0   :  { %5680 = vrcp.f32 %v3992_v31 }
0x4dcd   :  { %v5681_v16 = vpop.eup %5680 }
0x4dce   :  { %v3996_v32 = vmul.f32 %v5681_v16, %v3894_v57 }
0x4e2e   :  { %v3999_v33 = vpop.permute.xlu0 %3998 }
0x4e2f   :  { %v4001_v19 = vmul.f32 %v5681_v16, %v3999_v33 }
0x4e31   :  { %4003 = vrot.lane.b32.xlu1 %v4001_v19, %s5790_s26 }
0x4ea3   :  { %v4004_v38 = vpop.permute.xlu1 %4003 }
0x4ea4   :  { %v4006_v5 = vadd.f32 %v4004_v38, %v3996_v32 }
0x4ea6   :  { %5682 = vtanh.f32 %v4006_v5 }
0x4eb3   :  { %v5683_v23 = vpop.eup %5682 }
0x4eb4   :  { %4009 = vrot.lane.b32.xlu0 %v5683_v23, %s5790_s26 }
0x4f26   :  { %v4010_v25 = vpop.permute.xlu0 %4009 }
0x4f27   :  { %v4012_v28 = vmul.f32 %v5681_v16, %v4010_v25 }
0x4f29   :  { %4019 = vrot.lane.b32.xlu0 %v4012_v28, %s5795_s5  ;;  %4014 = vrot.lane.b32.xlu1 %v4012_v28, %s5799_s19 }
0x4f2d   :  { %4025 = vrot.lane.b32.xlu1 %v3568_v41, %s5797_s4 }
0x4f9b   :  { %v4020_v29 = vpop.permute.xlu0 %4019  ;;  %v4015_v6 = vpop.permute.xlu1 %4014 }
0x4f9c   :  { %4017 = vst.msk [vmem:[#allocation2 + $0x10] sm:$0x3] %vm1151_vm0, %v4015_v6  ;;  %v4022_v63 = vsel %vm174_vm4, %v4015_v6, %v4020_v29 }
0x4f9d   :  { %4018 = vst.msk [vmem:[#allocation3 + $0xc] sm:$0xc] %vm1153_vm1, %v4015_v6  ;;  %v4023_v34 = vmul.f32 %v6181_v43, %v4022_v63 }
0x4f9f   :  { %5420 = vmatmul.mubr.msk.f32.vlgmr.msra.gmra.mxu0 %vm184_vm6, %v4023_v34  ;;  %v4026_v41 = vpop.permute.xlu1 %4025 }
0x4fa0   :  { %5430 = vmatpush3.msra.mxu0 %v6577_v3  ;;  %5433 = vmatprep.mubr.msk.f32.mxu0 %vm5794_vm8, %v5793_v11  ;;  %v4028_v35 = vsel %vm135_vm2, %v3570_v30, %v4026_v41 }
0x4fa1   :  { %5431 = vmatprep.subr.mxu0 %v5793_v11 }
0x4fa2   :  { %5432 = vmatpush3.msra.mxu0 %v6582_v4 }
0x4fa3   :  { %5443 = vmatprep.subr.mxu0 %v5793_v11 }
0x505f   :  { %v4098_v36 = vpop.f32.mrf.mxu0 }
0x5060   :  { %v4099_v42 = vadd.f32 %v4098_v36, %v4028_v35 }
0x5061   :  { %v5421_v56 = vpop.f32.mrf.mxu0 }
0x5062   :  { %5684 = vtanh.f32 %v4099_v42  ;;  %v5012_v46 = vmul.f32 -1.442695, %v4099_v42 }
0x5064   :  { %5686 = vpow2.f32 %v5012_v46 }
0x506f   :  { %v5685_v60 = vpop.eup %5684 }
0x5070   :  { %4111 = vrot.lane.b32.xlu0 %v5685_v60, %s5798_s11 }
0x5071   :  { %v5687_v47 = vpop.eup %5686 }
0x5072   :  { %v4105_v48 = vadd.f32 1.0, %v5687_v47 }
0x5074   :  { %5688 = vrcp.f32 %v4105_v48 }
0x5081   :  { %v5689_v49 = vpop.eup %5688 }
0x5082   :  { %v4109_v54 = vmul.f32 %v5689_v49, %v4006_v5 }
0x50e2   :  { %v4112_v50 = vpop.permute.xlu0 %4111 }
0x50e3   :  { %v4114_v53 = vmul.f32 %v5689_v49, %v4112_v50 }
0x50e5   :  { %4116 = vrot.lane.b32.xlu1 %v4114_v53, %s5790_s26 }
0x5157   :  { %v4117_v62 = vpop.permute.xlu1 %4116 }
0x5158   :  { %v4119_v30 = vadd.f32 %v4117_v62, %v4109_v54  ;;  %v5742_v54 = vld [vmem:[%s7007_s15 + $0x8] sm:$0xff] }
0x515a   :  { %5690 = vtanh.f32 %v4119_v30 }
0x5167   :  { %v5691_v55 = vpop.eup %5690 }
0x5168   :  { %4122 = vrot.lane.b32.xlu0 %v5691_v55, %s5790_s26 }
0x51da   :  { %v4123_v10 = vpop.permute.xlu0 %4122 }
0x51db   :  { %v4125_v57 = vmul.f32 %v5689_v49, %v4123_v10 }
0x51dd   :  { %4132 = vrot.lane.b32.xlu0 %v4125_v57, %s5795_s5  ;;  %4127 = vrot.lane.b32.xlu1 %v4125_v57, %s5799_s19 }
0x51e1   :  { %4138 = vrot.lane.b32.xlu1 %v6618_v21, %s5797_s4 }
0x524f   :  { %v4133_v59 = vpop.permute.xlu0 %4132  ;;  %v4128_v22 = vpop.permute.xlu1 %4127 }
0x5250   :  { %4130 = vst.msk [vmem:[#allocation2 + $0x12] sm:$0x3] %vm1151_vm0, %v4128_v22  ;;  %v4135_v40 = vsel %vm174_vm4, %v4128_v22, %v4133_v59 }
0x5251   :  { %4131 = vst.msk [vmem:[#allocation3 + $0xa] sm:$0xc] %vm1153_vm1, %v4128_v22  ;;  %v4136_v61 = vmul.f32 %v6181_v43, %v4135_v40 }
0x5253   :  { %5427 = vmatmul.mubr.msk.f32.vlgmr.msra.gmra.mxu1 %vm184_vm6, %v4136_v61  ;;  %v4139_v0 = vpop.permute.xlu1 %4138 }
0x5254   :  { %5437 = vmatpush3.msra.mxu1 %v6577_v3  ;;  %5440 = vmatprep.mubr.msk.f32.mxu1 %vm5794_vm8, %v5793_v11  ;;  %v4141_v2 = vsel %vm135_vm2, %v3454_v7, %v4139_v0 }
0x5255   :  { %5438 = vmatprep.subr.mxu1 %v5793_v11 }
0x5256   :  { %5439 = vmatpush3.msra.mxu1 %v6582_v4 }
0x5257   :  { %5450 = vmatprep.subr.mxu1 %v5793_v11 }
0x5313   :  { %v4211_v58 = vpop.f32.mrf.mxu1 }
0x5314   :  { %v4212_v44 = vadd.f32 %v4211_v58, %v4141_v2 }
0x5315   :  { %v5428_v20 = vpop.f32.mrf.mxu1 }
0x5316   :  { %5692 = vtanh.f32 %v4212_v44  ;;  %v5014_v8 = vmul.f32 -1.442695, %v4212_v44 }
0x5318   :  { %5694 = vpow2.f32 %v5014_v8 }
0x5323   :  { %v5693_v15 = vpop.eup %5692 }
0x5324   :  { %4224 = vrot.lane.b32.xlu0 %v5693_v15, %s5798_s11 }
0x5325   :  { %v5695_v9 = vpop.eup %5694 }
0x5326   :  { %v4218_v12 = vadd.f32 1.0, %v5695_v9 }
0x5328   :  { %5696 = vrcp.f32 %v4218_v12 }
0x5335   :  { %v5697_v17 = vpop.eup %5696 }
0x5336   :  { %v4222_v16 = vmul.f32 %v5697_v17, %v4119_v30 }
0x5396   :  { %v4225_v14 = vpop.permute.xlu0 %4224 }
0x5397   :  { %v4227_v31 = vmul.f32 %v5697_v17, %v4225_v14 }
0x5399   :  { %4229 = vrot.lane.b32.xlu1 %v4227_v31, %s5790_s26 }
0x540b   :  { %v4230_v33 = vpop.permute.xlu1 %4229 }
0x540c   :  { %v4232_v7 = vadd.f32 %v4230_v33, %v4222_v16 }
0x540e   :  { %5698 = vtanh.f32 %v4232_v7 }
0x541b   :  { %v5699_v19 = vpop.eup %5698 }
0x541c   :  { %4235 = vrot.lane.b32.xlu0 %v5699_v19, %s5790_s26 }
0x548e   :  { %v4236_v32 = vpop.permute.xlu0 %4235 }
0x548f   :  { %v4238_v38 = vmul.f32 %v5697_v17, %v4236_v32 }
0x5491   :  { %4245 = vrot.lane.b32.xlu0 %v4238_v38, %s5795_s5  ;;  %4240 = vrot.lane.b32.xlu1 %v4238_v38, %s5799_s19 }
0x5495   :  { %4251 = vrot.lane.b32.xlu1 %v3797_v39, %s5797_s4 }
0x5503   :  { %v4246_v5 = vpop.permute.xlu0 %4245  ;;  %v4241_v23 = vpop.permute.xlu1 %4240 }
0x5504   :  { %4243 = vst.msk [vmem:[#allocation2 + $0x14] sm:$0x3] %vm1151_vm0, %v4241_v23  ;;  %v4248_v25 = vsel %vm174_vm4, %v4241_v23, %v4246_v5 }
0x5505   :  { %4244 = vst.msk [vmem:[#allocation3 + $0x8] sm:$0xc] %vm1153_vm1, %v4241_v23  ;;  %v4249_v28 = vmul.f32 %v6181_v43, %v4248_v25 }
0x5507   :  { %5434 = vmatmul.mubr.msk.f32.vlgmr.msra.gmra.mxu0 %vm184_vm6, %v4249_v28  ;;  %v4252_v21 = vpop.permute.xlu1 %4251 }
0x5508   :  { %5444 = vmatpush3.msra.mxu0 %v6577_v3  ;;  %5447 = vmatprep.mubr.msk.f32.mxu0 %vm5794_vm8, %v5793_v11  ;;  %v4254_v39 = vsel %vm135_vm2, %v3799_v51, %v4252_v21 }
0x5509   :  { %5445 = vmatprep.subr.mxu0 %v5793_v11 }
0x550a   :  { %5446 = vmatpush3.msra.mxu0 %v6582_v4 }
0x550b   :  { %5457 = vmatprep.subr.mxu0 %v5793_v11 }
0x55c7   :  { %v4324_v29 = vpop.f32.mrf.mxu0 }
0x55c8   :  { %v4325_v6 = vadd.f32 %v4324_v29, %v4254_v39 }
0x55c9   :  { %v5435_v63 = vpop.f32.mrf.mxu0 }
0x55ca   :  { %5700 = vtanh.f32 %v4325_v6  ;;  %v5016_v3 = vmul.f32 -1.442695, %v4325_v6 }
0x55cc   :  { %5702 = vpow2.f32 %v5016_v3 }
0x55d7   :  { %v5701_v34 = vpop.eup %5700 }
0x55d8   :  { %4337 = vrot.lane.b32.xlu0 %v5701_v34, %s5798_s11 }
0x55d9   :  { %v5703_v41 = vpop.eup %5702 }
0x55da   :  { %v4331_v35 = vadd.f32 1.0, %v5703_v41 }
0x55dc   :  { %5704 = vrcp.f32 %v4331_v35 }
0x55e9   :  { %v5705_v4 = vpop.eup %5704 }
0x55ea   :  { %v4335_v1 = vmul.f32 %v5705_v4, %v4232_v7 }
0x564a   :  { %v4338_v36 = vpop.permute.xlu0 %4337 }
0x564b   :  { %v4340_v42 = vmul.f32 %v5705_v4, %v4338_v36 }
0x564d   :  { %4342 = vrot.lane.b32.xlu1 %v4340_v42, %s5790_s26 }
0x56bf   :  { %v4343_v56 = vpop.permute.xlu1 %4342 }
0x56c0   :  { %v4345_v51 = vadd.f32 %v4343_v56, %v4335_v1 }
0x56c2   :  { %5706 = vtanh.f32 %v4345_v51 }
0x56cf   :  { %v5707_v60 = vpop.eup %5706 }
0x56d0   :  { %4348 = vrot.lane.b32.xlu0 %v5707_v60, %s5790_s26 }
0x5742   :  { %v4349_v46 = vpop.permute.xlu0 %4348 }
0x5743   :  { %v4351_v47 = vmul.f32 %v5705_v4, %v4349_v46 }
0x5745   :  { %4358 = vrot.lane.b32.xlu0 %v4351_v47, %s5795_s5  ;;  %4353 = vrot.lane.b32.xlu1 %v4351_v47, %s5799_s19 }
0x5749   :  { %4363 = vrot.lane.b32.xlu1 %v3224_v13, %s5797_s4  ;;  %v5743_v13 = vld [vmem:[%s7007_s15] sm:$0xff]  ;;  %s5800_s15 = smov 24  }
0x57b7   :  { %v4359_v48 = vpop.permute.xlu0 %4358  ;;  %v4354_v49 = vpop.permute.xlu1 %4353 }
0x57b8   :  { %4356 = vst.msk [vmem:[#allocation2 + $0x16] sm:$0x3] %vm1151_vm0, %v4354_v49  ;;  %v4361_v50 = vsel %vm174_vm4, %v4354_v49, %v4359_v48 }
0x57b9   :  { %4357 = vst.msk [vmem:[#allocation3 + $0x6] sm:$0xc] %vm1153_vm1, %v4354_v49  ;;  %v4362_v53 = vmul.f32 %v6181_v43, %v4361_v50 }
0x57bb   :  { %5441 = vmatmul.mubr.msk.f32.vlgmr.msra.gmra.mxu1 %vm184_vm6, %v4362_v53  ;;  %v4364_v62 = vpop.permute.xlu1 %4363 }
0x57bc   :  { %5451 = vmatpush3.msra.mxu1 %v5742_v54  ;;  %5454 = vmatprep.mubr.msk.f32.mxu1 %vm5794_vm8, %v5793_v11  ;;  %v4366_v30 = vsel %vm135_vm2, %v6624_v26, %v4364_v62 }
0x57bd   :  { %5452 = vmatprep.subr.mxu1 %v5793_v11 }
0x57be   :  { %5453 = vmatpush3.msra.mxu1 %v5743_v13 }
0x587b   :  { %v4436_v55 = vpop.f32.mrf.mxu1 }
0x587c   :  { %v4437_v10 = vadd.f32 %v4436_v55, %v4366_v30 }
0x587d   :  { %v5442_v57 = vpop.f32.mrf.mxu1 }
0x587e   :  { %5708 = vtanh.f32 %v4437_v10  ;;  %v5018_v22 = vmul.f32 -1.442695, %v4437_v10 }
0x5880   :  { %5710 = vpow2.f32 %v5018_v22 }
0x588b   :  { %v5709_v59 = vpop.eup %5708 }
0x588c   :  { %4449 = vrot.lane.b32.xlu0 %v5709_v59, %s5798_s11 }
0x588d   :  { %v5711_v40 = vpop.eup %5710 }
0x588e   :  { %v4443_v61 = vadd.f32 1.0, %v5711_v40 }
0x5890   :  { %5712 = vrcp.f32 %v4443_v61 }
0x589d   :  { %v5713_v0 = vpop.eup %5712 }
0x589e   :  { %v4447_v44 = vmul.f32 %v5713_v0, %v4345_v51 }
0x58fe   :  { %v4450_v2 = vpop.permute.xlu0 %4449 }
0x58ff   :  { %v4452_v58 = vmul.f32 %v5713_v0, %v4450_v2 }
0x5901   :  { %4454 = vrot.lane.b32.xlu1 %v4452_v58, %s5790_s26 }
0x5973   :  { %v4455_v20 = vpop.permute.xlu1 %4454 }
0x5974   :  { %v4457_v15 = vadd.f32 %v4455_v20, %v4447_v44 }
0x5976   :  { %5714 = vtanh.f32 %v4457_v15 }
0x5983   :  { %v5715_v8 = vpop.eup %5714 }
0x5984   :  { %4460 = vrot.lane.b32.xlu0 %v5715_v8, %s5790_s26 }
0x59f6   :  { %v4461_v9 = vpop.permute.xlu0 %4460 }
0x59f7   :  { %v4463_v12 = vmul.f32 %v5713_v0, %v4461_v9 }
0x59f9   :  { %4470 = vrot.lane.b32.xlu0 %v4463_v12, %s5795_s5  ;;  %4465 = vrot.lane.b32.xlu1 %v4463_v12, %s5799_s19 }
0x59fd   :  { %4476 = vrot.lane.b32.xlu1 %v3109_v52, %s5797_s4 }
0x5a6b   :  { %v4471_v17 = vpop.permute.xlu0 %4470  ;;  %v4466_v14 = vpop.permute.xlu1 %4465 }
0x5a6c   :  { %4468 = vst.msk [vmem:[#allocation2 + $0x18] sm:$0x3] %vm1151_vm0, %v4466_v14  ;;  %v4473_v31 = vsel %vm174_vm4, %v4466_v14, %v4471_v17  ;;  %v4809_v17 = vld [vmem:[#allocation2] sm:$0xff] }
0x5a6d   :  { %4469 = vst.msk [vmem:[#allocation3 + $0x4] sm:$0xc] %vm1153_vm1, %v4466_v14  ;;  %v4474_v16 = vmul.f32 %v6181_v43, %v4473_v31  ;;  %v4823_v14 = vrot.slane %v4809_v17, 1  ;;  %v4815_v31 = vld [vmem:[#allocation3 + $0x10] sm:$0xff] }
0x5a6f   :  { %5448 = vmatmul.mubr.msk.f32.vlgmr.msra.gmra.mxu0 %vm184_vm6, %v4474_v16  ;;  %v4477_v52 = vpop.permute.xlu1 %4476  ;;  %v4852_v16 = vrot.slane %v4815_v31, 2 }
0x5a70   :  { %5458 = vmatpush3.msra.mxu0 %v5742_v54  ;;  %5461 = vmatprep.mubr.msk.f32.mxu0 %vm5794_vm8, %v5793_v11  ;;  %v4479_v33 = vsel %vm135_vm2, %v3111_v45, %v4477_v52  ;;  %v4814_v52 = vld [vmem:[#allocation3 + $0x8] sm:$0xff] }
0x5a71   :  { %5459 = vmatprep.subr.mxu0 %v5793_v11 }
0x5a72   :  { %5460 = vmatpush3.msra.mxu0 %v5743_v13 }
0x5b2f   :  { %v4549_v7 = vpop.f32.mrf.mxu0 }
0x5b30   :  { %v4550_v19 = vadd.f32 %v4549_v7, %v4479_v33  ;;  %v4844_v33 = vrot.slane %v4814_v52, 3  ;;  %v4816_v7 = vld [vmem:[#allocation3 + $0x18] sm:$0xff] }
0x5b31   :  { %v5449_v32 = vpop.f32.mrf.mxu0 }
0x5b32   :  { %5716 = vtanh.f32 %v4550_v19  ;;  %v5020_v5 = vmul.f32 -1.442695, %v4550_v19  ;;  %v4869_v19 = vrot.slane %v4816_v7, 2 }
0x5b34   :  { %5718 = vpow2.f32 %v5020_v5  ;;  %v4835_v5 = vrot.slane %v4814_v52, 2 }
0x5b3f   :  { %v5717_v38 = vpop.eup %5716 }
0x5b40   :  { %4562 = vrot.lane.b32.xlu0 %v5717_v38, %s5798_s11 }
0x5b41   :  { %v5719_v23 = vpop.eup %5718 }
0x5b42   :  { %v4556_v25 = vadd.f32 1.0, %v5719_v23  ;;  %v4810_v23 = vld [vmem:[#allocation2 + $0x8] sm:$0xff] }
0x5b44   :  { %5720 = vrcp.f32 %v4556_v25  ;;  %v4840_v25 = vrot.slane %v4810_v23, 1 }
0x5b51   :  { %v5721_v28 = vpop.eup %5720 }
0x5b52   :  { %v4560_v39 = vmul.f32 %v5721_v28, %v4457_v15 }
0x5bb2   :  { %v4563_v11 = vpop.permute.xlu0 %4562 }
0x5bb3   :  { %v4565_v21 = vmul.f32 %v5721_v28, %v4563_v11 }
0x5bb5   :  { %4567 = vrot.lane.b32.xlu1 %v4565_v21, %s5790_s26  ;;  %v4861_v21 = vrot.slane %v4815_v31, 3 }
0x5c27   :  { %v4568_v29 = vpop.permute.xlu1 %4567 }
0x5c28   :  { %v4570_v45 = vadd.f32 %v4568_v29, %v4560_v39 }
0x5c2a   :  { %5722 = vtanh.f32 %v4570_v45 }
0x5c37   :  { %v5723_v6 = vpop.eup %5722 }
0x5c38   :  { %4573 = vrot.lane.b32.xlu0 %v5723_v6, %s5790_s26 }
0x5caa   :  { %v4574_v63 = vpop.permute.xlu0 %4573 }
0x5cab   :  { %v4576_v34 = vmul.f32 %v5721_v28, %v4574_v63  ;;  %v4811_v28 = vld [vmem:[#allocation2 + $0x10] sm:$0xff] }
0x5cac   :  { %v4857_v11 = vrot.slane %v4811_v28, 1 }
0x5cad   :  { %4583 = vrot.lane.b32.xlu0 %v4576_v34, %s5795_s5  ;;  %4578 = vrot.lane.b32.xlu1 %v4576_v34, %s5799_s19  ;;  %v4878_v34 = vrot.slane %v4816_v7, 3 }
0x5cb1   :  { %4589 = vrot.lane.b32.xlu1 %v6621_v24, %s5797_s4 }
0x5d1f   :  { %v4584_v3 = vpop.permute.xlu0 %4583  ;;  %v4579_v41 = vpop.permute.xlu1 %4578 }
0x5d20   :  { %4581 = vst.msk [vmem:[#allocation2 + $0x1a] sm:$0x3] %vm1151_vm0, %v4579_v41  ;;  %v4586_v35 = vsel %vm174_vm4, %v4579_v41, %v4584_v3 }
0x5d21   :  { %4582 = vst.msk [vmem:[#allocation3 + $0x2] sm:$0xc] %vm1153_vm1, %v4579_v41  ;;  %v4587_v4 = vmul.f32 %v6181_v43, %v4586_v35 }
0x5d23   :  { %5455 = vmatmul.mubr.msk.f32.vlgmr.msra.gmra.mxu1 %vm184_vm6, %v4587_v4  ;;  %v4590_v36 = vpop.permute.xlu1 %4589 }
0x5d24   :  { %v4592_v42 = vsel %vm135_vm2, %v2998_v27, %v4590_v36 }
0x5de3   :  { %v4662_v1 = vpop.f32.mrf.mxu1 }
0x5de4   :  { %v4663_v56 = vadd.f32 %v4662_v1, %v4592_v42 }
0x5de5   :  { %v5456_v51 = vpop.f32.mrf.mxu1 }
0x5de6   :  { %5724 = vtanh.f32 %v4663_v56  ;;  %v5022_v46 = vmul.f32 -1.442695, %v4663_v56 }
0x5de8   :  { %5726 = vpow2.f32 %v5022_v46 }
0x5df3   :  { %v5725_v60 = vpop.eup %5724 }
0x5df4   :  { %4675 = vrot.lane.b32.xlu0 %v5725_v60, %s5798_s11 }
0x5df5   :  { %v5727_v47 = vpop.eup %5726 }
0x5df6   :  { %v4669_v48 = vadd.f32 1.0, %v5727_v47 }
0x5df8   :  { %5728 = vrcp.f32 %v4669_v48 }
0x5e05   :  { %v5729_v49 = vpop.eup %5728 }
0x5e06   :  { %v4673_v54 = vmul.f32 %v5729_v49, %v4570_v45 }
0x5e66   :  { %v4676_v50 = vpop.permute.xlu0 %4675 }
0x5e67   :  { %v4678_v53 = vmul.f32 %v5729_v49, %v4676_v50 }
0x5e69   :  { %4680 = vrot.lane.b32.xlu1 %v4678_v53, %s5790_s26 }
0x5edb   :  { %v4681_v13 = vpop.permute.xlu1 %4680 }
0x5edc   :  { %v4683_v27 = vadd.f32 %v4681_v13, %v4673_v54 }
0x5ede   :  { %5730 = vtanh.f32 %v4683_v27 }
0x5eeb   :  { %v5731_v62 = vpop.eup %5730 }
0x5eec   :  { %4686 = vrot.lane.b32.xlu0 %v5731_v62, %s5790_s26 }
0x5f5e   :  { %v4687_v30 = vpop.permute.xlu0 %4686 }
0x5f5f   :  { %v4689_v55 = vmul.f32 %v5729_v49, %v4687_v30 }
0x5f61   :  { %4696 = vrot.lane.b32.xlu0 %v4689_v55, %s5795_s5  ;;  %4691 = vrot.lane.b32.xlu1 %v4689_v55, %s5799_s19  ;;  %s5803_s5 = smov [#allocation7]  }
0x5f62   :  { %s4924_s0 = sshll.u32 %s5803_s5, 4  ;;  %s4925_s0 = int_to_ptr.vmem [resolvable:$true] %s4924_s0 }
0x5f63   :  { %s5764_s17 = scalar_lea.vmem %s4925_s0, 64  ;;  %p5769_p6 = scmp.lt.s32.totalorder %s4925_s0, %s4925_s0 }
0x5f64   :  { %p5765_p5 = scmp.ne.s32.totalorder %s4925_s0, %s5764_s17  ;;  %p5770_p7 = scmp.lt.s32.totalorder %s5764_s17, %s5764_s17 }
0x5f65   :  { %4702 = vrot.lane.b32.xlu1 %v3338_v18, %s5797_s4 }
0x5f66   :  { %p5771_p8 = por %p5770_p7, %p5769_p6 }
0x5f68   :  { %p5772_p9 = pnand %p5771_p8, %p5765_p5 }
0x5fd3   :  { %v4697_v10 = vpop.permute.xlu0 %4696  ;;  %v4692_v57 = vpop.permute.xlu1 %4691 }
0x5fd4   :  { %4694 = vst.msk [vmem:[#allocation2 + $0x1c] sm:$0x3] %vm1151_vm0, %v4692_v57  ;;  %v4699_v59 = vsel %vm174_vm4, %v4692_v57, %v4697_v10 }
0x5fd5   :  { %4695 = vst.msk [vmem:[#allocation3] sm:$0xc] %vm1153_vm1, %v4692_v57  ;;  %v4700_v22 = vmul.f32 %v6181_v43, %v4699_v59 }
0x5fd7   :  { %5462 = vmatmul.mubr.msk.f32.vlgmr.msra.gmra.mxu0 %vm184_vm6, %v4700_v22  ;;  %v4703_v40 = vpop.permute.xlu1 %4702 }
0x5fd8   :  { %v4705_v61 = vsel %vm135_vm2, %v3340_v37, %v4703_v40 }
0x6097   :  { %v4775_v0 = vpop.f32.mrf.mxu0 }
0x6098   :  { %v4776_v24 = vadd.f32 %v4775_v0, %v4705_v61 }
0x6099   :  { %v5463_v18 = vpop.f32.mrf.mxu0 }
0x609a   :  { %5732 = vtanh.f32 %v4776_v24  ;;  %v5024_v58 = vmul.f32 -1.442695, %v4776_v24 }
0x609c   :  { %5734 = vpow2.f32 %v5024_v58 }
0x60a7   :  { %v5733_v2 = vpop.eup %5732 }
0x60a8   :  { %4788 = vrot.lane.b32.xlu0 %v5733_v2, %s5798_s11 }
0x60a9   :  { %v5735_v44 = vpop.eup %5734 }
0x60aa   :  { %v4782_v20 = vadd.f32 1.0, %v5735_v44 }
0x60ac   :  { %5736 = vrcp.f32 %v4782_v20 }
0x60b9   :  { %v5737_v43 = vpop.eup %5736 }
0x60ba   :  { %v4786_v26 = vmul.f32 %v5737_v43, %v4683_v27 }
0x611a   :  { %v4789_v15 = vpop.permute.xlu0 %4788 }
0x611b   :  { %v4791_v8 = vmul.f32 %v5737_v43, %v4789_v15 }
0x611d   :  { %4793 = vrot.lane.b32.xlu1 %v4791_v8, %s5790_s26 }
0x618f   :  { %v4794_v9 = vpop.permute.xlu1 %4793 }
0x6190   :  { %v4796_v37 = vadd.f32 %v4794_v9, %v4786_v26 }
0x6192   :  { %5738 = vtanh.f32 %v4796_v37 }
0x619f   :  { %v5739_v12 = vpop.eup %5738 }
0x61a0   :  { %4799 = vrot.lane.b32.xlu0 %v5739_v12, %s5790_s26 }
0x61a4   :  { %4824 = vrot.lane.b32.xlu0 %v4823_v14, %s5789_s23 }
0x61a8   :  { %4853 = vrot.lane.b32.xlu0 %v4852_v16, %s5790_s26 }
0x61ac   :  { %4845 = vrot.lane.b32.xlu0 %v4844_v33, %s5800_s15 }
0x61b0   :  { %4870 = vrot.lane.b32.xlu0 %v4869_v19, %s5790_s26 }
0x6212   :  { %v4800_v32 = vpop.permute.xlu0 %4799 }
0x6213   :  { %v4802_v38 = vmul.f32 %v5737_v43, %v4800_v32 }
0x6215   :  { %4804 = vrot.lane.b32.xlu1 %v4802_v38, %s5799_s19 }
0x6216   :  { %v4825_v41 = vpop.permute.xlu0 %4824 }
0x6219   :  { %4836 = vrot.lane.b32.xlu1 %v4835_v5, %s5790_s26 }
0x621a   :  { %v4854_v4 = vpop.permute.xlu0 %4853 }
0x621b   :  { %v4865_v47 = vsel %vm174_vm4, %v4811_v28, %v4854_v4 }
0x621d   :  { %4841 = vrot.lane.b32.xlu1 %v4840_v25, %s5789_s23 }
0x621e   :  { %v4846_v42 = vpop.permute.xlu0 %4845 }
0x6221   :  { %4858 = vrot.lane.b32.xlu1 %v4857_v11, %s5789_s23 }
0x6222   :  { %v4871_v56 = vpop.permute.xlu0 %4870 }
0x6225   :  { %4862 = vrot.lane.b32.xlu1 %v4861_v21, %s5800_s15 }
0x6287   :  { %v4805_v39 = vpop.permute.xlu1 %4804 }
0x6288   :  { %4807 = vst.msk [vmem:[#allocation2 + $0x1e] sm:$0x3] %vm1151_vm0, %v4805_v39 }
0x6289   :  { %4808 = vst.msk [vmem:[#allocation3 - $0x2] sm:$0xc] %vm1153_vm1, %v4805_v39 }
0x628b   :  { %v4837_v35 = vpop.permute.xlu1 %4836 }
0x628c   :  { %v4848_v60 = vsel %vm174_vm4, %v4810_v23, %v4837_v35 }
0x628f   :  { %v4812_v63 = vld [vmem:[#allocation2 + $0x18] sm:$0xff]  ;;  %v4842_v36 = vpop.permute.xlu1 %4841 }
0x6290   :  { %v4813_v29 = vld [vmem:[#allocation3] sm:$0xff]  ;;  %v4874_v3 = vrot.slane %v4812_v63, 1  ;;  %v4849_v46 = vsel %vm184_vm6, %v4848_v60, %v4842_v36  ;;  %v4882_v57 = vsel %vm174_vm4, %v4812_v63, %v4871_v56 }
0x6291   :  { %v4827_v45 = vrot.slane %v4813_v29, 3  ;;  %v4818_v6 = vrot.slane %v4813_v29, 2  ;;  %v4850_v50 = vsel %vm606_vm10, %v4849_v46, %v4846_v42 }
0x6292   :  { %v4889_v30 = vrot.slane %v4850_v50, 5 }
0x6293   :  { %4828 = vrot.lane.b32.xlu1 %v4827_v45, %s5800_s15  ;;  %4819 = vrot.lane.b32.xlu0 %v4818_v6, %s5790_s26  ;;  %v4859_v1 = vpop.permute.xlu1 %4858  ;;  %s5802_s26 = smov 32  }
0x6294   :  { %v4866_v53 = vsel %vm184_vm6, %v4865_v47, %v4859_v1 }
0x6297   :  { %4879 = vrot.lane.b32.xlu1 %v4878_v34, %s5800_s15  ;;  %4875 = vrot.lane.b32.xlu0 %v4874_v3, %s5789_s23  ;;  %v4863_v51 = vpop.permute.xlu1 %4862  ;;  %s5801_s23 = smov 64  }
0x6298   :  { %v4867_v13 = vsel %vm606_vm10, %v4866_v53, %v4863_v51 }
0x6299   :  { %v4892_v22 = vrot.slane %v4867_v13, 4 }
0x6305   :  { %v4829_v48 = vpop.permute.xlu1 %4828  ;;  %v4820_v49 = vpop.permute.xlu0 %4819 }
0x6306   :  { %v4831_v54 = vsel %vm174_vm4, %v4809_v17, %v4820_v49  ;;  %vm4913_vm4 = vcmask 523264  }
0x6307   :  { %v4832_v27 = vsel %vm184_vm6, %v4831_v54, %v4825_v41 }
0x6308   :  { %v4833_v62 = vsel %vm606_vm10, %v4832_v27, %v4829_v48 }
0x6309   :  { %v4886_v55 = vrot.slane %v4833_v62, 6  ;;  %v4880_v10 = vpop.permute.xlu1 %4879  ;;  %v4876_v59 = vpop.permute.xlu0 %4875 }
0x630a   :  { %v4883_v40 = vsel %vm184_vm6, %v4882_v57, %v4876_v59  ;;  %vm4915_vm6 = vcmask 785408  }
0x630b   :  { %v4884_v61 = vsel %vm606_vm10, %v4883_v40, %v4880_v10  ;;  %v4898_v0 = vsel %vm4897_vm3, %v4886_v55, %v4889_v30 }
0x630c   :  { %v4895_v24 = vrot.slane %v4884_v61, 3  ;;  %v4899_v18 = vsel %vm135_vm2, %v4898_v0, %v4892_v22 }
0x630e   :  { %v4901_v2 = vsel %vm4900_vm5, %v4899_v18, %v4895_v24 }
0x630f   :  { %4906 = vrot.lane.b32.xlu1 %v4901_v2, %s5801_s23  ;;  %4903 = vrot.lane.b32.xlu0 %v4901_v2, %s5802_s26 }
0x6313   :  { %4909 = vrot.lane.b32.xlu0 %v4901_v2, %s5797_s4 }
0x6381   :  { %v4904_v58 = vpop.permute.xlu0 %4903  ;;  %v4907_v44 = vpop.permute.xlu1 %4906 }
0x6382   :  { %v4912_v20 = vsel %vm324_vm9, %v4901_v2, %v4904_v58 }
0x6383   :  { %v4914_v43 = vsel %vm4913_vm4, %v4912_v20, %v4907_v44 }
0x6385   :  { %v4910_v15 = vpop.permute.xlu0 %4909 }
0x6386   :  { %v4916_v8 = vsel %vm4915_vm6, %v4914_v43, %v4910_v15 }
0x6387   :  { %4917 = vst [vmem:[#allocation7] sm:$0xf] %v4916_v8 }
0x6388   :  { %5775 = shalt.err (!%p5772_p9)
}
0x6389   :  { %4927 = dma.vmem_to_hbm [thread:$0]  %s4925_s0, 64, %s7008_s16, [#allocation6]  }
0x638a   :  { %5786 = dma.done.wait [#allocation6], 64  }
0x638b   :  { %5787 = vsyncadd [#allocation6], 4294967232 }
0x638c   :  { %4931 = vsyncpa [#allocation5], 1 }
0x638d   :  { %4932 = vsyncpa [#allocation6], 1 }

</bundles_post_ra>
